<compile_context>
chip_gen: v5e
topology: v5e:2x2
jax: 0.10.0
libtpu: 0.0.40
codegen_flags: <defaults>
</compile_context>

<pallas_src>
import functools

import jax
import jax.numpy as jnp
from jax.experimental import pallas as pl
from jax.experimental.pallas import tpu as pltpu


def _round_up(x, m):
    return ((x + m - 1) // m) * m


def _vmem_budget_bytes():
    """~0.75x physical VMEM, capped; portable across v5e/v6e (128 MiB) and
    v7x (64 MiB per TensorCore)."""
    cap = 64 * 1024 * 1024  # conservative default (v7x per-TC)
    try:
        info = pltpu.get_tpu_info()
        cap = int(getattr(info, "vmem_capacity_bytes", cap) or cap)
    except Exception:
        pass
    return int(min(0.75 * cap, 100 * 1024 * 1024))


def _select_row_tile(n_nodes, f_pad, h_pad, c_pad, budget):
    """Largest row tile (tm) whose full-row adjacency slab fits the VMEM
    budget; prefer an even number of row tiles so the 'parallel' grid axis
    shards evenly across v7x's two TensorCores."""
    n128 = _round_up(n_nodes, 128)
    best = None
    for tm in (1024, 512, 256, 128):
        tm_eff = min(tm, n128)
        n_pad = _round_up(n128, tm_eff)
        n_i = n_pad // tm_eff
        headroom = 4 << 20
        # worst-case double-buffered footprints of the three kernels (bytes)
        k1 = 2 * tm_eff * f_pad * 2 + 2 * f_pad * h_pad * 2 + 2 * tm_eff * h_pad * 2
        k2 = (2 * tm_eff * n_pad * 2 + 2 * n_pad * h_pad * 2
              + 2 * h_pad * c_pad * 2 + 2 * tm_eff * c_pad * 2)
        k3 = 2 * tm_eff * n_pad * 2 + 2 * n_pad * c_pad * 2 + 2 * tm_eff * c_pad * 4
        footprint = max(k1, k2, k3) + headroom
        if footprint > budget:
            continue
        key = (n_i % 2 == 0, tm_eff)   # prefer even split, then larger tile
        if best is None or key > best[0]:
            best = (key, tm_eff, n_pad)
    if best is None:
        tm_eff = min(128, n128)
        return tm_eff, _round_up(n128, tm_eff)
    return best[1], best[2]


# ------------------- kernel 1: XW = X @ W1 (row-tiled) ----------------------
def _xw_kernel(x_ref, w1_ref, out_ref):
    out_ref[...] = jnp.dot(
        x_ref[...], w1_ref[...], preferred_element_type=jnp.float32
    ).astype(out_ref.dtype)


# --------------- kernel 2: HW2 = ELU(A_hat @ XW + b1) @ W2 ------------------
def _layer1_kernel(adj_ref, xw_ref, b1_ref, w2_ref, out_ref):
    # Full-row adjacency slab: single MXU pass, no k-reduction / accumulator.
    h = jnp.dot(adj_ref[...], xw_ref[...], preferred_element_type=jnp.float32)
    h = h + b1_ref[...]
    # ELU(alpha=1).  (exp on EUP; explicit -1 kept for guaranteed lowering.)
    h = jnp.where(h > 0, h, jnp.exp(h) - 1.0)
    out_ref[...] = jnp.dot(
        h.astype(jnp.bfloat16), w2_ref[...], preferred_element_type=jnp.float32
    ).astype(out_ref.dtype)


# ---------- kernel 3: OUT = log_softmax(A_hat @ HW2 + b2, dim=1) ------------
def _layer2_kernel(adj_ref, hw_ref, b2_ref, out_ref, *, num_classes):
    z = jnp.dot(adj_ref[...], hw_ref[...], preferred_element_type=jnp.float32)
    z = z + b2_ref[...]
    lane = jax.lax.broadcasted_iota(jnp.int32, z.shape, 1)
    valid = lane < num_classes
    z = jnp.where(valid, z, -jnp.inf)            # padded classes excluded
    z_max = jnp.max(z, axis=1, keepdims=True)
    zs = z - z_max
    lse = jnp.log(jnp.sum(jnp.exp(zs), axis=1, keepdims=True))
    out_ref[...] = jnp.where(valid, zs - lse, 0.0).astype(out_ref.dtype)


# ---------------------- one-time input preparation --------------------------
def prepare_gcn_inputs(adj_norm, x, w1, b1, w2, b2):
    """Pad + cast once (OUTSIDE jit) so the N_pad^2 pad/cast traffic is not
    paid every forward call.  Returns padded operands and static meta."""
    N, F = x.shape
    H = w1.shape[1]
    C = w2.shape[1]
    F_pad = _round_up(F, 128)
    H_pad = _round_up(H, 128)
    C_pad = _round_up(C, 128)
    budget = _vmem_budget_bytes()
    tm, N_pad = _select_row_tile(N, F_pad, H_pad, C_pad, budget)

    bf16, f32 = jnp.bfloat16, jnp.float32
    adj_p = jnp.zeros((N_pad, N_pad), bf16).at[:N, :N].set(adj_norm.astype(bf16))
    x_p = jnp.zeros((N_pad, F_pad), bf16).at[:N, :F].set(x.astype(bf16))
    w1_p = jnp.zeros((F_pad, H_pad), bf16).at[:F, :H].set(w1.astype(bf16))
    b1_p = jnp.zeros((1, H_pad), f32).at[:, :H].set(b1.reshape(1, H).astype(f32))
    w2_p = jnp.zeros((H_pad, C_pad), bf16).at[:H, :C].set(w2.astype(bf16))
    b2_p = jnp.zeros((1, C_pad), f32).at[:, :C].set(b2.reshape(1, C).astype(f32))

    meta = dict(N=N, C=C, N_pad=N_pad, F_pad=F_pad, H_pad=H_pad, C_pad=C_pad,
                tm=tm, vmem_limit=budget)
    return (adj_p, x_p, w1_p, b1_p, w2_p, b2_p), meta


# ------------------------------ forward --------------------------------------
def make_gcn_forward(meta):
    N, C = meta["N"], meta["C"]
    N_pad, F_pad = meta["N_pad"], meta["F_pad"]
    H_pad, C_pad = meta["H_pad"], meta["C_pad"]
    tm = meta["tm"]
    n_i = N_pad // tm
    cp = pltpu.CompilerParams(
        dimension_semantics=("parallel",),
        vmem_limit_bytes=meta["vmem_limit"],
    )

    def forward(adj_p, x_p, w1_p, b1_p, w2_p, b2_p):
        # ---- 1) XW = X @ W1 (hoisted out of the adjacency product) ----
        xw = pl.pallas_call(
            _xw_kernel,
            out_shape=jax.ShapeDtypeStruct((N_pad, H_pad), jnp.bfloat16),
            grid_spec=pltpu.PrefetchScalarGridSpec(
                num_scalar_prefetch=0,
                grid=(n_i,),
                in_specs=[
                    pl.BlockSpec((tm, F_pad), lambda i: (i, 0)),
                    pl.BlockSpec((F_pad, H_pad), lambda i: (0, 0)),
                ],
                out_specs=pl.BlockSpec((tm, H_pad), lambda i: (i, 0)),
            ),
            compiler_params=cp,
            cost_estimate=pl.CostEstimate(
                flops=2 * N_pad * F_pad * H_pad,
                transcendentals=0,
                bytes_accessed=2 * (N_pad * F_pad + F_pad * H_pad + N_pad * H_pad),
            ),
        )(x_p, w1_p)

        # ---- 2) HW2 = ELU(A_hat @ XW + b1) @ W2  (full-row slab per step) ----
        hw2 = pl.pallas_call(
            _layer1_kernel,
            out_shape=jax.ShapeDtypeStruct((N_pad, C_pad), jnp.bfloat16),
            grid_spec=pltpu.PrefetchScalarGridSpec(
                num_scalar_prefetch=0,
                grid=(n_i,),
                in_specs=[
                    pl.BlockSpec((tm, N_pad), lambda i: (i, 0)),
                    pl.BlockSpec((N_pad, H_pad), lambda i: (0, 0)),
                    pl.BlockSpec((1, H_pad), lambda i: (0, 0)),
                    pl.BlockSpec((H_pad, C_pad), lambda i: (0, 0)),
                ],
                out_specs=pl.BlockSpec((tm, C_pad), lambda i: (i, 0)),
            ),
            compiler_params=cp,
            cost_estimate=pl.CostEstimate(
                flops=2 * N_pad * N_pad * H_pad + 2 * N_pad * H_pad * C_pad,
                transcendentals=N_pad * H_pad,
                bytes_accessed=2 * N_pad * N_pad + 2 * N_pad * H_pad
                + 2 * N_pad * C_pad + 2 * H_pad * C_pad,
            ),
        )(adj_p, xw, b1_p, w2_p)

        # ---- 3) OUT = log_softmax(A_hat @ HW2 + b2) — direct to out_ref ----
        out_pad = pl.pallas_call(
            functools.partial(_layer2_kernel, num_classes=C),
            out_shape=jax.ShapeDtypeStruct((N_pad, C_pad), jnp.float32),
            grid_spec=pltpu.PrefetchScalarGridSpec(
                num_scalar_prefetch=0,
                grid=(n_i,),
                in_specs=[
                    pl.BlockSpec((tm, N_pad), lambda i: (i, 0)),
                    pl.BlockSpec((N_pad, C_pad), lambda i: (0, 0)),
                    pl.BlockSpec((1, C_pad), lambda i: (0, 0)),
                ],
                out_specs=pl.BlockSpec((tm, C_pad), lambda i: (i, 0)),
            ),
            compiler_params=cp,
            cost_estimate=pl.CostEstimate(
                flops=2 * N_pad * N_pad * C_pad,
                transcendentals=N_pad * C_pad,
                bytes_accessed=2 * N_pad * N_pad + 2 * N_pad * C_pad
                + 4 * N_pad * C_pad,
            ),
        )(adj_p, hw2, b2_p)

        return out_pad[:N, :C]

    return jax.jit(forward)


# ------------------------- graph glue / reference ----------------------------
def build_normalized_adj(edge_index, num_nodes):
    """Dense D^-1/2 (A + I) D^-1/2 (add_remaining_self_loops semantics)."""
    src, dst = edge_index
    a = jnp.zeros((num_nodes, num_nodes), jnp.float32)
    a = a.at[src, dst].set(1.0)
    a = jnp.maximum(a, jnp.eye(num_nodes, dtype=jnp.float32))  # no double self-loops
    deg = jnp.sum(a, axis=1)
    d_inv_sqrt = jnp.where(deg > 0, 1.0 / jnp.sqrt(deg), 0.0)
    return a * d_inv_sqrt[:, None] * d_inv_sqrt[None, :]


def _reference_forward(adj, x, w1, b1, w2, b2):
    h = adj @ (x @ w1) + b1
    h = jnp.where(h > 0, h, jnp.exp(h) - 1.0)
    z = adj @ (h @ w2) + b2
    return jax.nn.log_softmax(z, axis=1)


if __name__ == "__main__":
    # Small synthetic "Cora-like" graph: N nodes, F input feats, H hidden, C classes.
    N, F, H, C = 512, 256, 128, 8

    key = jax.random.PRNGKey(0)
    k_x, k_e, k_w1, k_w2 = jax.random.split(key, 4)

    x = jax.random.normal(k_x, (N, F), dtype=jnp.float32)

    num_edges = 2048
    src = jax.random.randint(k_e, (num_edges,), 0, N)
    dst = jnp.roll(src, 1)
    edge_index = (jnp.concatenate([src, dst]), jnp.concatenate([dst, src]))
    adj_norm = build_normalized_adj(edge_index, N)

    def glorot(k, shape):
        limit = jnp.sqrt(6.0 / (shape[0] + shape[1]))
        return jax.random.uniform(k, shape, jnp.float32, -limit, limit)

    w1 = glorot(k_w1, (F, H))
    b1 = jnp.zeros((1, H), jnp.float32)
    w2 = glorot(k_w2, (H, C))
    b2 = jnp.zeros((1, C), jnp.float32)

    # One-time pad/cast (hoisted out of the jitted forward), then run.
    operands, meta = prepare_gcn_inputs(adj_norm, x, w1, b1, w2, b2)
    fwd = make_gcn_forward(meta)
    out = jax.block_until_ready(fwd(*operands))

    assert out.shape == (N, C)
    # log_softmax rows must sum (in prob space) to ~1
    assert jnp.allclose(jnp.sum(jnp.exp(out), axis=1), 1.0, atol=1e-3)
    # loose check vs f32 reference (kernel uses bf16 MXU inputs / f32 accumulation)
    ref = _reference_forward(adj_norm, x, w1, b1, w2, b2)
    assert float(jnp.max(jnp.abs(out - ref))) < 0.25
    print("KERNEL_OK")
</pallas_src>

<mosaic_0001>
module attributes {stable_mosaic.version = 11 : i64} {
  func.func @_layer1_kernel(%arg0: i32, %arg1: memref<256x512xbf16, #tpu.memory_space<vmem>>, %arg2: memref<512x128xbf16, #tpu.memory_space<vmem>>, %arg3: memref<1x128xf32, #tpu.memory_space<vmem>>, %arg4: memref<128x128xbf16, #tpu.memory_space<vmem>>, %arg5: memref<256x128xbf16, #tpu.memory_space<vmem>>) attributes {dimension_semantics = [#tpu.dimension_semantics<parallel>], iteration_bounds = array<i64: 2>, scalar_prefetch = 0 : i64, scratch_operands = 0 : i64, tpu.core_type = #tpu.core_type<tc>, window_params = [{transform_indices = @transform_0, window_bounds = array<i64: 256, 512>}, {pipeline_mode = #tpu.pipeline_mode<synchronous>, transform_indices = @transform_1, window_bounds = array<i64: 512, 128>}, {pipeline_mode = #tpu.pipeline_mode<synchronous>, transform_indices = @transform_2, window_bounds = array<i64: 1, 128>}, {pipeline_mode = #tpu.pipeline_mode<synchronous>, transform_indices = @transform_3, window_bounds = array<i64: 128, 128>}, {transform_indices = @transform_4, window_bounds = array<i64: 256, 128>}]} {
    %c0 = arith.constant 0 : index
    %c0_0 = arith.constant 0 : index
    %0 = vector.load %arg1[%c0, %c0_0] : memref<256x512xbf16, #tpu.memory_space<vmem>>, vector<256x512xbf16>
    %c0_1 = arith.constant 0 : index
    %c0_2 = arith.constant 0 : index
    %1 = vector.load %arg2[%c0_1, %c0_2] : memref<512x128xbf16, #tpu.memory_space<vmem>>, vector<512x128xbf16>
    %cst = arith.constant dense<0.000000e+00> : vector<256x128xf32>
    %2 = tpu.matmul %0, %1, %cst {dimension_numbers = #tpu.dot_dimension_numbers<[1], [0], [0], [1], [0, 0, 1, 1], [], []>} : vector<256x512xbf16>, vector<512x128xbf16>, vector<256x128xf32> -> vector<256x128xf32>
    %c0_3 = arith.constant 0 : index
    %c0_4 = arith.constant 0 : index
    %3 = vector.load %arg3[%c0_3, %c0_4] : memref<1x128xf32, #tpu.memory_space<vmem>>, vector<1x128xf32>
    %4 = vector.broadcast %3 : vector<1x128xf32> to vector<256x128xf32>
    %5 = arith.addf %2, %4 : vector<256x128xf32>
    %cst_5 = arith.constant 0.000000e+00 : f32
    %6 = vector.broadcast %cst_5 : f32 to vector<256x128xf32>
    %7 = arith.cmpf ogt, %5, %6 : vector<256x128xf32>
    %8 = math.exp %5 : vector<256x128xf32>
    %cst_6 = arith.constant 1.000000e+00 : f32
    %9 = vector.broadcast %cst_6 : f32 to vector<256x128xf32>
    %10 = arith.subf %8, %9 : vector<256x128xf32>
    %11 = arith.select %7, %5, %10 : vector<256x128xi1>, vector<256x128xf32>
    %12 = arith.truncf %11 : vector<256x128xf32> to vector<256x128xbf16>
    %c0_7 = arith.constant 0 : index
    %c0_8 = arith.constant 0 : index
    %13 = vector.load %arg4[%c0_7, %c0_8] : memref<128x128xbf16, #tpu.memory_space<vmem>>, vector<128x128xbf16>
    %cst_9 = arith.constant dense<0.000000e+00> : vector<256x128xf32>
    %14 = tpu.matmul %12, %13, %cst_9 {dimension_numbers = #tpu.dot_dimension_numbers<[1], [0], [0], [1], [0, 0, 1, 1], [], []>} : vector<256x128xbf16>, vector<128x128xbf16>, vector<256x128xf32> -> vector<256x128xf32>
    %15 = arith.truncf %14 : vector<256x128xf32> to vector<256x128xbf16>
    %c0_10 = arith.constant 0 : index
    %c0_11 = arith.constant 0 : index
    %16 = vector.load %arg5[%c0_10, %c0_11] : memref<256x128xbf16, #tpu.memory_space<vmem>>, vector<256x128xbf16>
    tpu.vector_store %arg5[%c0_10, %c0_11], %15 {strides = array<i32>} : memref<256x128xbf16, #tpu.memory_space<vmem>>, vector<256x128xbf16>,
    return
  }
  func.func @transform_0(%arg0: i32) -> (i32, i32) {
    %c0_i32 = arith.constant 0 : i32
    %c0_i32_0 = arith.constant 0 : i32
    return %arg0, %c0_i32 : i32, i32
  }
  func.func @transform_1(%arg0: i32) -> (i32, i32) {
    %c0_i32 = arith.constant 0 : i32
    %c0_i32_0 = arith.constant 0 : i32
    %c0_i32_1 = arith.constant 0 : i32
    return %c0_i32, %c0_i32_0 : i32, i32
  }
  func.func @transform_2(%arg0: i32) -> (i32, i32) {
    %c0_i32 = arith.constant 0 : i32
    %c0_i32_0 = arith.constant 0 : i32
    %c0_i32_1 = arith.constant 0 : i32
    return %c0_i32, %c0_i32_0 : i32, i32
  }
  func.func @transform_3(%arg0: i32) -> (i32, i32) {
    %c0_i32 = arith.constant 0 : i32
    %c0_i32_0 = arith.constant 0 : i32
    %c0_i32_1 = arith.constant 0 : i32
    return %c0_i32, %c0_i32_0 : i32, i32
  }
  func.func @transform_4(%arg0: i32) -> (i32, i32) {
    %c0_i32 = arith.constant 0 : i32
    %c0_i32_0 = arith.constant 0 : i32
    return %arg0, %c0_i32 : i32, i32
  }
}

module attributes {stable_mosaic.version = 11 : i64} {
  func.func @_layer2_kernel(%arg0: i32, %arg1: memref<256x512xbf16, #tpu.memory_space<vmem>>, %arg2: memref<512x128xbf16, #tpu.memory_space<vmem>>, %arg3: memref<1x128xf32, #tpu.memory_space<vmem>>, %arg4: memref<256x128xf32, #tpu.memory_space<vmem>>) attributes {dimension_semantics = [#tpu.dimension_semantics<parallel>], iteration_bounds = array<i64: 2>, scalar_prefetch = 0 : i64, scratch_operands = 0 : i64, tpu.core_type = #tpu.core_type<tc>, window_params = [{transform_indices = @transform_0, window_bounds = array<i64: 256, 512>}, {pipeline_mode = #tpu.pipeline_mode<synchronous>, transform_indices = @transform_1, window_bounds = array<i64: 512, 128>}, {pipeline_mode = #tpu.pipeline_mode<synchronous>, transform_indices = @transform_2, window_bounds = array<i64: 1, 128>}, {transform_indices = @transform_3, window_bounds = array<i64: 256, 128>}]} {
    %c0 = arith.constant 0 : index
    %c0_0 = arith.constant 0 : index
    %0 = vector.load %arg1[%c0, %c0_0] : memref<256x512xbf16, #tpu.memory_space<vmem>>, vector<256x512xbf16>
    %c0_1 = arith.constant 0 : index
    %c0_2 = arith.constant 0 : index
    %1 = vector.load %arg2[%c0_1, %c0_2] : memref<512x128xbf16, #tpu.memory_space<vmem>>, vector<512x128xbf16>
    %cst = arith.constant dense<0.000000e+00> : vector<256x128xf32>
    %2 = tpu.matmul %0, %1, %cst {dimension_numbers = #tpu.dot_dimension_numbers<[1], [0], [0], [1], [0, 0, 1, 1], [], []>} : vector<256x512xbf16>, vector<512x128xbf16>, vector<256x128xf32> -> vector<256x128xf32>
    %c0_3 = arith.constant 0 : index
    %c0_4 = arith.constant 0 : index
    %3 = vector.load %arg3[%c0_3, %c0_4] : memref<1x128xf32, #tpu.memory_space<vmem>>, vector<1x128xf32>
    %4 = vector.broadcast %3 : vector<1x128xf32> to vector<256x128xf32>
    %5 = arith.addf %2, %4 : vector<256x128xf32>
    %6 = tpu.iota {dimensions = array<i32: 1>} : vector<256x128xi32>
    %c8_i32 = arith.constant 8 : i32
    %7 = vector.broadcast %c8_i32 : i32 to vector<256x128xi32>
    %8 = arith.cmpi slt, %6, %7 : vector<256x128xi32>
    %cst_5 = arith.constant 0xFF800000 : f32
    %9 = vector.broadcast %cst_5 : f32 to vector<256x128xf32>
    %10 = arith.select %8, %5, %9 : vector<256x128xi1>, vector<256x128xf32>
    %cst_6 = arith.constant dense<0xFF800000> : vector<256xf32>
    %11 = vector.multi_reduction <maximumf>, %10, %cst_6 [1] : vector<256x128xf32> to vector<256xf32>
    %12 = vector.shape_cast %11 : vector<256xf32> to vector<256x1xf32>
    %13 = vector.broadcast %12 : vector<256x1xf32> to vector<256x128xf32>
    %14 = arith.subf %10, %13 : vector<256x128xf32>
    %15 = math.exp %14 : vector<256x128xf32>
    %cst_7 = arith.constant dense<0.000000e+00> : vector<256xf32>
    %16 = vector.multi_reduction <add>, %15, %cst_7 [1] : vector<256x128xf32> to vector<256xf32>
    %17 = vector.shape_cast %16 : vector<256xf32> to vector<256x1xf32>
    %18 = math.log %17 : vector<256x1xf32>
    %19 = vector.broadcast %18 : vector<256x1xf32> to vector<256x128xf32>
    %20 = arith.subf %14, %19 : vector<256x128xf32>
    %cst_8 = arith.constant 0.000000e+00 : f32
    %21 = vector.broadcast %cst_8 : f32 to vector<256x128xf32>
    %22 = arith.select %8, %20, %21 : vector<256x128xi1>, vector<256x128xf32>
    %c0_9 = arith.constant 0 : index
    %c0_10 = arith.constant 0 : index
    %23 = vector.load %arg4[%c0_9, %c0_10] : memref<256x128xf32, #tpu.memory_space<vmem>>, vector<256x128xf32>
    tpu.vector_store %arg4[%c0_9, %c0_10], %22 {strides = array<i32>} : memref<256x128xf32, #tpu.memory_space<vmem>>, vector<256x128xf32>,
    return
  }
  func.func @transform_0(%arg0: i32) -> (i32, i32) {
    %c0_i32 = arith.constant 0 : i32
    %c0_i32_0 = arith.constant 0 : i32
    return %arg0, %c0_i32 : i32, i32
  }
  func.func @transform_1(%arg0: i32) -> (i32, i32) {
    %c0_i32 = arith.constant 0 : i32
    %c0_i32_0 = arith.constant 0 : i32
    %c0_i32_1 = arith.constant 0 : i32
    return %c0_i32, %c0_i32_0 : i32, i32
  }
  func.func @transform_2(%arg0: i32) -> (i32, i32) {
    %c0_i32 = arith.constant 0 : i32
    %c0_i32_0 = arith.constant 0 : i32
    %c0_i32_1 = arith.constant 0 : i32
    return %c0_i32, %c0_i32_0 : i32, i32
  }
  func.func @transform_3(%arg0: i32) -> (i32, i32) {
    %c0_i32 = arith.constant 0 : i32
    %c0_i32_0 = arith.constant 0 : i32
    return %arg0, %c0_i32 : i32, i32
  }
}

module attributes {stable_mosaic.version = 11 : i64} {
  func.func @_xw_kernel(%arg0: i32, %arg1: memref<256x256xbf16, #tpu.memory_space<vmem>>, %arg2: memref<256x128xbf16, #tpu.memory_space<vmem>>, %arg3: memref<256x128xbf16, #tpu.memory_space<vmem>>) attributes {dimension_semantics = [#tpu.dimension_semantics<parallel>], iteration_bounds = array<i64: 2>, scalar_prefetch = 0 : i64, scratch_operands = 0 : i64, tpu.core_type = #tpu.core_type<tc>, window_params = [{transform_indices = @transform_0, window_bounds = array<i64: 256, 256>}, {pipeline_mode = #tpu.pipeline_mode<synchronous>, transform_indices = @transform_1, window_bounds = array<i64: 256, 128>}, {transform_indices = @transform_2, window_bounds = array<i64: 256, 128>}]} {
    %c0 = arith.constant 0 : index
    %c0_0 = arith.constant 0 : index
    %0 = vector.load %arg1[%c0, %c0_0] : memref<256x256xbf16, #tpu.memory_space<vmem>>, vector<256x256xbf16>
    %c0_1 = arith.constant 0 : index
    %c0_2 = arith.constant 0 : index
    %1 = vector.load %arg2[%c0_1, %c0_2] : memref<256x128xbf16, #tpu.memory_space<vmem>>, vector<256x128xbf16>
    %cst = arith.constant dense<0.000000e+00> : vector<256x128xf32>
    %2 = tpu.matmul %0, %1, %cst {dimension_numbers = #tpu.dot_dimension_numbers<[1], [0], [0], [1], [0, 0, 1, 1], [], []>} : vector<256x256xbf16>, vector<256x128xbf16>, vector<256x128xf32> -> vector<256x128xf32>
    %3 = arith.truncf %2 : vector<256x128xf32> to vector<256x128xbf16>
    %c0_3 = arith.constant 0 : index
    %c0_4 = arith.constant 0 : index
    %4 = vector.load %arg3[%c0_3, %c0_4] : memref<256x128xbf16, #tpu.memory_space<vmem>>, vector<256x128xbf16>
    tpu.vector_store %arg3[%c0_3, %c0_4], %3 {strides = array<i32>} : memref<256x128xbf16, #tpu.memory_space<vmem>>, vector<256x128xbf16>,
    return
  }
  func.func @transform_0(%arg0: i32) -> (i32, i32) {
    %c0_i32 = arith.constant 0 : i32
    %c0_i32_0 = arith.constant 0 : i32
    return %arg0, %c0_i32 : i32, i32
  }
  func.func @transform_1(%arg0: i32) -> (i32, i32) {
    %c0_i32 = arith.constant 0 : i32
    %c0_i32_0 = arith.constant 0 : i32
    %c0_i32_1 = arith.constant 0 : i32
    return %c0_i32, %c0_i32_0 : i32, i32
  }
  func.func @transform_2(%arg0: i32) -> (i32, i32) {
    %c0_i32 = arith.constant 0 : i32
    %c0_i32_0 = arith.constant 0 : i32
    return %arg0, %c0_i32 : i32, i32
  }
}

</mosaic_0001>

<bundles_post_ra>
// kernel: forward.3
= control target key start
LH: loop header
LB: loop body
LE: loop exit
PB: predicated region body
PF: predicated region fallthrough
CT: control target
= control target key end

     0   :  { %7 = vsyncpa [#allocation3], 0  ;;  %s1558_s0 = inlined_call_operand.hbm [shape: bf16[512,256], index: 0, kind: input, shape index: {}]   ;;  %s1559_s1 = inlined_call_operand.hbm [shape: bf16[256,128], index: 1, kind: input, shape index: {}]   ;;  %s1560_s2 = inlined_call_operand.vmem [shape: bf16[512,128], index: 2, kind: output, shape index: {}]  }
   0x1   :  { %9 = vsyncpa [#allocation3 + $0x1], 0 }
   0x2   :  { %10 = vsyncpa [#allocation5], 0  ;;  %s1368_s9 = smov 0   ;;  %s1370_s10 = smov 0  }
   0x3   :  { %s1372_s11 = smov 0   ;;  %s1374_s12 = smov 0  }
   0x4 LB: > { %s825_s13 = sadd.s32 4294967295, %s1346_s12   ;;  %p36_p0 = scmp.ne.s32.totalorder %s1338_s10, %s1334_s9  ;;  %s1346_s12 = sphi %s1374_s12, %s1568_s12   ;;  %s1342_s11 = sphi %s1372_s11, %s1567_s11   ;;  %s1338_s10 = sphi %s1370_s10, %s1566_s10   ;;  %s1334_s9 = sphi %s1368_s9, %s1565_s9  }
   0x5   : > { %p1390_p1 = scmp.eq.s32.totalorder %s825_s13, 0  ;;  %p827_p2 = scmp.ge.s32.totalorder %s1346_s12, 1 }
   0x6   : > { %p94_p3 = scmp.lt.s32.totalorder %s1346_s12, 3  ;;  %s105_s18 = sshll.u32 %s1559_s1, 4  ;;  %s106_s18 = int_to_ptr.hbm [resolvable:$true] %s105_s18 }
   0x7   : > { %p1398_p4 = por %p1390_p1, %p36_p0  ;;  %s1348_s20 = smov [#allocation4]  }
   0x8   : > { %p1405_p5 = pnand %p827_p2, %p94_p3  ;;  %s107_s21 = sshll.u32 %s1348_s20, 4  ;;  %s108_s21 = int_to_ptr.vmem [resolvable:$true] %s107_s21 }
   0x9   : > { %s1414_s22 = sadd.s32 1, %s1346_s12   ;;  %s1349_s23 = smov 64  }
   0xa   : > { %p1200_p6 = pneg %p1405_p5  ;;  %s1350_s24 = smov 4  }
   0xb   : > { %s20_s25 = ssub.s32 %s1346_s12, %s1414_s22  ;;  %s23_s26 = sadd.s32 1, %s1342_s11 }
   0xc   : > { %p1201_p7 = pnand %p1200_p6, %p1390_p1  ;;  %p21_p8 = scmp.eq.s32.totalorder %s20_s25, 0 }
   0xd   : > { %p30_p9 = scmp.ne.s32.totalorder %s1342_s11, %s1338_s10  ;;  %p31_p10 = scmp.eq.s32.totalorder %s1346_s12, 0 }
   0xe   : > { %1203 = dma.hbm_to_vmem [thread:$0]  (!%p1201_p7), %s106_s18, 2048, %s108_s21, [#allocation5], %s1349_s23, %s1349_s23, %s1350_s24  }
   0xf   : > { %p1209_p11 = scmp.lt.s32.totalorder %s1346_s12, 2  ;;  %p32_p12 = por %p31_p10, %p30_p9 }
  0x10   : > { %s1424_s27 = scalar_select %p21_p8, %s1342_s11, %s23_s26  }
  0x11   : > { %s121_s28 = sand.u32 1, %s1342_s11   ;;  %s1034_s30 = sshll.u32 %s1346_s12, 8 }
  0x12   : > { %s830_s29 = sshll.u32 %s121_s28, 8  ;;  %s131_s5 = scalar_lea.hbm %s1558_s0, %s1034_s30 }
  0x13   : > { %s125_s6 = scalar_lea.vmem [#allocation2], %s830_s29  ;;  %s132_s8 = sshll.u32 %s131_s5, 4  ;;  %s133_s8 = int_to_ptr.hbm [resolvable:$true] %s132_s8 }
  0x14   : > { %s134_s7 = sshll.u32 %s125_s6, 4  ;;  %p1431_p13 = pnand %p1209_p11, %p32_p12  ;;  %s135_s7 = int_to_ptr.vmem [resolvable:$true] %s134_s7 }
  0x15   : > { %s122_s16 = scalar_lea.sflag [#allocation3], %s121_s28  ;;  %s1278_s17 = sshra.s32 %s133_s8, 4  ;;  %s1279_s17 = int_to_ptr.hbm [resolvable:$true] %s1278_s17 }
  0x16   : > { %s1280_s18 = scalar_lea.hbm %s1279_s17, 256  ;;  %p1282_p2 = pneg %p1431_p13 }
  0x17   : > { %p1281_p0 = scmp.ne.s32.totalorder %s1279_s17, %s1280_s18  ;;  %s1285_s23 = scalar_lea.hbm %s1558_s0, 512 }
  0x18   : > { %p1286_p7 = scmp.lt.s32.totalorder %s1279_s17, %s1558_s0  ;;  %p1287_p8 = scmp.lt.s32.totalorder %s1285_s23, %s1280_s18 }
  0x19   : > { %p1283_p3 = pnand %p1282_p2, %p1281_p0 }
  0x1a   : > { %p1288_p9 = por %p1287_p8, %p1286_p7 }
  0x1b   : > { %p1284_p6 = pneg %p1283_p3 }
  0x1d   : > { %p1289_p10 = pnand %p1288_p9, %p1284_p6 }
  0x1f   : > { %1292 = shalt.err (!%p1289_p10)
}
  0x20   : > { %s1351_s26 = smov 128   ;;  %s1352_s28 = smov 8  }
  0x21   : > { %1207 = dma.hbm_to_vmem [thread:$0]  (!%p1431_p13), %s133_s8, 4096, %s135_s7, %s122_s16, %s1351_s26, %s1351_s26, %s1352_s28  }
  0x22   : > { %146 = sbr.rel (%p1405_p5) target bundleno = 332 (0x14c), region = 28  ;;  %s148_s29 = sand.u32 (!%p1405_p5), 1, %s1338_s10  }
  0x23   : > { %s835_s30 = sshll.u32 (!%p1405_p5), %s148_s29, 8  ;;  %s149_s3 = scalar_lea.sflag (!%p1405_p5), [#allocation3], %s148_s29 }
  0x24   : > { %s1448_s4 = scalar_lea.vmem (!%p1405_p5), [#allocation2], %s835_s30 }
  0x27   : > { %1325 = dma.done.wait (%p1398_p4), %s149_s3, 4096  }
  0x28   : > { %1327 = vsyncadd (%p1398_p4), %s149_s3, 4294963200 }
  0x29   : > { %1329 = dma.done.wait (%p1390_p1), [#allocation5], 2048  }
  0x2a   : > { %1331 = vsyncadd (%p1390_p1), [#allocation5], 4294965248  ;;  %v1074_v0 = vld [vmem:[#allocation4 + $0x38] sm:$0xff]  ;;  %v1073_v2 = vld [vmem:[#allocation4 + $0x30] sm:$0xff]  ;;  %s837_s14 = sshll.u32 %s825_s13, 5 }
  0x2b   : > { %v1082_v1 = vld [vmem:[#allocation4 + $0x78] sm:$0xff]  ;;  %506 = vmatpush.bf16.msra.mxu0 %v1074_v0  ;;  %1178 = vmatpush.bf16.msra.mxu2 %v1074_v0  ;;  %v1081_v3 = vld [vmem:[#allocation4 + $0x70] sm:$0xff]  ;;  %v1072_v4 = vld [vmem:[#allocation4 + $0x28] sm:$0xff]  ;;  %p181_p1 = scmp.lt.s32.totalorder %s837_s14, 63 }
  0x2c   : > { %595 = vmatpush.bf16.msra.mxu1 %v1082_v1  ;;  %1186 = vmatpush.bf16.msra.mxu3 %v1082_v1  ;;  %v1080_v5 = vld [vmem:[#allocation4 + $0x68] sm:$0xff]  ;;  %v1071_v6 = vld [vmem:[#allocation4 + $0x20] sm:$0xff]  ;;  %v1070_v8 = vld [vmem:[#allocation4 + $0x18] sm:$0xff] }
  0x2d   : > { %v1079_v7 = vld [vmem:[#allocation4 + $0x60] sm:$0xff]  ;;  %v1078_v9 = vld [vmem:[#allocation4 + $0x58] sm:$0xff]  ;;  %v1069_v10 = vld [vmem:[#allocation4 + $0x10] sm:$0xff]  ;;  %s1570_s14 = smov (!%p181_p1, %s837_s14), 63 }
  0x2e   : > { %v1077_v11 = vld [vmem:[#allocation4 + $0x50] sm:$0xff]  ;;  %v1068_v12 = vld [vmem:[#allocation4 + $0x8] sm:$0xff]  ;;  %v1067_v14 = vld [vmem:[#allocation4] sm:$0xff]  ;;  %s838_s15 = sshll.u32 %s1570_s14, 2 }
  0x2f   : > { %507 = vmatpush.bf16.msra.mxu0 %v1073_v2  ;;  %1179 = vmatpush.bf16.msra.mxu2 %v1073_v2  ;;  %v1076_v13 = vld [vmem:[#allocation4 + $0x48] sm:$0xff]  ;;  %v1075_v15 = vld [vmem:[#allocation4 + $0x40] sm:$0xff]  ;;  %v849_v28 = vld [vmem:[%s1448_s4 + $0x10] sm:$0xf]  ;;  %s1527_s6 = scalar_lea.vmem %s1560_s2, %s838_s15 }
  0x30   : > { %596 = vmatpush.bf16.msra.mxu1 %v1081_v3  ;;  %1187 = vmatpush.bf16.msra.mxu3 %v1081_v3  ;;  %v841_v16 = vld [vmem:[%s1448_s4] sm:$0xf]  ;;  %v1036_v17 = vld [vmem:[%s1448_s4 + $0x4] sm:$0xf0]  ;;  %v1035_v20 = vld [vmem:[%s1448_s4 + $0x4] sm:$0xf] }
  0x31   : > { %v905_v18 = vld [vmem:[%s1448_s4 + $0x80] sm:$0xf]  ;;  %v1052_v19 = vld [vmem:[%s1448_s4 + $0x84] sm:$0xf0]  ;;  %v843_v21 = vld [vmem:[%s1448_s4 + $0x8] sm:$0xf0]  ;;  %v842_v24 = vor.u32 %v1036_v17, %v841_v16 }
  0x32   : > { %v1051_v22 = vld [vmem:[%s1448_s4 + $0x84] sm:$0xf]  ;;  %v907_v23 = vld [vmem:[%s1448_s4 + $0x88] sm:$0xf0]  ;;  %v906_v25 = vor.u32 %v1052_v19, %v905_v18  ;;  %v846_v26 = vor.u32 %v1035_v20, %v843_v21  ;;  %v1038_v29 = vld [vmem:[%s1448_s4 + $0x14] sm:$0xf0] }
  0x33   : > { %508 = vmatpush.bf16.msra.mxu0 %v1072_v4  ;;  %1180 = vmatpush.bf16.msra.mxu2 %v1072_v4  ;;  %v910_v27 = vor.u32 %v1051_v22, %v907_v23  ;;  %v913_v30 = vld [vmem:[%s1448_s4 + $0x90] sm:$0xf]  ;;  %v1054_v31 = vld [vmem:[%s1448_s4 + $0x94] sm:$0xf0]  ;;  %v1037_v32 = vld [vmem:[%s1448_s4 + $0x14] sm:$0xf]  ;;  %v850_v36 = vor.u32 %v1038_v29, %v849_v28 }
  0x34   : > { %597 = vmatpush.bf16.msra.mxu1 %v1080_v5  ;;  %1188 = vmatpush.bf16.msra.mxu3 %v1080_v5  ;;  %v851_v33 = vld [vmem:[%s1448_s4 + $0x18] sm:$0xf0]  ;;  %v1053_v34 = vld [vmem:[%s1448_s4 + $0x94] sm:$0xf]  ;;  %v914_v37 = vor.u32 %v1054_v31, %v913_v30  ;;  %v857_v40 = vld [vmem:[%s1448_s4 + $0x20] sm:$0xf] }
  0x35   : > { %v915_v35 = vld [vmem:[%s1448_s4 + $0x98] sm:$0xf0]  ;;  %v854_v38 = vor.u32 %v1037_v32, %v851_v33  ;;  %v1040_v41 = vld [vmem:[%s1448_s4 + $0x24] sm:$0xf0]  ;;  %v921_v42 = vld [vmem:[%s1448_s4 + $0xa0] sm:$0xf] }
  0x36   : > { %v918_v39 = vor.u32 %v1053_v34, %v915_v35  ;;  %v1056_v43 = vld [vmem:[%s1448_s4 + $0xa4] sm:$0xf0]  ;;  %v1039_v44 = vld [vmem:[%s1448_s4 + $0x24] sm:$0xf]  ;;  %v859_v45 = vld [vmem:[%s1448_s4 + $0x28] sm:$0xf0]  ;;  %v858_v48 = vor.u32 %v1040_v41, %v857_v40 }
  0x37   : > { %509 = vmatpush.bf16.msra.mxu0 %v1071_v6  ;;  %1181 = vmatpush.bf16.msra.mxu2 %v1071_v6  ;;  %v1055_v46 = vld [vmem:[%s1448_s4 + $0xa4] sm:$0xf]  ;;  %v923_v47 = vld [vmem:[%s1448_s4 + $0xa8] sm:$0xf0]  ;;  %v922_v49 = vor.u32 %v1056_v43, %v921_v42  ;;  %v862_v50 = vor.u32 %v1039_v44, %v859_v45  ;;  %v865_v52 = vld [vmem:[%s1448_s4 + $0x30] sm:$0xf] }
  0x38   : > { %598 = vmatpush.bf16.msra.mxu1 %v1079_v7  ;;  %1189 = vmatpush.bf16.msra.mxu3 %v1079_v7  ;;  %v926_v51 = vor.u32 %v1055_v46, %v923_v47  ;;  %v1042_v53 = vld [vmem:[%s1448_s4 + $0x34] sm:$0xf0]  ;;  %v929_v54 = vld [vmem:[%s1448_s4 + $0xb0] sm:$0xf]  ;;  %v1041_v56 = vld [vmem:[%s1448_s4 + $0x34] sm:$0xf] }
  0x39   : > { %v1058_v55 = vld [vmem:[%s1448_s4 + $0xb4] sm:$0xf0]  ;;  %v867_v57 = vld [vmem:[%s1448_s4 + $0x38] sm:$0xf0]  ;;  %v1057_v58 = vld [vmem:[%s1448_s4 + $0xb4] sm:$0xf]  ;;  %v866_v60 = vor.u32 %v1042_v53, %v865_v52 }
  0x3a   : > { %v931_v59 = vld [vmem:[%s1448_s4 + $0xb8] sm:$0xf0]  ;;  %v930_v61 = vor.u32 %v1058_v55, %v929_v54  ;;  %v870_v62 = vor.u32 %v1041_v56, %v867_v57  ;;  %v873_v0 = vld [vmem:[%s1448_s4 + $0x40] sm:$0xf]  ;;  %v1044_v1 = vld [vmem:[%s1448_s4 + $0x44] sm:$0xf0] }
  0x3b   : > { %510 = vmatpush.bf16.msra.mxu0 %v1070_v8  ;;  %1182 = vmatpush.bf16.msra.mxu2 %v1070_v8  ;;  %v934_v63 = vor.u32 %v1057_v58, %v931_v59  ;;  %v937_v2 = vld [vmem:[%s1448_s4 + $0xc0] sm:$0xf]  ;;  %v1060_v3 = vld [vmem:[%s1448_s4 + $0xc4] sm:$0xf0]  ;;  %v1043_v4 = vld [vmem:[%s1448_s4 + $0x44] sm:$0xf]  ;;  %v874_v8 = vor.u32 %v1044_v1, %v873_v0 }
  0x3c   : > { %599 = vmatpush.bf16.msra.mxu1 %v1078_v9  ;;  %1190 = vmatpush.bf16.msra.mxu3 %v1078_v9  ;;  %v875_v5 = vld [vmem:[%s1448_s4 + $0x48] sm:$0xf0]  ;;  %v1059_v6 = vld [vmem:[%s1448_s4 + $0xc4] sm:$0xf]  ;;  %v938_v9 = vor.u32 %v1060_v3, %v937_v2  ;;  %v1045_v16 = vld [vmem:[%s1448_s4 + $0x54] sm:$0xf] }
  0x3d   : > { %v939_v7 = vld [vmem:[%s1448_s4 + $0xc8] sm:$0xf0]  ;;  %v883_v17 = vld [vmem:[%s1448_s4 + $0x58] sm:$0xf0]  ;;  %v1061_v18 = vld [vmem:[%s1448_s4 + $0xd4] sm:$0xf] }
  0x3e   : > { %v947_v19 = vld [vmem:[%s1448_s4 + $0xd8] sm:$0xf0]  ;;  %v886_v22 = vor.u32 %v1045_v16, %v883_v17  ;;  %v1047_v28 = vld [vmem:[%s1448_s4 + $0x64] sm:$0xf]  ;;  %v891_v29 = vld [vmem:[%s1448_s4 + $0x68] sm:$0xf0] }
  0x3f   : > { %511 = vmatpush.bf16.msra.mxu0 %v1069_v10  ;;  %1183 = vmatpush.bf16.msra.mxu2 %v1069_v10  ;;  %v878_v10 = vor.u32 %v1043_v4, %v875_v5  ;;  %v950_v23 = vor.u32 %v1061_v18, %v947_v19  ;;  %v1063_v30 = vld [vmem:[%s1448_s4 + $0xe4] sm:$0xf]  ;;  %v955_v31 = vld [vmem:[%s1448_s4 + $0xe8] sm:$0xf0]  ;;  %v894_v34 = vor.u32 %v1047_v28, %v891_v29  ;;  %v1049_v40 = vld [vmem:[%s1448_s4 + $0x74] sm:$0xf] }
  0x40   : > { %600 = vmatpush.bf16.msra.mxu1 %v1077_v11  ;;  %1191 = vmatpush.bf16.msra.mxu3 %v1077_v11  ;;  %v942_v11 = vor.u32 %v1059_v6, %v939_v7  ;;  %v958_v35 = vor.u32 %v1063_v30, %v955_v31  ;;  %v899_v41 = vld [vmem:[%s1448_s4 + $0x78] sm:$0xf0]  ;;  %v1065_v42 = vld [vmem:[%s1448_s4 + $0xf4] sm:$0xf] }
  0x41   : > { %v963_v43 = vld [vmem:[%s1448_s4 + $0xf8] sm:$0xf0]  ;;  %v902_v46 = vor.u32 %v1049_v40, %v899_v41 }
  0x42   : > { %v966_v47 = vor.u32 %v1065_v42, %v963_v43 }
  0x43   : > { %512 = vmatpush.bf16.msra.mxu0 %v1068_v12  ;;  %1184 = vmatpush.bf16.msra.mxu2 %v1068_v12  ;;  %v881_v12 = vld [vmem:[%s1448_s4 + $0x50] sm:$0xf] }
  0x44   : > { %601 = vmatpush.bf16.msra.mxu1 %v1076_v13  ;;  %1192 = vmatpush.bf16.msra.mxu3 %v1076_v13  ;;  %v1046_v13 = vld [vmem:[%s1448_s4 + $0x54] sm:$0xf0] }
  0x45   : > { %v882_v20 = vor.u32 %v1046_v13, %v881_v12 }
  0x47   : > { %513 = vmatpush.bf16.msra.mxu0 %v1067_v14  ;;  %1185 = vmatpush.bf16.msra.mxu2 %v1067_v14  ;;  %v945_v14 = vld [vmem:[%s1448_s4 + $0xd0] sm:$0xf] }
  0x48   : > { %602 = vmatpush.bf16.msra.mxu1 %v1075_v15  ;;  %1193 = vmatpush.bf16.msra.mxu3 %v1075_v15  ;;  %v1062_v15 = vld [vmem:[%s1448_s4 + $0xd4] sm:$0xf0] }
  0x49   : > { %v946_v21 = vor.u32 %v1062_v15, %v945_v14 }
  0x4a   : > { %514 = vmatmul.bf16.vlgmr.msra.gmra.mxu0 %v842_v24  ;;  %554 = vmatmul.bf16.vlgmr.msra.gmra.mxu2 %v906_v25  ;;  %v889_v24 = vld [vmem:[%s1448_s4 + $0x60] sm:$0xf]  ;;  %v1048_v25 = vld [vmem:[%s1448_s4 + $0x64] sm:$0xf0] }
  0x4b   : > { %603 = vmatmul.bf16.vlgmr.msra.gmra.mxu1 %v846_v26  ;;  %643 = vmatmul.bf16.vlgmr.msra.gmra.mxu3 %v910_v27  ;;  %v953_v26 = vld [vmem:[%s1448_s4 + $0xe0] sm:$0xf]  ;;  %v1064_v27 = vld [vmem:[%s1448_s4 + $0xe4] sm:$0xf0]  ;;  %v890_v32 = vor.u32 %v1048_v25, %v889_v24 }
  0x4c   : > { %v954_v33 = vor.u32 %v1064_v27, %v953_v26 }
  0x5a   : > { %519 = vmatmul.bf16.gmra.mxu0 %v850_v36  ;;  %559 = vmatmul.bf16.gmra.mxu2 %v914_v37  ;;  %v897_v36 = vld [vmem:[%s1448_s4 + $0x70] sm:$0xf]  ;;  %v1050_v37 = vld [vmem:[%s1448_s4 + $0x74] sm:$0xf0] }
  0x5b   : > { %608 = vmatmul.bf16.gmra.mxu1 %v854_v38  ;;  %648 = vmatmul.bf16.gmra.mxu3 %v918_v39  ;;  %v961_v38 = vld [vmem:[%s1448_s4 + $0xf0] sm:$0xf]  ;;  %v1066_v39 = vld [vmem:[%s1448_s4 + $0xf4] sm:$0xf0]  ;;  %v898_v44 = vor.u32 %v1050_v37, %v897_v36 }
  0x5c   : > { %v962_v45 = vor.u32 %v1066_v39, %v961_v38 }
  0x6a   : > { %524 = vmatmul.bf16.gmra.mxu0 %v858_v48  ;;  %564 = vmatmul.bf16.gmra.mxu2 %v922_v49 }
  0x6b   : > { %613 = vmatmul.bf16.gmra.mxu1 %v862_v50  ;;  %653 = vmatmul.bf16.gmra.mxu3 %v926_v51 }
  0x7a   : > { %529 = vmatmul.bf16.gmra.mxu0 %v866_v60  ;;  %569 = vmatmul.bf16.gmra.mxu2 %v930_v61 }
  0x7b   : > { %618 = vmatmul.bf16.gmra.mxu1 %v870_v62  ;;  %658 = vmatmul.bf16.gmra.mxu3 %v934_v63 }
  0x8a   : > { %534 = vmatmul.bf16.gmra.mxu0 %v874_v8  ;;  %574 = vmatmul.bf16.gmra.mxu2 %v938_v9 }
  0x8b   : > { %623 = vmatmul.bf16.gmra.mxu1 %v878_v10  ;;  %663 = vmatmul.bf16.gmra.mxu3 %v942_v11 }
  0x9a   : > { %539 = vmatmul.bf16.gmra.mxu0 %v882_v20  ;;  %579 = vmatmul.bf16.gmra.mxu2 %v946_v21 }
  0x9b   : > { %628 = vmatmul.bf16.gmra.mxu1 %v886_v22  ;;  %668 = vmatmul.bf16.gmra.mxu3 %v950_v23 }
  0xaa   : > { %544 = vmatmul.bf16.gmra.mxu0 %v890_v32  ;;  %584 = vmatmul.bf16.gmra.mxu2 %v954_v33 }
  0xab   : > { %633 = vmatmul.bf16.gmra.mxu1 %v894_v34  ;;  %673 = vmatmul.bf16.gmra.mxu3 %v958_v35 }
  0xba   : > { %549 = vmatmul.bf16.gmra.mxu0 %v898_v44  ;;  %589 = vmatmul.bf16.gmra.mxu2 %v962_v45 }
  0xbb   : > { %638 = vmatmul.bf16.gmra.mxu1 %v902_v46  ;;  %678 = vmatmul.bf16.gmra.mxu3 %v966_v47 }
  0xc7   : > { %v515_v48 = vpop.f32.mrf.mxu0 }
  0xc8   : > { %v604_v49 = vpop.f32.mrf.mxu1 }
  0xc9   : > { %v605_v54 = vadd.f32 %v604_v49, %v515_v48 }
  0xcd   : > { %v555_v50 = vpop.f32.mrf.mxu2 }
  0xce   : > { %v644_v51 = vpop.f32.mrf.mxu3 }
  0xcf   : > { %v517_v52 = vpop.f32.mrf.mxu0  ;;  %v645_v59 = vadd.f32 %v644_v51, %v555_v50 }
  0xd0   : > { %v606_v53 = vpop.f32.mrf.mxu1 }
  0xd1   : > { %v607_v55 = vadd.f32 %v606_v53, %v517_v52 }
  0xd3   : > { %v1086_v56 = vpack.c.bf16 %v607_v55, %v605_v54 }
  0xd5   : > { %1087 = vst [vmem:[%s1527_s6] sm:$0xff] %v1086_v56   ;;  %v557_v57 = vpop.f32.mrf.mxu2 }
  0xd6   : > { %v646_v58 = vpop.f32.mrf.mxu3 }
  0xd7   : > { %v647_v60 = vadd.f32 %v646_v58, %v557_v57  ;;  %v520_v61 = vpop.f32.mrf.mxu0 }
  0xd8   : > { %v609_v62 = vpop.f32.mrf.mxu1 }
  0xd9   : > { %v1126_v63 = vpack.c.bf16 %v647_v60, %v645_v59  ;;  %v610_v4 = vadd.f32 %v609_v62, %v520_v61 }
  0xdb   : > { %1170 = vst [vmem:[%s1527_s6 + $0x40] sm:$0xff] %v1126_v63  }
  0xdd   : > { %v560_v0 = vpop.f32.mrf.mxu2 }
  0xde   : > { %v649_v1 = vpop.f32.mrf.mxu3 }
  0xdf   : > { %v522_v2 = vpop.f32.mrf.mxu0  ;;  %v650_v9 = vadd.f32 %v649_v1, %v560_v0 }
  0xe0   : > { %v611_v3 = vpop.f32.mrf.mxu1 }
  0xe1   : > { %v612_v5 = vadd.f32 %v611_v3, %v522_v2 }
  0xe3   : > { %v1091_v6 = vpack.c.bf16 %v612_v5, %v610_v4 }
  0xe5   : > { %1163 = vst [vmem:[%s1527_s6 + $0x8] sm:$0xff] %v1091_v6   ;;  %v562_v7 = vpop.f32.mrf.mxu2 }
  0xe6   : > { %v651_v8 = vpop.f32.mrf.mxu3 }
  0xe7   : > { %v652_v10 = vadd.f32 %v651_v8, %v562_v7  ;;  %v525_v11 = vpop.f32.mrf.mxu0 }
  0xe8   : > { %v614_v12 = vpop.f32.mrf.mxu1 }
  0xe9   : > { %v1131_v13 = vpack.c.bf16 %v652_v10, %v650_v9  ;;  %v615_v18 = vadd.f32 %v614_v12, %v525_v11 }
  0xeb   : > { %1171 = vst [vmem:[%s1527_s6 + $0x48] sm:$0xff] %v1131_v13  }
  0xed   : > { %v565_v14 = vpop.f32.mrf.mxu2 }
  0xee   : > { %v654_v15 = vpop.f32.mrf.mxu3 }
  0xef   : > { %v527_v16 = vpop.f32.mrf.mxu0  ;;  %v655_v23 = vadd.f32 %v654_v15, %v565_v14 }
  0xf0   : > { %v616_v17 = vpop.f32.mrf.mxu1 }
  0xf1   : > { %v617_v19 = vadd.f32 %v616_v17, %v527_v16 }
  0xf3   : > { %v1096_v20 = vpack.c.bf16 %v617_v19, %v615_v18 }
  0xf5   : > { %1164 = vst [vmem:[%s1527_s6 + $0x10] sm:$0xff] %v1096_v20   ;;  %v567_v21 = vpop.f32.mrf.mxu2 }
  0xf6   : > { %v656_v22 = vpop.f32.mrf.mxu3 }
  0xf7   : > { %v657_v24 = vadd.f32 %v656_v22, %v567_v21  ;;  %v530_v25 = vpop.f32.mrf.mxu0 }
  0xf8   : > { %v619_v26 = vpop.f32.mrf.mxu1 }
  0xf9   : > { %v1136_v27 = vpack.c.bf16 %v657_v24, %v655_v23  ;;  %v620_v32 = vadd.f32 %v619_v26, %v530_v25 }
  0xfb   : > { %1172 = vst [vmem:[%s1527_s6 + $0x50] sm:$0xff] %v1136_v27  }
  0xfd   : > { %v570_v28 = vpop.f32.mrf.mxu2 }
  0xfe   : > { %v659_v29 = vpop.f32.mrf.mxu3 }
  0xff   : > { %v532_v30 = vpop.f32.mrf.mxu0  ;;  %v660_v37 = vadd.f32 %v659_v29, %v570_v28 }
 0x100   : > { %v621_v31 = vpop.f32.mrf.mxu1 }
 0x101   : > { %v622_v33 = vadd.f32 %v621_v31, %v532_v30 }
 0x103   : > { %v1101_v34 = vpack.c.bf16 %v622_v33, %v620_v32 }
 0x105   : > { %1165 = vst [vmem:[%s1527_s6 + $0x18] sm:$0xff] %v1101_v34   ;;  %v572_v35 = vpop.f32.mrf.mxu2 }
 0x106   : > { %v661_v36 = vpop.f32.mrf.mxu3 }
 0x107   : > { %v662_v38 = vadd.f32 %v661_v36, %v572_v35  ;;  %v535_v39 = vpop.f32.mrf.mxu0 }
 0x108   : > { %v624_v40 = vpop.f32.mrf.mxu1 }
 0x109   : > { %v1141_v41 = vpack.c.bf16 %v662_v38, %v660_v37  ;;  %v625_v46 = vadd.f32 %v624_v40, %v535_v39 }
 0x10b   : > { %1173 = vst [vmem:[%s1527_s6 + $0x58] sm:$0xff] %v1141_v41  }
 0x10d   : > { %v575_v42 = vpop.f32.mrf.mxu2 }
 0x10e   : > { %v664_v43 = vpop.f32.mrf.mxu3 }
 0x10f   : > { %v537_v44 = vpop.f32.mrf.mxu0  ;;  %v665_v51 = vadd.f32 %v664_v43, %v575_v42 }
 0x110   : > { %v626_v45 = vpop.f32.mrf.mxu1 }
 0x111   : > { %v627_v47 = vadd.f32 %v626_v45, %v537_v44 }
 0x113   : > { %v1106_v48 = vpack.c.bf16 %v627_v47, %v625_v46 }
 0x115   : > { %1166 = vst [vmem:[%s1527_s6 + $0x20] sm:$0xff] %v1106_v48   ;;  %v577_v49 = vpop.f32.mrf.mxu2 }
 0x116   : > { %v666_v50 = vpop.f32.mrf.mxu3 }
 0x117   : > { %v667_v52 = vadd.f32 %v666_v50, %v577_v49  ;;  %v540_v53 = vpop.f32.mrf.mxu0 }
 0x118   : > { %v629_v54 = vpop.f32.mrf.mxu1 }
 0x119   : > { %v1146_v55 = vpack.c.bf16 %v667_v52, %v665_v51  ;;  %v630_v60 = vadd.f32 %v629_v54, %v540_v53 }
 0x11b   : > { %1174 = vst [vmem:[%s1527_s6 + $0x60] sm:$0xff] %v1146_v55  }
 0x11d   : > { %v580_v56 = vpop.f32.mrf.mxu2 }
 0x11e   : > { %v669_v57 = vpop.f32.mrf.mxu3 }
 0x11f   : > { %v542_v58 = vpop.f32.mrf.mxu0  ;;  %v670_v1 = vadd.f32 %v669_v57, %v580_v56 }
 0x120   : > { %v631_v59 = vpop.f32.mrf.mxu1 }
 0x121   : > { %v632_v61 = vadd.f32 %v631_v59, %v542_v58 }
 0x123   : > { %v1111_v62 = vpack.c.bf16 %v632_v61, %v630_v60 }
 0x125   : > { %1167 = vst [vmem:[%s1527_s6 + $0x28] sm:$0xff] %v1111_v62   ;;  %v582_v63 = vpop.f32.mrf.mxu2 }
 0x126   : > { %v671_v0 = vpop.f32.mrf.mxu3 }
 0x127   : > { %v672_v2 = vadd.f32 %v671_v0, %v582_v63  ;;  %v545_v3 = vpop.f32.mrf.mxu0 }
 0x128   : > { %v634_v4 = vpop.f32.mrf.mxu1 }
 0x129   : > { %v1151_v5 = vpack.c.bf16 %v672_v2, %v670_v1  ;;  %v635_v10 = vadd.f32 %v634_v4, %v545_v3 }
 0x12b   : > { %1175 = vst [vmem:[%s1527_s6 + $0x68] sm:$0xff] %v1151_v5  }
 0x12d   : > { %v585_v6 = vpop.f32.mrf.mxu2 }
 0x12e   : > { %v674_v7 = vpop.f32.mrf.mxu3 }
 0x12f   : > { %v547_v8 = vpop.f32.mrf.mxu0  ;;  %v675_v15 = vadd.f32 %v674_v7, %v585_v6 }
 0x130   : > { %v636_v9 = vpop.f32.mrf.mxu1 }
 0x131   : > { %v637_v11 = vadd.f32 %v636_v9, %v547_v8 }
 0x133   : > { %v1116_v12 = vpack.c.bf16 %v637_v11, %v635_v10 }
 0x135   : > { %1168 = vst [vmem:[%s1527_s6 + $0x30] sm:$0xff] %v1116_v12   ;;  %v587_v13 = vpop.f32.mrf.mxu2 }
 0x136   : > { %v676_v14 = vpop.f32.mrf.mxu3 }
 0x137   : > { %v677_v16 = vadd.f32 %v676_v14, %v587_v13  ;;  %v550_v17 = vpop.f32.mrf.mxu0 }
 0x138   : > { %v639_v18 = vpop.f32.mrf.mxu1 }
 0x139   : > { %v1156_v19 = vpack.c.bf16 %v677_v16, %v675_v15  ;;  %v640_v24 = vadd.f32 %v639_v18, %v550_v17 }
 0x13b   : > { %1176 = vst [vmem:[%s1527_s6 + $0x70] sm:$0xff] %v1156_v19  }
 0x13d   : > { %v590_v20 = vpop.f32.mrf.mxu2 }
 0x13e   : > { %v679_v21 = vpop.f32.mrf.mxu3 }
 0x13f   : > { %v552_v22 = vpop.f32.mrf.mxu0  ;;  %v680_v29 = vadd.f32 %v679_v21, %v590_v20 }
 0x140   : > { %v641_v23 = vpop.f32.mrf.mxu1 }
 0x141   : > { %v642_v25 = vadd.f32 %v641_v23, %v552_v22 }
 0x143   : > { %v1121_v26 = vpack.c.bf16 %v642_v25, %v640_v24 }
 0x145   : > { %1169 = vst [vmem:[%s1527_s6 + $0x38] sm:$0xff] %v1121_v26   ;;  %v592_v27 = vpop.f32.mrf.mxu2 }
 0x146   : > { %v681_v28 = vpop.f32.mrf.mxu3 }
 0x147   : > { %v682_v30 = vadd.f32 %v681_v28, %v592_v27 }
 0x149   : > { %v1161_v31 = vpack.c.bf16 %v682_v30, %v680_v29 }
 0x14b   : > { %1177 = vst [vmem:[%s1527_s6 + $0x78] sm:$0xff] %v1161_v31  }
 0x14c PF: > { %p13_p4 = scmp.ge.s32.totalorder %s1414_s22, 4   ;;  %s1565_s9 = smov %s1338_s10 }
 0x14d   : > { %s1566_s10 = smov %s1342_s11  ;;  %s1567_s11 = smov %s1424_s27 }
 0x14e   : > { %s1568_s12 = smov %s1414_s22  ;;  %15 = sbr.rel (!%p13_p4) target bundleno = 4 (0x4), region = 72 }
 0x153   :  { %770 = vsyncpa [#allocation3], 1 }
 0x154   :  { %772 = vsyncpa [#allocation3 + $0x1], 1 }
 0x155   :  { %773 = vsyncpa [#allocation5], 1 }

// kernel: forward.4
= control target key start
LH: loop header
LB: loop body
LE: loop exit
PB: predicated region body
PF: predicated region fallthrough
CT: control target
= control target key end

     0   :  { %9 = vsyncpa [#allocation3], 0  ;;  %s3037_s0 = inlined_call_operand.hbm [shape: bf16[512,512], index: 0, kind: input, shape index: {}]   ;;  %s3038_s1 = inlined_call_operand.vmem [shape: bf16[512,128], index: 1, kind: input, shape index: {}]   ;;  %s3039_s2 = inlined_call_operand.vmem [shape: f32[1,128], index: 2, kind: input, shape index: {}]   ;;  %s3040_s3 = inlined_call_operand.vmem [shape: bf16[128,128], index: 3, kind: input, shape index: {}]   ;;  %s3041_s4 = inlined_call_operand.vmem [shape: bf16[512,128], index: 4, kind: output, shape index: {}]  }
   0x1   :  { %11 = vsyncpa [#allocation3 + $0x1], 0  ;;  %s2570_s15 = smov 0   ;;  %s2572_s16 = smov 0  }
   0x2   :  { %s2574_s17 = smov 0   ;;  %s2576_s18 = smov 0  }
   0x3 LB: > { %s1683_s19 = sadd.s32 4294967295, %s2541_s18   ;;  %s2590_s20 = sadd.s32 1, %s2541_s18   ;;  %s2541_s18 = sphi %s2576_s18, %s3048_s18   ;;  %s2537_s17 = sphi %s2574_s17, %s3047_s17   ;;  %s2533_s16 = sphi %s2572_s16, %s3046_s16   ;;  %s2529_s15 = sphi %s2570_s15, %s3045_s15  }
   0x4   : > { %s21_s21 = ssub.s32 %s2541_s18, %s2590_s20  ;;  %s24_s22 = sadd.s32 1, %s2537_s17 }
   0x5   : > { %p22_p0 = scmp.eq.s32.totalorder %s21_s21, 0  ;;  %p31_p1 = scmp.ne.s32.totalorder %s2537_s17, %s2533_s16 }
   0x6   : > { %p32_p2 = scmp.eq.s32.totalorder %s2541_s18, 0  ;;  %p37_p3 = scmp.ne.s32.totalorder %s2533_s16, %s2529_s15 }
   0x7   : > { %s2600_s23 = scalar_select %p22_p0, %s2537_s17, %s24_s22  }
   0x8   : > { %p2602_p4 = por %p32_p2, %p31_p1  ;;  %p38_p5 = scmp.eq.s32.totalorder %s1683_s19, 0 }
   0x9   : > { %p2376_p6 = scmp.lt.s32.totalorder %s2541_s18, 2  ;;  %s159_s26 = sand.u32 1, %s2537_s17  }
   0xa   : > { %p2609_p7 = por %p38_p5, %p37_p3  ;;  %s1687_s27 = sshll.u32 %s159_s26, 9 }
   0xb   : > { %s2146_s28 = sshll.u32 %s2541_s18, 9  ;;  %s163_s6 = scalar_lea.vmem [#allocation2], %s1687_s27 }
   0xc   : > { %s169_s5 = scalar_lea.hbm %s3037_s0, %s2146_s28  ;;  %s172_s7 = sshll.u32 %s163_s6, 4  ;;  %s173_s7 = int_to_ptr.vmem [resolvable:$true] %s172_s7 }
   0xd   : > { %s170_s8 = sshll.u32 %s169_s5, 4  ;;  %p2620_p8 = pnand %p2376_p6, %p2602_p4  ;;  %s171_s8 = int_to_ptr.hbm [resolvable:$true] %s170_s8 }
   0xe   : > { %p1691_p9 = scmp.ge.s32.totalorder %s2541_s18, 1  ;;  %s160_s10 = scalar_lea.sflag [#allocation3], %s159_s26 }
   0xf   : > { %s2477_s11 = sshra.s32 %s171_s8, 4  ;;  %p2481_p11 = pneg %p2620_p8  ;;  %s2478_s11 = int_to_ptr.hbm [resolvable:$true] %s2477_s11 }
  0x10   : > { %s2479_s12 = scalar_lea.hbm %s2478_s11, 512  ;;  %s2484_s15 = scalar_lea.hbm %s3037_s0, 1024 }
  0x11   : > { %p2480_p10 = scmp.ne.s32.totalorder %s2478_s11, %s2479_s12  ;;  %p2485_p0 = scmp.lt.s32.totalorder %s2478_s11, %s3037_s0 }
  0x12   : > { %p2486_p1 = scmp.lt.s32.totalorder %s2484_s15, %s2479_s12 }
  0x13   : > { %p2482_p12 = pnand %p2481_p11, %p2480_p10 }
  0x14   : > { %p2487_p2 = por %p2486_p1, %p2485_p0 }
  0x15   : > { %p2483_p13 = pneg %p2482_p12 }
  0x17   : > { %p2488_p3 = pnand %p2487_p2, %p2483_p13 }
  0x19   : > { %2491 = shalt.err (!%p2488_p3)
}
  0x1a   : > { %s2543_s24 = smov 256   ;;  %s2544_s26 = smov 16  }
  0x1b   : > { %2375 = dma.hbm_to_vmem [thread:$0]  (!%p2620_p8), %s171_s8, 8192, %s173_s7, %s160_s10, %s2543_s24, %s2543_s24, %s2544_s26  }
  0x1c   : > { %p180_p4 = scmp.lt.s32.totalorder %s2541_s18, 3 }
  0x1e   : > { %p181_p5 = pnand %p1691_p9, %p180_p4 }
  0x1f   : > { %s186_s27 = sand.u32 (!%p181_p5), 1, %s2533_s16  }
  0x20   : > { %184 = sbr.rel (%p181_p5) target bundleno = 670 (0x29e), region = 36  ;;  %s1692_s28 = sshll.u32 (!%p181_p5), %s186_s27, 9 }
  0x21   : > { %s187_s29 = scalar_lea.sflag (!%p181_p5), [#allocation3], %s186_s27  ;;  %s2639_s30 = scalar_lea.vmem (!%p181_p5), [#allocation2], %s1692_s28 }
  0x25   : > { %2524 = dma.done.wait (%p2609_p7), %s187_s29, 8192  }
  0x26   : > { %2526 = vsyncadd (%p2609_p7), %s187_s29, 4294959104  ;;  %v2218_v0 = vld [vmem:[%s3038_s1 + $0x38] sm:$0xff]  ;;  %v2217_v1 = vld [vmem:[%s3038_s1 + $0x30] sm:$0xff] }
  0x27   : > { %2346 = vmatpush.bf16.msra.mxu1 %v2218_v0  ;;  %2347 = vmatpush.bf16.msra.mxu2 %v2218_v0  ;;  %v2216_v2 = vld [vmem:[%s3038_s1 + $0x28] sm:$0xff]  ;;  %v2215_v3 = vld [vmem:[%s3038_s1 + $0x20] sm:$0xff]  ;;  %v2214_v4 = vld [vmem:[%s3038_s1 + $0x18] sm:$0xff] }
  0x28   : > { %2348 = vmatpush.bf16.msra.mxu3 %v2218_v0  ;;  %867 = vmatpush.bf16.msra.mxu0 %v2218_v0  ;;  %v2213_v5 = vld [vmem:[%s3038_s1 + $0x10] sm:$0xff]  ;;  %v2212_v6 = vld [vmem:[%s3038_s1 + $0x8] sm:$0xff]  ;;  %v2211_v7 = vld [vmem:[%s3038_s1] sm:$0xff] }
  0x29   : > { %v1761_v8 = vld [vmem:[%s2639_s30 + $0x80] sm:$0xf]  ;;  %v2165_v9 = vld [vmem:[%s2639_s30 + $0x8c] sm:$0xf0]  ;;  %v2234_v14 = vld [vmem:[%s3038_s1 + $0xb8] sm:$0xff] }
  0x2a   : > { %v1825_v10 = vld [vmem:[%s2639_s30 + $0x100] sm:$0xf]  ;;  %v2181_v11 = vld [vmem:[%s2639_s30 + $0x10c] sm:$0xf0]  ;;  %v2242_v15 = vld [vmem:[%s3038_s1 + $0xf8] sm:$0xff]  ;;  %v1762_v17 = vor.u32 %v2165_v9, %v1761_v8 }
  0x2b   : > { %2349 = vmatpush.bf16.msra.mxu1 %v2217_v1  ;;  %2350 = vmatpush.bf16.msra.mxu2 %v2217_v1  ;;  %v1889_v12 = vld [vmem:[%s2639_s30 + $0x180] sm:$0xf]  ;;  %v2197_v13 = vld [vmem:[%s2639_s30 + $0x18c] sm:$0xf0]  ;;  %v2226_v16 = vld [vmem:[%s3038_s1 + $0x78] sm:$0xff]  ;;  %v1826_v18 = vor.u32 %v2181_v11, %v1825_v10 }
  0x2c   : > { %2351 = vmatpush.bf16.msra.mxu3 %v2217_v1  ;;  %868 = vmatpush.bf16.msra.mxu0 %v2217_v1  ;;  %v1890_v19 = vor.u32 %v2197_v13, %v1889_v12  ;;  %v2233_v20 = vld [vmem:[%s3038_s1 + $0xb0] sm:$0xff]  ;;  %v2232_v23 = vld [vmem:[%s3038_s1 + $0xa8] sm:$0xff]  ;;  %v2231_v26 = vld [vmem:[%s3038_s1 + $0xa0] sm:$0xff] }
  0x2d   : > { %v2241_v21 = vld [vmem:[%s3038_s1 + $0xf0] sm:$0xff]  ;;  %v2240_v24 = vld [vmem:[%s3038_s1 + $0xe8] sm:$0xff]  ;;  %v2239_v27 = vld [vmem:[%s3038_s1 + $0xe0] sm:$0xff] }
  0x2e   : > { %v2225_v22 = vld [vmem:[%s3038_s1 + $0x70] sm:$0xff]  ;;  %v2224_v25 = vld [vmem:[%s3038_s1 + $0x68] sm:$0xff]  ;;  %v2223_v28 = vld [vmem:[%s3038_s1 + $0x60] sm:$0xff] }
  0x2f   : > { %2352 = vmatpush.bf16.msra.mxu1 %v2216_v2  ;;  %2353 = vmatpush.bf16.msra.mxu2 %v2216_v2  ;;  %v1777_v29 = vld [vmem:[%s2639_s30 + $0xa0] sm:$0xf]  ;;  %v2169_v30 = vld [vmem:[%s2639_s30 + $0xac] sm:$0xf0]  ;;  %v2230_v35 = vld [vmem:[%s3038_s1 + $0x98] sm:$0xff] }
  0x30   : > { %2354 = vmatpush.bf16.msra.mxu3 %v2216_v2  ;;  %869 = vmatpush.bf16.msra.mxu0 %v2216_v2  ;;  %v1841_v31 = vld [vmem:[%s2639_s30 + $0x120] sm:$0xf]  ;;  %v2185_v32 = vld [vmem:[%s2639_s30 + $0x12c] sm:$0xf0]  ;;  %v2238_v36 = vld [vmem:[%s3038_s1 + $0xd8] sm:$0xff]  ;;  %v1778_v38 = vor.u32 %v2169_v30, %v1777_v29 }
  0x31   : > { %v1905_v33 = vld [vmem:[%s2639_s30 + $0x1a0] sm:$0xf]  ;;  %v2201_v34 = vld [vmem:[%s2639_s30 + $0x1ac] sm:$0xf0]  ;;  %v2222_v37 = vld [vmem:[%s3038_s1 + $0x58] sm:$0xff]  ;;  %v1842_v39 = vor.u32 %v2185_v32, %v1841_v31 }
  0x32   : > { %v1906_v40 = vor.u32 %v2201_v34, %v1905_v33  ;;  %v2229_v41 = vld [vmem:[%s3038_s1 + $0x90] sm:$0xff]  ;;  %v2228_v44 = vld [vmem:[%s3038_s1 + $0x88] sm:$0xff]  ;;  %v1697_v45 = vld [vmem:[%s2639_s30] sm:$0xf] }
  0x33   : > { %2355 = vmatpush.bf16.msra.mxu1 %v2215_v3  ;;  %2356 = vmatpush.bf16.msra.mxu2 %v2215_v3  ;;  %v2237_v42 = vld [vmem:[%s3038_s1 + $0xd0] sm:$0xff]  ;;  %v2236_v47 = vld [vmem:[%s3038_s1 + $0xc8] sm:$0xff]  ;;  %v2227_v50 = vld [vmem:[%s3038_s1 + $0x80] sm:$0xff] }
  0x34   : > { %2357 = vmatpush.bf16.msra.mxu3 %v2215_v3  ;;  %870 = vmatpush.bf16.msra.mxu0 %v2215_v3  ;;  %v2221_v43 = vld [vmem:[%s3038_s1 + $0x50] sm:$0xff]  ;;  %v2220_v48 = vld [vmem:[%s3038_s1 + $0x48] sm:$0xff]  ;;  %v2235_v51 = vld [vmem:[%s3038_s1 + $0xc0] sm:$0xff] }
  0x35   : > { %v2149_v46 = vld [vmem:[%s2639_s30 + $0xc] sm:$0xf0]  ;;  %v2219_v52 = vld [vmem:[%s3038_s1 + $0x40] sm:$0xff]  ;;  %v2152_v29 = vld [vmem:[%s2639_s30 + $0x2c] sm:$0xf] }
  0x36   : > { %v1698_v49 = vor.u32 %v2149_v46, %v1697_v45  ;;  %v1793_v53 = vld [vmem:[%s2639_s30 + $0xc0] sm:$0xf]  ;;  %v2173_v54 = vld [vmem:[%s2639_s30 + $0xcc] sm:$0xf0]  ;;  %v2147_v13 = vld [vmem:[%s2639_s30 + $0x4] sm:$0xf] }
  0x37   : > { %2358 = vmatpush.bf16.msra.mxu1 %v2214_v4  ;;  %2359 = vmatpush.bf16.msra.mxu2 %v2214_v4  ;;  %v1857_v55 = vld [vmem:[%s2639_s30 + $0x140] sm:$0xf]  ;;  %v2189_v56 = vld [vmem:[%s2639_s30 + $0x14c] sm:$0xf0]  ;;  %v1794_v59 = vor.u32 %v2173_v54, %v1793_v53  ;;  %v1723_v30 = vld [vmem:[%s2639_s30 + $0x38] sm:$0xf0] }
  0x38   : > { %2360 = vmatpush.bf16.msra.mxu3 %v2214_v4  ;;  %871 = vmatpush.bf16.msra.mxu0 %v2214_v4  ;;  %v1921_v57 = vld [vmem:[%s2639_s30 + $0x1c0] sm:$0xf]  ;;  %v2205_v58 = vld [vmem:[%s2639_s30 + $0x1cc] sm:$0xf0]  ;;  %v1858_v60 = vor.u32 %v2189_v56, %v1857_v55  ;;  %v1726_v33 = vor.u32 %v2152_v29, %v1723_v30  ;;  %v2155_v34 = vld [vmem:[%s2639_s30 + $0x44] sm:$0xf] }
  0x39   : > { %v1922_v61 = vor.u32 %v2205_v58, %v1921_v57  ;;  %v1713_v62 = vld [vmem:[%s2639_s30 + $0x20] sm:$0xf]  ;;  %v2153_v63 = vld [vmem:[%s2639_s30 + $0x2c] sm:$0xf0]  ;;  %v1753_v45 = vld [vmem:[%s2639_s30 + $0x68] sm:$0xf] }
  0x3a   : > { %v1714_v0 = vor.u32 %v2153_v63, %v1713_v62  ;;  %v1809_v1 = vld [vmem:[%s2639_s30 + $0xe0] sm:$0xf]  ;;  %v2177_v2 = vld [vmem:[%s2639_s30 + $0xec] sm:$0xf0]  ;;  %v2162_v46 = vld [vmem:[%s2639_s30 + $0x74] sm:$0xf0] }
  0x3b   : > { %2361 = vmatpush.bf16.msra.mxu1 %v2213_v5  ;;  %2362 = vmatpush.bf16.msra.mxu2 %v2213_v5  ;;  %v1873_v3 = vld [vmem:[%s2639_s30 + $0x160] sm:$0xf]  ;;  %v2193_v4 = vld [vmem:[%s2639_s30 + $0x16c] sm:$0xf0]  ;;  %v1763_v53 = vld [vmem:[%s2639_s30 + $0x90] sm:$0xf0] }
  0x3c   : > { %2363 = vmatpush.bf16.msra.mxu3 %v2213_v5  ;;  %872 = vmatpush.bf16.msra.mxu0 %v2213_v5  ;;  %v1937_v5 = vld [vmem:[%s2639_s30 + $0x1e0] sm:$0xf]  ;;  %v1874_v8 = vor.u32 %v2193_v4, %v1873_v3  ;;  %v2157_v11 = vld [vmem:[%s2639_s30 + $0x4c] sm:$0xf0]  ;;  %v1769_v54 = vld [vmem:[%s2639_s30 + $0x88] sm:$0xf] }
  0x3d   : > { %v1729_v10 = vld [vmem:[%s2639_s30 + $0x40] sm:$0xf]  ;;  %v2166_v55 = vld [vmem:[%s2639_s30 + $0x94] sm:$0xf0]  ;;  %v2164_v56 = vld [vmem:[%s2639_s30 + $0x8c] sm:$0xf] }
  0x3e   : > { %v1730_v12 = vor.u32 %v2157_v11, %v1729_v10  ;;  %v1771_v57 = vld [vmem:[%s2639_s30 + $0x98] sm:$0xf0]  ;;  %v2167_v3 = vld [vmem:[%s2639_s30 + $0xa4] sm:$0xf]  ;;  %v1779_v4 = vld [vmem:[%s2639_s30 + $0xb0] sm:$0xf0] }
  0x3f   : > { %2364 = vmatpush.bf16.msra.mxu1 %v2212_v6  ;;  %2365 = vmatpush.bf16.msra.mxu2 %v2212_v6  ;;  %v2250_v62 = vld [vmem:[%s3040_s3 + $0x38] sm:$0xff]  ;;  %v1782_v11 = vor.u32 %v2167_v3, %v1779_v4 }
  0x40   : > { %2366 = vmatpush.bf16.msra.mxu3 %v2212_v6  ;;  %873 = vmatpush.bf16.msra.mxu0 %v2212_v6  ;;  %v2209_v6 = vld [vmem:[%s2639_s30 + $0x1ec] sm:$0xf0] }
  0x41   : > { %v1938_v9 = vor.u32 %v2209_v6, %v1937_v5  ;;  %v1785_v5 = vld [vmem:[%s2639_s30 + $0xa8] sm:$0xf]  ;;  %v2170_v6 = vld [vmem:[%s2639_s30 + $0xb4] sm:$0xf0] }
  0x43   : > { %2367 = vmatpush.bf16.msra.mxu1 %v2211_v7  ;;  %2368 = vmatpush.bf16.msra.mxu2 %v2211_v7 }
  0x44   : > { %2369 = vmatpush.bf16.msra.mxu3 %v2211_v7  ;;  %874 = vmatpush.bf16.msra.mxu0 %v2211_v7  ;;  %v1810_v7 = vor.u32 %v2177_v2, %v1809_v1  ;;  %v2249_v2 = vld [vmem:[%s3040_s3 + $0x30] sm:$0xff] }
  0x46   : > { %895 = vmatmul.bf16.vlgmr.msra.gmra.mxu1 %v1762_v17  ;;  %915 = vmatmul.bf16.vlgmr.msra.gmra.mxu2 %v1826_v18  ;;  %v2148_v17 = vld [vmem:[%s2639_s30 + $0xc] sm:$0xf]  ;;  %v1707_v18 = vld [vmem:[%s2639_s30 + $0x18] sm:$0xf0] }
  0x47   : > { %1045 = vmatpush.bf16.msrb.mxu2 %v2234_v14  ;;  %956 = vmatpush.bf16.msrb.mxu1 %v2226_v16  ;;  %v1699_v14 = vld [vmem:[%s2639_s30 + $0x10] sm:$0xf0]  ;;  %v2150_v16 = vld [vmem:[%s2639_s30 + $0x14] sm:$0xf0] }
  0x48   : > { %1134 = vmatpush.bf16.msrb.mxu3 %v2242_v15  ;;  %875 = vmatmul.bf16.vlgmr.msra.gmra.mxu0 %v1698_v49  ;;  %v1705_v15 = vld [vmem:[%s2639_s30 + $0x8] sm:$0xf] }
  0x49   : > { %935 = vmatmul.bf16.vlgmr.msra.gmra.mxu3 %v1890_v19  ;;  %v1702_v19 = vor.u32 %v2147_v13, %v1699_v14  ;;  %1463 = vmatpush.bf16.msrb.mxu0 %v2250_v62  ;;  %v1835_v62 = vld [vmem:[%s2639_s30 + $0x118] sm:$0xf0] }
  0x4b   : > { %1046 = vmatpush.bf16.msrb.mxu2 %v2233_v20  ;;  %957 = vmatpush.bf16.msrb.mxu1 %v2225_v22  ;;  %v1706_v20 = vor.u32 %v2150_v16, %v1705_v15  ;;  %v1745_v22 = vld [vmem:[%s2639_s30 + $0x60] sm:$0xf]  ;;  %v2248_v15 = vld [vmem:[%s3040_s3 + $0x28] sm:$0xff] }
  0x4c   : > { %1135 = vmatpush.bf16.msrb.mxu3 %v2241_v21  ;;  %v1710_v21 = vor.u32 %v2148_v17, %v1707_v18 }
  0x4d   : > { %1464 = vmatpush.bf16.msrb.mxu0 %v2249_v2  ;;  %v2243_v2 = vld [vmem:[%s3040_s3] sm:$0xff] }
  0x4f   : > { %1047 = vmatpush.bf16.msrb.mxu2 %v2232_v23  ;;  %958 = vmatpush.bf16.msrb.mxu1 %v2224_v25  ;;  %v2161_v23 = vld [vmem:[%s2639_s30 + $0x6c] sm:$0xf0]  ;;  %v2151_v25 = vld [vmem:[%s2639_s30 + $0x24] sm:$0xf] }
  0x50   : > { %1136 = vmatpush.bf16.msrb.mxu3 %v2240_v24  ;;  %v1746_v24 = vor.u32 %v2161_v23, %v1745_v22  ;;  %v1801_v22 = vld [vmem:[%s2639_s30 + $0xc8] sm:$0xf]  ;;  %v2174_v23 = vld [vmem:[%s2639_s30 + $0xd4] sm:$0xf0] }
  0x51   : > { %1465 = vmatpush.bf16.msrb.mxu0 %v2248_v15  ;;  %v1802_v29 = vor.u32 %v2174_v23, %v1801_v22 }
  0x53   : > { %1048 = vmatpush.bf16.msrb.mxu2 %v2231_v26  ;;  %959 = vmatpush.bf16.msrb.mxu1 %v2223_v28  ;;  %v1715_v26 = vld [vmem:[%s2639_s30 + $0x30] sm:$0xf0]  ;;  %v2154_v28 = vld [vmem:[%s2639_s30 + $0x34] sm:$0xf0] }
  0x54   : > { %1137 = vmatpush.bf16.msrb.mxu3 %v2239_v27  ;;  %v1721_v27 = vld [vmem:[%s2639_s30 + $0x28] sm:$0xf]  ;;  %v1718_v31 = vor.u32 %v2151_v25, %v1715_v26  ;;  %v1803_v25 = vld [vmem:[%s2639_s30 + $0xd8] sm:$0xf0] }
  0x55   : > { %v1722_v32 = vor.u32 %v2154_v28, %v1721_v27 }
  0x56   : > { %900 = vmatmul.bf16.gmra.mxu1 %v1778_v38  ;;  %920 = vmatmul.bf16.gmra.mxu2 %v1842_v39  ;;  %v2156_v38 = vld [vmem:[%s2639_s30 + $0x4c] sm:$0xf]  ;;  %v1739_v39 = vld [vmem:[%s2639_s30 + $0x58] sm:$0xf0] }
  0x57   : > { %1049 = vmatpush.bf16.msrb.mxu2 %v2230_v35  ;;  %960 = vmatpush.bf16.msrb.mxu1 %v2222_v37  ;;  %v1731_v35 = vld [vmem:[%s2639_s30 + $0x50] sm:$0xf0]  ;;  %v2158_v37 = vld [vmem:[%s2639_s30 + $0x54] sm:$0xf0] }
  0x58   : > { %1138 = vmatpush.bf16.msrb.mxu3 %v2238_v36  ;;  %880 = vmatmul.bf16.gmra.mxu0 %v1714_v0  ;;  %v1737_v36 = vld [vmem:[%s2639_s30 + $0x48] sm:$0xf] }
  0x59   : > { %940 = vmatmul.bf16.gmra.mxu3 %v1906_v40  ;;  %v1734_v40 = vor.u32 %v2155_v34, %v1731_v35 }
  0x5b   : > { %1050 = vmatpush.bf16.msrb.mxu2 %v2229_v41  ;;  %961 = vmatpush.bf16.msrb.mxu1 %v2221_v43  ;;  %v1738_v41 = vor.u32 %v2158_v37, %v1737_v36  ;;  %v2159_v43 = vld [vmem:[%s2639_s30 + $0x64] sm:$0xf]  ;;  %v1811_v37 = vld [vmem:[%s2639_s30 + $0xf0] sm:$0xf0] }
  0x5c   : > { %1139 = vmatpush.bf16.msrb.mxu3 %v2237_v42  ;;  %v1742_v42 = vor.u32 %v2156_v38, %v1739_v39  ;;  %v2175_v36 = vld [vmem:[%s2639_s30 + $0xe4] sm:$0xf]  ;;  %v1817_v38 = vld [vmem:[%s2639_s30 + $0xe8] sm:$0xf]  ;;  %v2178_v39 = vld [vmem:[%s2639_s30 + $0xf4] sm:$0xf0] }
  0x5f   : > { %1051 = vmatpush.bf16.msrb.mxu2 %v2228_v44  ;;  %962 = vmatpush.bf16.msrb.mxu1 %v2220_v48  ;;  %v1747_v44 = vld [vmem:[%s2639_s30 + $0x70] sm:$0xf0]  ;;  %v1755_v48 = vld [vmem:[%s2639_s30 + $0x78] sm:$0xf0] }
  0x60   : > { %1140 = vmatpush.bf16.msrb.mxu3 %v2236_v47  ;;  %v2160_v47 = vld [vmem:[%s2639_s30 + $0x6c] sm:$0xf]  ;;  %v1750_v49 = vor.u32 %v2159_v43, %v1747_v44  ;;  %v1814_v44 = vor.u32 %v2175_v36, %v1811_v37  ;;  %v1851_v37 = vld [vmem:[%s2639_s30 + $0x138] sm:$0xf0] }
  0x61   : > { %v2184_v36 = vld [vmem:[%s2639_s30 + $0x12c] sm:$0xf] }
  0x63   : > { %1052 = vmatpush.bf16.msrb.mxu2 %v2227_v50  ;;  %963 = vmatpush.bf16.msrb.mxu1 %v2219_v52  ;;  %v1754_v50 = vor.u32 %v2162_v46, %v1753_v45  ;;  %v2163_v52 = vld [vmem:[%s2639_s30 + $0x84] sm:$0xf]  ;;  %v1818_v45 = vor.u32 %v2178_v39, %v1817_v38 }
  0x64   : > { %1141 = vmatpush.bf16.msrb.mxu3 %v2235_v51  ;;  %v1758_v51 = vor.u32 %v2160_v47, %v1755_v48  ;;  %v1766_v58 = vor.u32 %v2163_v52, %v1763_v53  ;;  %v2244_v53 = vld [vmem:[%s3040_s3 + $0x8] sm:$0xff] }
  0x66   : > { %905 = vmatmul.bf16.gmra.mxu1 %v1794_v59  ;;  %925 = vmatmul.bf16.gmra.mxu2 %v1858_v60  ;;  %v1770_v59 = vor.u32 %v2166_v55, %v1769_v54  ;;  %v2889_v54 = vld [vmem:[%s3039_s2] ss:$0 sm:$0xff] }
  0x68   : > { %885 = vmatmul.bf16.gmra.mxu0 %v1730_v12  ;;  %v1786_v12 = vor.u32 %v2170_v6, %v1785_v5 }
  0x69   : > { %945 = vmatmul.bf16.gmra.mxu3 %v1922_v61  ;;  %v1774_v61 = vor.u32 %v2164_v56, %v1771_v57  ;;  %v2179_v56 = vld [vmem:[%s2639_s30 + $0x104] sm:$0xf]  ;;  %v1827_v57 = vld [vmem:[%s2639_s30 + $0x110] sm:$0xf0] }
  0x6a   : > { %v1830_v6 = vor.u32 %v2179_v56, %v1827_v57 }
  0x76   : > { %910 = vmatmul.bf16.gmra.mxu1 %v1810_v7  ;;  %930 = vmatmul.bf16.gmra.mxu2 %v1874_v8  ;;  %v2168_v7 = vld [vmem:[%s2639_s30 + $0xac] sm:$0xf]  ;;  %v1787_v8 = vld [vmem:[%s2639_s30 + $0xb8] sm:$0xf0] }
  0x77   : > { %v1790_v14 = vor.u32 %v2168_v7, %v1787_v8 }
  0x78   : > { %890 = vmatmul.bf16.gmra.mxu0 %v1746_v24  ;;  %v2172_v24 = vld [vmem:[%s2639_s30 + $0xcc] sm:$0xf] }
  0x79   : > { %950 = vmatmul.bf16.gmra.mxu3 %v1938_v9 }
  0x86   : > { %964 = vmatmul.bf16.vlgmr.msrb.gmra.mxu1 %v1702_v19  ;;  %1053 = vmatmul.bf16.vlgmr.msrb.gmra.mxu2 %v1706_v20  ;;  %v2247_v19 = vld [vmem:[%s3040_s3 + $0x20] sm:$0xff] }
  0x87   : > { %v2171_v20 = vld [vmem:[%s2639_s30 + $0xc4] sm:$0xf]  ;;  %1466 = vmatpush.bf16.msrb.mxu0 %v2247_v19 }
  0x89   : > { %1142 = vmatmul.bf16.vlgmr.msrb.gmra.mxu3 %v1710_v21  ;;  %v1795_v21 = vld [vmem:[%s2639_s30 + $0xd0] sm:$0xf0] }
  0x8a   : > { %v1798_v28 = vor.u32 %v2171_v20, %v1795_v21 }
  0x96   : > { %969 = vmatmul.bf16.gmra.mxu1 %v1718_v31  ;;  %1058 = vmatmul.bf16.gmra.mxu2 %v1722_v32  ;;  %v1806_v31 = vor.u32 %v2172_v24, %v1803_v25  ;;  %v2246_v32 = vld [vmem:[%s3040_s3 + $0x18] sm:$0xff]  ;;  %v2183_v24 = vld [vmem:[%s2639_s30 + $0x124] sm:$0xf]  ;;  %v1843_v25 = vld [vmem:[%s2639_s30 + $0x130] sm:$0xf0] }
  0x97   : > { %1467 = vmatpush.bf16.msrb.mxu0 %v2246_v32 }
  0x99   : > { %1147 = vmatmul.bf16.gmra.mxu3 %v1726_v33 }
  0xa6   : > { %974 = vmatmul.bf16.gmra.mxu1 %v1734_v40  ;;  %1063 = vmatmul.bf16.gmra.mxu2 %v1738_v41  ;;  %v2176_v40 = vld [vmem:[%s2639_s30 + $0xec] sm:$0xf]  ;;  %v1819_v41 = vld [vmem:[%s2639_s30 + $0xf8] sm:$0xf0] }
  0xa7   : > { %v1822_v47 = vor.u32 %v2176_v40, %v1819_v41 }
  0xa9   : > { %1152 = vmatmul.bf16.gmra.mxu3 %v1742_v42 }
  0xb6   : > { %979 = vmatmul.bf16.gmra.mxu1 %v1750_v49  ;;  %1068 = vmatmul.bf16.gmra.mxu2 %v1754_v50  ;;  %v2245_v49 = vld [vmem:[%s3040_s3 + $0x10] sm:$0xff] }
  0xb7   : > { %1468 = vmatpush.bf16.msrb.mxu0 %v2245_v49  ;;  %v1854_v49 = vor.u32 %v2184_v36, %v1851_v37 }
  0xb9   : > { %1157 = vmatmul.bf16.gmra.mxu3 %v1758_v51 }
  0xbb   : > { %1469 = vmatpush.bf16.msrb.mxu0 %v2244_v53 }
  0xbf   : > { %1470 = vmatpush.bf16.msrb.mxu0 %v2243_v2 }
  0xc3   : > { %v2803_v60 = vpop.f32.mrf.mxu1 }
  0xc5   : > { %v876_v48 = vpop.f32.mrf.mxu0 }
  0xc6   : > { %984 = vmatmul.bf16.gmra.mxu1 %v1766_v58  ;;  %1073 = vmatmul.bf16.gmra.mxu2 %v1770_v59  ;;  %v1833_v58 = vld [vmem:[%s2639_s30 + $0x108] sm:$0xf]  ;;  %v2182_v59 = vld [vmem:[%s2639_s30 + $0x114] sm:$0xf0]  ;;  %v877_v4 = vadd.f32 %v2889_v54, %v876_v48 }
  0xc7   : > { %v1834_v7 = vor.u32 %v2182_v59, %v1833_v58 }
  0xc9   : > { %1162 = vmatmul.bf16.gmra.mxu3 %v1774_v61  ;;  %v2808_v63 = vpop.f32.mrf.mxu2  ;;  %v2180_v61 = vld [vmem:[%s2639_s30 + $0x10c] sm:$0xf] }
  0xcb   : > { %v2812_v1 = vpop.f32.mrf.mxu1 }
  0xcc   : > { %v2810_v0 = vpop.f32.mrf.mxu3 }
  0xcd   : > { %v878_v55 = vpop.f32.mrf.mxu0 }
  0xce   : > { %v879_v23 = vadd.f32 %v2889_v54, %v878_v55 }
  0xd1   : > { %v2823_v9 = vpop.f32.mrf.mxu2 }
  0xd3   : > { %v2827_v13 = vpop.f32.mrf.mxu1 }
  0xd4   : > { %v2825_v10 = vpop.f32.mrf.mxu3 }
  0xd6   : > { %989 = vmatmul.bf16.gmra.mxu1 %v1782_v11  ;;  %1078 = vmatmul.bf16.gmra.mxu2 %v1786_v12  ;;  %v1838_v11 = vor.u32 %v2180_v61, %v1835_v62 }
  0xd9   : > { %1167 = vmatmul.bf16.gmra.mxu3 %v1790_v14  ;;  %v2832_v16 = vpop.f32.mrf.mxu2  ;;  %v881_v14 = vpop.f32.mrf.mxu0 }
  0xda   : > { %v882_v39 = vadd.f32 %v2889_v54, %v881_v14  ;;  %v1865_v14 = vld [vmem:[%s2639_s30 + $0x148] sm:$0xf] }
  0xdb   : > { %v2836_v18 = vpop.f32.mrf.mxu1 }
  0xdc   : > { %v2834_v17 = vpop.f32.mrf.mxu3 }
  0xe1   : > { %v2847_v26 = vpop.f32.mrf.mxu2 }
  0xe3   : > { %v2851_v30 = vpop.f32.mrf.mxu1 }
  0xe4   : > { %v2849_v27 = vpop.f32.mrf.mxu3 }
  0xe6   : > { %994 = vmatmul.bf16.gmra.mxu1 %v1798_v28  ;;  %1083 = vmatmul.bf16.gmra.mxu2 %v1802_v29  ;;  %v1849_v28 = vld [vmem:[%s2639_s30 + $0x128] sm:$0xf]  ;;  %v2186_v29 = vld [vmem:[%s2639_s30 + $0x134] sm:$0xf0] }
  0xe9   : > { %1172 = vmatmul.bf16.gmra.mxu3 %v1806_v31  ;;  %v2856_v33 = vpop.f32.mrf.mxu2 }
  0xeb   : > { %v2860_v35 = vpop.f32.mrf.mxu1 }
  0xec   : > { %v2858_v34 = vpop.f32.mrf.mxu3 }
  0xf1   : > { %v2868_v42 = vpop.f32.mrf.mxu2 }
  0xf3   : > { %v2872_v46 = vpop.f32.mrf.mxu1 }
  0xf4   : > { %v2870_v43 = vpop.f32.mrf.mxu3 }
  0xf6   : > { %999 = vmatmul.bf16.gmra.mxu1 %v1814_v44  ;;  %1088 = vmatmul.bf16.gmra.mxu2 %v1818_v45  ;;  %v883_v44 = vpop.f32.mrf.mxu0  ;;  %v1846_v45 = vor.u32 %v2183_v24, %v1843_v25  ;;  %v1867_v24 = vld [vmem:[%s2639_s30 + $0x158] sm:$0xf0] }
  0xf9   : > { %1177 = vmatmul.bf16.gmra.mxu3 %v1822_v47  ;;  %v2877_v50 = vpop.f32.mrf.mxu2  ;;  %v1850_v47 = vor.u32 %v2186_v29, %v1849_v28 }
  0xfb   : > { %v2881_v52 = vpop.f32.mrf.mxu1 }
  0xfc   : > { %v2879_v51 = vpop.f32.mrf.mxu3 }
 0x101   : > { %v2900_v3 = vpop.f32.mrf.mxu2 }
 0x103   : > { %v965_v8 = vpop.f32.mrf.mxu1 }
 0x104   : > { %v2903_v5 = vpop.f32.mrf.mxu3  ;;  %v966_v12 = vadd.f32 %v965_v8, %v877_v4  ;;  %v886_v4 = vpop.f32.mrf.mxu0  ;;  %v884_v8 = vadd.f32 %v2889_v54, %v883_v44 }
 0x105   : > { %v887_v25 = vadd.f32 %v2889_v54, %v886_v4  ;;  %v1875_v4 = vld [vmem:[%s2639_s30 + $0x170] sm:$0xf0] }
 0x106   : > { %1004 = vmatmul.bf16.gmra.mxu1 %v1830_v6  ;;  %1093 = vmatmul.bf16.gmra.mxu2 %v1834_v7 }
 0x109   : > { %1182 = vmatmul.bf16.gmra.mxu3 %v1838_v11  ;;  %v1054_v15 = vpop.f32.mrf.mxu2  ;;  %v2187_v11 = vld [vmem:[%s2639_s30 + $0x144] sm:$0xf] }
 0x10a   : > { %v1055_v19 = vadd.f32 %v1054_v15, %v966_v12  ;;  %v1859_v12 = vld [vmem:[%s2639_s30 + $0x150] sm:$0xf0] }
 0x10b   : > { %v967_v21 = vpop.f32.mrf.mxu1 }
 0x10c   : > { %v1143_v20 = vpop.f32.mrf.mxu3  ;;  %v968_v32 = vadd.f32 %v967_v21, %v879_v23 }
 0x10d   : > { %v1144_v22 = vadd.f32 %v1143_v20, %v1055_v19  ;;  %v2190_v19 = vld [vmem:[%s2639_s30 + $0x154] sm:$0xf0]  ;;  %v2188_v20 = vld [vmem:[%s2639_s30 + $0x14c] sm:$0xf] }
 0x10f   : > { %v1255_v31 = vmul.f32 1.442695, %v1144_v22  ;;  %vm1223_vm0 = vcmp.gt.f32.partialorder %v1144_v22, 0.0 }
 0x111   : > { %v1056_v38 = vpop.f32.mrf.mxu2  ;;  %2412 = vpow2.f32 %v1255_v31 }
 0x112   : > { %v1057_v40 = vadd.f32 %v1056_v38, %v968_v32  ;;  %v1862_v38 = vor.u32 %v2187_v11, %v1859_v12  ;;  %v2192_v11 = vld [vmem:[%s2639_s30 + $0x16c] sm:$0xf] }
 0x113   : > { %v970_v48 = vpop.f32.mrf.mxu1 }
 0x114   : > { %v1145_v41 = vpop.f32.mrf.mxu3  ;;  %v971_v56 = vadd.f32 %v970_v48, %v882_v39  ;;  %v1866_v39 = vor.u32 %v2190_v19, %v1865_v14  ;;  %v888_v48 = vpop.f32.mrf.mxu0  ;;  %v1883_v19 = vld [vmem:[%s2639_s30 + $0x178] sm:$0xf0] }
 0x115   : > { %v1146_v53 = vadd.f32 %v1145_v41, %v1057_v40  ;;  %v1870_v41 = vor.u32 %v2188_v20, %v1867_v24 }
 0x116   : > { %1009 = vmatmul.bf16.gmra.mxu1 %v1846_v45  ;;  %1098 = vmatmul.bf16.gmra.mxu2 %v1850_v47 }
 0x117   : > { %v1257_v55 = vmul.f32 1.442695, %v1146_v53  ;;  %v2413_v58 = vpop.eup %2412  ;;  %vm1224_vm1 = vcmp.gt.f32.partialorder %v1146_v53, 0.0 }
 0x118   : > { %v2079_v6 = vadd.f32 -1.0, %v2413_v58 }
 0x119   : > { %1187 = vmatmul.bf16.gmra.mxu3 %v1854_v49  ;;  %2414 = vpow2.f32 %v1257_v55  ;;  %v1059_v57 = vpop.f32.mrf.mxu2 }
 0x11a   : > { %v1060_v59 = vadd.f32 %v1059_v57, %v971_v56  ;;  %v1351_v29 = vsel %vm1223_vm0, %v1144_v22, %v2079_v6  ;;  %v1881_v6 = vld [vmem:[%s2639_s30 + $0x168] sm:$0xf] }
 0x11b   : > { %v972_v62 = vpop.f32.mrf.mxu1 }
 0x11c   : > { %v1148_v61 = vpop.f32.mrf.mxu3  ;;  %v973_v23 = vadd.f32 %v972_v62, %v884_v8  ;;  %v2191_v62 = vld [vmem:[%s2639_s30 + $0x164] sm:$0xf]  ;;  %v2194_v8 = vld [vmem:[%s2639_s30 + $0x174] sm:$0xf0] }
 0x11d   : > { %v1149_v2 = vadd.f32 %v1148_v61, %v1060_v59  ;;  %v889_v61 = vadd.f32 %v2889_v54, %v888_v48 }
 0x11f   : > { %v2415_v7 = vpop.eup %2414  ;;  %v1259_v21 = vmul.f32 1.442695, %v1149_v2  ;;  %vm1225_vm2 = vcmp.gt.f32.partialorder %v1149_v2, 0.0 }
 0x120   : > { %v2080_v15 = vadd.f32 -1.0, %v2415_v7 }
 0x121   : > { %v1061_v28 = vpop.f32.mrf.mxu2  ;;  %2416 = vpow2.f32 %v1259_v21 }
 0x122   : > { %v1352_v31 = vsel %vm1224_vm1, %v1146_v53, %v2080_v15  ;;  %v1062_v32 = vadd.f32 %v1061_v28, %v973_v23  ;;  %v891_v15 = vpop.f32.mrf.mxu0 }
 0x123   : > { %v1383_v37 = vpack.c.bf16 %v1352_v31, %v1351_v29  ;;  %v975_v40 = vpop.f32.mrf.mxu1  ;;  %v892_v20 = vadd.f32 %v2889_v54, %v891_v15  ;;  %v1878_v31 = vor.u32 %v2191_v62, %v1875_v4  ;;  %v2198_v62 = vld [vmem:[%s2639_s30 + $0x194] sm:$0xf0]  ;;  %v2196_v4 = vld [vmem:[%s2639_s30 + $0x18c] sm:$0xf] }
 0x124   : > { %v1150_v36 = vpop.f32.mrf.mxu3  ;;  %v976_v47 = vadd.f32 %v975_v40, %v887_v25 }
 0x125   : > { %v1151_v44 = vadd.f32 %v1150_v36, %v1062_v32  ;;  %1471 = vmatmul.bf16.vlgmr.msrb.gmra.mxu0 %v1383_v37  ;;  %v1882_v32 = vor.u32 %v2194_v8, %v1881_v6  ;;  %v1886_v37 = vor.u32 %v2192_v11, %v1883_v19  ;;  %v1899_v8 = vld [vmem:[%s2639_s30 + $0x198] sm:$0xf0] }
 0x126   : > { %1014 = vmatmul.bf16.gmra.mxu1 %v1862_v38  ;;  %1103 = vmatmul.bf16.gmra.mxu2 %v1866_v39 }
 0x127   : > { %v1261_v45 = vmul.f32 1.442695, %v1151_v44  ;;  %v2417_v49 = vpop.eup %2416  ;;  %vm1226_vm3 = vcmp.gt.f32.partialorder %v1151_v44, 0.0 }
 0x128   : > { %v2081_v58 = vadd.f32 -1.0, %v2417_v49 }
 0x129   : > { %1192 = vmatmul.bf16.gmra.mxu3 %v1870_v41  ;;  %2418 = vpow2.f32 %v1261_v45  ;;  %v1064_v22 = vpop.f32.mrf.mxu2 }
 0x12a   : > { %v1065_v53 = vadd.f32 %v1064_v22, %v976_v47  ;;  %v1353_v23 = vsel %vm1225_vm2, %v1149_v2, %v2081_v58  ;;  %v893_v47 = vpop.f32.mrf.mxu0  ;;  %v1891_v58 = vld [vmem:[%s2639_s30 + $0x190] sm:$0xf0] }
 0x12b   : > { %v977_v56 = vpop.f32.mrf.mxu1 }
 0x12c   : > { %v1153_v55 = vpop.f32.mrf.mxu3  ;;  %v978_v14 = vadd.f32 %v977_v56, %v889_v61  ;;  %v2195_v56 = vld [vmem:[%s2639_s30 + $0x184] sm:$0xf] }
 0x12d   : > { %v1154_v57 = vadd.f32 %v1153_v55, %v1065_v53  ;;  %v894_v55 = vadd.f32 %v2889_v54, %v893_v47  ;;  %v1913_v47 = vld [vmem:[%s2639_s30 + $0x1a8] sm:$0xf] }
 0x12f   : > { %v2419_v59 = vpop.eup %2418  ;;  %v1263_v12 = vmul.f32 1.442695, %v1154_v57  ;;  %vm1227_vm4 = vcmp.gt.f32.partialorder %v1154_v57, 0.0 }
 0x130   : > { %v2082_v7 = vadd.f32 -1.0, %v2419_v59  ;;  %v1897_v59 = vld [vmem:[%s2639_s30 + $0x188] sm:$0xf] }
 0x131   : > { %v1066_v21 = vpop.f32.mrf.mxu2  ;;  %2420 = vpow2.f32 %v1263_v12 }
 0x132   : > { %v1354_v24 = vsel %vm1226_vm3, %v1151_v44, %v2082_v7  ;;  %v1067_v25 = vadd.f32 %v1066_v21, %v978_v14  ;;  %v1894_v21 = vor.u32 %v2195_v56, %v1891_v58  ;;  %v1915_v58 = vld [vmem:[%s2639_s30 + $0x1b8] sm:$0xf0] }
 0x133   : > { %v1384_v29 = vpack.c.bf16 %v1354_v24, %v1353_v23  ;;  %v980_v36 = vpop.f32.mrf.mxu1  ;;  %v1898_v23 = vor.u32 %v2198_v62, %v1897_v59 }
 0x134   : > { %v1155_v28 = vpop.f32.mrf.mxu3  ;;  %v981_v40 = vadd.f32 %v980_v36, %v892_v20 }
 0x135   : > { %v1156_v38 = vadd.f32 %v1155_v28, %v1067_v25  ;;  %1476 = vmatmul.bf16.gmra.mxu0 %v1384_v29  ;;  %v1902_v25 = vor.u32 %v2196_v4, %v1899_v8  ;;  %v897_v29 = vadd.f32 %v2889_v54, %v2803_v60 }
 0x136   : > { %1019 = vmatmul.bf16.gmra.mxu1 %v1878_v31  ;;  %1108 = vmatmul.bf16.gmra.mxu2 %v1882_v32 }
 0x137   : > { %v1265_v39 = vmul.f32 1.442695, %v1156_v38  ;;  %v2421_v41 = vpop.eup %2420  ;;  %vm1228_vm5 = vcmp.gt.f32.partialorder %v1156_v38, 0.0 }
 0x138   : > { %v2083_v49 = vadd.f32 -1.0, %v2421_v41  ;;  %v899_v41 = vadd.f32 %v2889_v54, %v2812_v1 }
 0x139   : > { %1197 = vmatmul.bf16.gmra.mxu3 %v1886_v37  ;;  %2422 = vpow2.f32 %v1265_v39  ;;  %v1069_v2 = vpop.f32.mrf.mxu2 }
 0x13a   : > { %v1070_v44 = vadd.f32 %v1069_v2, %v981_v40  ;;  %v1355_v12 = vsel %vm1227_vm4, %v1154_v57, %v2083_v49  ;;  %v2202_v49 = vld [vmem:[%s2639_s30 + $0x1b4] sm:$0xf0] }
 0x13b   : > { %v982_v48 = vpop.f32.mrf.mxu1 }
 0x13c   : > { %v1158_v45 = vpop.f32.mrf.mxu3  ;;  %v983_v7 = vadd.f32 %v982_v48, %v894_v55 }
 0x13d   : > { %v1159_v22 = vadd.f32 %v1158_v45, %v1070_v44  ;;  %v2199_v44 = vld [vmem:[%s2639_s30 + $0x1a4] sm:$0xf]  ;;  %v1907_v45 = vld [vmem:[%s2639_s30 + $0x1b0] sm:$0xf0] }
 0x13e   : > { %v1910_v8 = vor.u32 %v2199_v44, %v1907_v45 }
 0x13f   : > { %v2423_v53 = vpop.eup %2422  ;;  %v1267_v6 = vmul.f32 1.442695, %v1159_v22  ;;  %vm1229_vm6 = vcmp.gt.f32.partialorder %v1159_v22, 0.0 }
 0x140   : > { %v2084_v61 = vadd.f32 -1.0, %v2423_v53  ;;  %v2200_v53 = vld [vmem:[%s2639_s30 + $0x1ac] sm:$0xf] }
 0x141   : > { %v1071_v11 = vpop.f32.mrf.mxu2  ;;  %2424 = vpow2.f32 %v1267_v6 }
 0x142   : > { %v1356_v14 = vsel %vm1228_vm5, %v1156_v38, %v2084_v61  ;;  %v1072_v15 = vadd.f32 %v1071_v11, %v983_v7  ;;  %v1914_v11 = vor.u32 %v2202_v49, %v1913_v47 }
 0x143   : > { %v1385_v20 = vpack.c.bf16 %v1356_v14, %v1355_v12  ;;  %v985_v24 = vpop.f32.mrf.mxu1  ;;  %v1918_v12 = vor.u32 %v2200_v53, %v1915_v58 }
 0x144   : > { %v1160_v19 = vpop.f32.mrf.mxu3  ;;  %v986_v57 = vadd.f32 %v985_v24, %v897_v29 }
 0x145   : > { %v1161_v28 = vadd.f32 %v1160_v19, %v1072_v15  ;;  %1481 = vmatmul.bf16.gmra.mxu0 %v1385_v20  ;;  %v902_v15 = vadd.f32 %v2889_v54, %v2827_v13 }
 0x146   : > { %1024 = vmatmul.bf16.gmra.mxu1 %v1894_v21  ;;  %1113 = vmatmul.bf16.gmra.mxu2 %v1898_v23 }
 0x147   : > { %v1269_v31 = vmul.f32 1.442695, %v1161_v28  ;;  %v2425_v36 = vpop.eup %2424  ;;  %vm1230_vm7 = vcmp.gt.f32.partialorder %v1161_v28, 0.0 }
 0x148   : > { %v2085_v2 = vadd.f32 -1.0, %v2425_v36  ;;  %v1929_v36 = vld [vmem:[%s2639_s30 + $0x1c8] sm:$0xf] }
 0x149   : > { %1202 = vmatmul.bf16.gmra.mxu3 %v1902_v25  ;;  %2426 = vpow2.f32 %v1269_v31  ;;  %v1074_v32 = vpop.f32.mrf.mxu2  ;;  %v904_v31 = vadd.f32 %v2889_v54, %v2836_v18 }
 0x14a   : > { %v1075_v37 = vadd.f32 %v1074_v32, %v986_v57  ;;  %v1357_v61 = vsel %vm1229_vm6, %v1159_v22, %v2085_v2  ;;  %v2203_v57 = vld [vmem:[%s2639_s30 + $0x1c4] sm:$0xf]  ;;  %v1923_v32 = vld [vmem:[%s2639_s30 + $0x1d0] sm:$0xf0] }
 0x14b   : > { %v987_v39 = vpop.f32.mrf.mxu1 }
 0x14c   : > { %v1163_v38 = vpop.f32.mrf.mxu3  ;;  %v988_v56 = vadd.f32 %v987_v39, %v899_v41  ;;  %v2204_v39 = vld [vmem:[%s2639_s30 + $0x1cc] sm:$0xf]  ;;  %v1931_v41 = vld [vmem:[%s2639_s30 + $0x1d8] sm:$0xf0] }
 0x14d   : > { %v1164_v40 = vadd.f32 %v1163_v38, %v1075_v37  ;;  %v2206_v38 = vld [vmem:[%s2639_s30 + $0x1d4] sm:$0xf0]  ;;  %v1934_v58 = vor.u32 %v2204_v39, %v1931_v41  ;;  %v912_v41 = vadd.f32 %v2889_v54, %v2872_v46 }
 0x14f   : > { %v2427_v60 = vpop.eup %2426  ;;  %v1271_v55 = vmul.f32 1.442695, %v1164_v40  ;;  %vm1231_vm8 = vcmp.gt.f32.partialorder %v1164_v40, 0.0 }
 0x150   : > { %v2086_v48 = vadd.f32 -1.0, %v2427_v60 }
 0x151   : > { %v1076_v59 = vpop.f32.mrf.mxu2  ;;  %2428 = vpow2.f32 %v1271_v55  ;;  %v1926_v55 = vor.u32 %v2203_v57, %v1923_v32 }
 0x152   : > { %v1358_v62 = vsel %vm1230_vm7, %v1161_v28, %v2086_v48  ;;  %v1077_v4 = vadd.f32 %v1076_v59, %v988_v56  ;;  %v1930_v56 = vor.u32 %v2206_v38, %v1929_v36 }
 0x153   : > { %v1386_v7 = vpack.c.bf16 %v1358_v62, %v1357_v61  ;;  %v990_v1 = vpop.f32.mrf.mxu1  ;;  %v907_v61 = vadd.f32 %v2889_v54, %v2851_v30 }
 0x154   : > { %v1165_v6 = vpop.f32.mrf.mxu3  ;;  %v991_v22 = vadd.f32 %v990_v1, %v902_v15  ;;  %v2207_v15 = vld [vmem:[%s2639_s30 + $0x1e4] sm:$0xf] }
 0x155   : > { %v1166_v14 = vadd.f32 %v1165_v6, %v1077_v4  ;;  %1486 = vmatmul.bf16.gmra.mxu0 %v1386_v7 }
 0x156   : > { %1029 = vmatmul.bf16.gmra.mxu1 %v1910_v8  ;;  %1118 = vmatmul.bf16.gmra.mxu2 %v1914_v11 }
 0x157   : > { %v1273_v19 = vmul.f32 1.442695, %v1166_v14  ;;  %v2429_v21 = vpop.eup %2428  ;;  %vm1232_vm9 = vcmp.gt.f32.partialorder %v1166_v14, 0.0 }
 0x158   : > { %v2087_v29 = vadd.f32 -1.0, %v2429_v21  ;;  %v2210_v21 = vld [vmem:[%s2639_s30 + $0x1f4] sm:$0xf0] }
 0x159   : > { %1207 = vmatmul.bf16.gmra.mxu3 %v1918_v12  ;;  %2430 = vpow2.f32 %v1273_v19  ;;  %v1079_v20 = vpop.f32.mrf.mxu2  ;;  %v1939_v19 = vld [vmem:[%s2639_s30 + $0x1f0] sm:$0xf0] }
 0x15a   : > { %v1080_v23 = vadd.f32 %v1079_v20, %v991_v22  ;;  %v1359_v45 = vsel %vm1231_vm8, %v1164_v40, %v2087_v29  ;;  %v1945_v22 = vld [vmem:[%s2639_s30 + $0x1e8] sm:$0xf]  ;;  %v1947_v29 = vld [vmem:[%s2639_s30 + $0x1f8] sm:$0xf0]  ;;  %v1942_v38 = vor.u32 %v2207_v15, %v1939_v19 }
 0x15b   : > { %v992_v25 = vpop.f32.mrf.mxu1  ;;  %v1946_v39 = vor.u32 %v2210_v21, %v1945_v22 }
 0x15c   : > { %v1168_v24 = vpop.f32.mrf.mxu3  ;;  %v993_v60 = vadd.f32 %v992_v25, %v904_v31 }
 0x15d   : > { %v1169_v28 = vadd.f32 %v1168_v24, %v1080_v23  ;;  %v2208_v23 = vld [vmem:[%s2639_s30 + $0x1ec] sm:$0xf]  ;;  %s1693_s30 = sshll.u32 %s1683_s19, 5 }
 0x15e   : > { %p218_p6 = scmp.lt.s32.totalorder %s1693_s30, 63 }
 0x15f   : > { %v2431_v13 = vpop.eup %2430  ;;  %v1275_v2 = vmul.f32 1.442695, %v1169_v28  ;;  %vm1233_vm10 = vcmp.gt.f32.partialorder %v1169_v28, 0.0 }
 0x160   : > { %v2088_v37 = vadd.f32 -1.0, %v2431_v13  ;;  %s3050_s30 = smov (!%p218_p6, %s1693_s30), 63 }
 0x161   : > { %v1081_v44 = vpop.f32.mrf.mxu2  ;;  %2432 = vpow2.f32 %v1275_v2  ;;  %v1950_v2 = vor.u32 %v2208_v23, %v1947_v29  ;;  %s1694_s18 = sshll.u32 %s3050_s30, 2 }
 0x162   : > { %v1360_v47 = vsel %vm1232_vm9, %v1166_v14, %v2088_v37  ;;  %v1082_v48 = vadd.f32 %v1081_v44, %v993_v60  ;;  %v909_v14 = vadd.f32 %v2889_v54, %v2860_v35  ;;  %s2985_s11 = scalar_lea.vmem %s3041_s4, %s1694_s18 }
 0x163   : > { %v1387_v53 = vpack.c.bf16 %v1360_v47, %v1359_v45  ;;  %v995_v18 = vpop.f32.mrf.mxu1 }
 0x164   : > { %v1170_v49 = vpop.f32.mrf.mxu3  ;;  %v996_v40 = vadd.f32 %v995_v18, %v907_v61 }
 0x165   : > { %v1171_v59 = vadd.f32 %v1170_v49, %v1082_v48  ;;  %1491 = vmatmul.bf16.gmra.mxu0 %v1387_v53 }
 0x166   : > { %1034 = vmatmul.bf16.gmra.mxu1 %v1926_v55  ;;  %1123 = vmatmul.bf16.gmra.mxu2 %v1930_v56 }
 0x167   : > { %v1277_v62 = vmul.f32 1.442695, %v1171_v59  ;;  %v2433_v6 = vpop.eup %2432  ;;  %vm1234_vm11 = vcmp.gt.f32.partialorder %v1171_v59, 0.0 }
 0x168   : > { %v2089_v12 = vadd.f32 -1.0, %v2433_v6 }
 0x169   : > { %1212 = vmatmul.bf16.gmra.mxu3 %v1934_v58  ;;  %2434 = vpow2.f32 %v1277_v62  ;;  %v1084_v4 = vpop.f32.mrf.mxu2  ;;  %v914_v58 = vadd.f32 %v2889_v54, %v2881_v52 }
 0x16a   : > { %v1085_v7 = vadd.f32 %v1084_v4, %v996_v40  ;;  %v1361_v31 = vsel %vm1233_vm10, %v1169_v28, %v2089_v12 }
 0x16b   : > { %v997_v11 = vpop.f32.mrf.mxu1 }
 0x16c   : > { %v1173_v8 = vpop.f32.mrf.mxu3  ;;  %v998_v25 = vadd.f32 %v997_v11, %v909_v14 }
 0x16d   : > { %v1174_v1 = vadd.f32 %v1173_v8, %v1085_v7 }
 0x16f   : > { %v2435_v30 = vpop.eup %2434  ;;  %v1279_v24 = vmul.f32 1.442695, %v1174_v1  ;;  %vm1235_vm12 = vcmp.gt.f32.partialorder %v1174_v1, 0.0 }
 0x170   : > { %v2090_v20 = vadd.f32 -1.0, %v2435_v30  ;;  %v917_v30 = vadd.f32 %v2889_v54, %v2808_v63 }
 0x171   : > { %v1086_v13 = vpop.f32.mrf.mxu2  ;;  %2436 = vpow2.f32 %v1279_v24 }
 0x172   : > { %v1362_v57 = vsel %vm1234_vm11, %v1171_v59, %v2090_v20  ;;  %v1087_v32 = vadd.f32 %v1086_v13, %v998_v25  ;;  %v919_v25 = vadd.f32 %v2889_v54, %v2823_v9 }
 0x173   : > { %v1388_v37 = vpack.c.bf16 %v1362_v57, %v1361_v31  ;;  %v1000_v35 = vpop.f32.mrf.mxu1 }
 0x174   : > { %v1175_v36 = vpop.f32.mrf.mxu3  ;;  %v1001_v28 = vadd.f32 %v1000_v35, %v912_v41 }
 0x175   : > { %v1176_v60 = vadd.f32 %v1175_v36, %v1087_v32  ;;  %1496 = vmatmul.bf16.gmra.mxu0 %v1388_v37 }
 0x176   : > { %1039 = vmatmul.bf16.gmra.mxu1 %v1942_v38  ;;  %1128 = vmatmul.bf16.gmra.mxu2 %v1946_v39 }
 0x177   : > { %v1281_v44 = vmul.f32 1.442695, %v1176_v60  ;;  %v2437_v47 = vpop.eup %2436  ;;  %vm1236_vm13 = vcmp.gt.f32.partialorder %v1176_v60, 0.0 }
 0x178   : > { %v2091_v56 = vadd.f32 -1.0, %v2437_v47 }
 0x179   : > { %1217 = vmatmul.bf16.gmra.mxu3 %v1950_v2  ;;  %2438 = vpow2.f32 %v1281_v44  ;;  %v1089_v45 = vpop.f32.mrf.mxu2  ;;  %v922_v2 = vadd.f32 %v2889_v54, %v2832_v16 }
 0x17a   : > { %v1090_v48 = vadd.f32 %v1089_v45, %v1001_v28  ;;  %v1363_v40 = vsel %vm1235_vm12, %v1174_v1, %v2091_v56 }
 0x17b   : > { %v1002_v53 = vpop.f32.mrf.mxu1 }
 0x17c   : > { %v1178_v49 = vpop.f32.mrf.mxu3  ;;  %v1003_v46 = vadd.f32 %v1002_v53, %v914_v58 }
 0x17d   : > { %v1179_v55 = vadd.f32 %v1178_v49, %v1090_v48 }
 0x17f   : > { %v2439_v18 = vpop.eup %2438  ;;  %v1283_v61 = vmul.f32 1.442695, %v1179_v55  ;;  %vm1237_vm14 = vcmp.gt.f32.partialorder %v1179_v55, 0.0 }
 0x180   : > { %v2092_v59 = vadd.f32 -1.0, %v2439_v18 }
 0x181   : > { %v1091_v62 = vpop.f32.mrf.mxu2  ;;  %2440 = vpow2.f32 %v1283_v61 }
 0x182   : > { %v1364_v4 = vsel %vm1236_vm13, %v1176_v60, %v2092_v59  ;;  %v1092_v6 = vadd.f32 %v1091_v62, %v1003_v46 }
 0x183   : > { %v1389_v8 = vpack.c.bf16 %v1364_v4, %v1363_v40  ;;  %v1005_v11 = vpop.f32.mrf.mxu1 }
 0x184   : > { %v1180_v7 = vpop.f32.mrf.mxu3  ;;  %v1006_v52 = vadd.f32 %v1005_v11, %v917_v30 }
 0x185   : > { %v1181_v12 = vadd.f32 %v1180_v7, %v1092_v6  ;;  %1501 = vmatmul.bf16.gmra.mxu0 %v1389_v8 }
 0x187   : > { %v1285_v14 = vmul.f32 1.442695, %v1181_v12  ;;  %v2441_v19 = vpop.eup %2440  ;;  %vm1238_vm15 = vcmp.gt.f32.partialorder %v1181_v12, 0.0 }
 0x188   : > { %v2093_v23 = vadd.f32 -1.0, %v2441_v19 }
 0x189   : > { %2442 = vpow2.f32 %v1285_v14  ;;  %v1094_v15 = vpop.f32.mrf.mxu2 }
 0x18a   : > { %v1095_v22 = vadd.f32 %v1094_v15, %v1006_v52  ;;  %v1365_v57 = vsel %vm1237_vm14, %v1179_v55, %v2093_v23  ;;  %v924_v55 = vadd.f32 %v2889_v54, %v2847_v26  ;;  %v927_v26 = vadd.f32 %v2889_v54, %v2856_v33 }
 0x18b   : > { %v1007_v21 = vpop.f32.mrf.mxu1 }
 0x18c   : > { %v1183_v20 = vpop.f32.mrf.mxu3  ;;  %v1008_v31 = vadd.f32 %v1007_v21, %v919_v25 }
 0x18d   : > { %v1184_v1 = vadd.f32 %v1183_v20, %v1095_v22 }
 0x18f   : > { %v2443_v24 = vpop.eup %2442  ;;  %v1287_v13 = vmul.f32 1.442695, %v1184_v1  ;;  %vm1239_vm0 = vcmp.gt.f32.partialorder %v1184_v1, 0.0 }
 0x190   : > { %v2094_v29 = vadd.f32 -1.0, %v2443_v24 }
 0x191   : > { %v1096_v63 = vpop.f32.mrf.mxu2  ;;  %2444 = vpow2.f32 %v1287_v13 }
 0x192   : > { %v1366_v32 = vsel %vm1238_vm15, %v1181_v12, %v2094_v29  ;;  %v1097_v36 = vadd.f32 %v1096_v63, %v1008_v31 }
 0x193   : > { %v1390_v38 = vpack.c.bf16 %v1366_v32, %v1365_v57  ;;  %v1010_v39 = vpop.f32.mrf.mxu1 }
 0x194   : > { %v1185_v37 = vpop.f32.mrf.mxu3  ;;  %v1011_v60 = vadd.f32 %v1010_v39, %v922_v2 }
 0x195   : > { %v1186_v35 = vadd.f32 %v1185_v37, %v1097_v36  ;;  %1506 = vmatmul.bf16.gmra.mxu0 %v1390_v38 }
 0x197   : > { %v1289_v9 = vmul.f32 1.442695, %v1186_v35  ;;  %v2445_v44 = vpop.eup %2444  ;;  %vm1240_vm1 = vcmp.gt.f32.partialorder %v1186_v35, 0.0 }
 0x198   : > { %v2095_v49 = vadd.f32 -1.0, %v2445_v44 }
 0x199   : > { %2446 = vpow2.f32 %v1289_v9  ;;  %v1099_v41 = vpop.f32.mrf.mxu2 }
 0x19a   : > { %v1100_v28 = vadd.f32 %v1099_v41, %v1011_v60  ;;  %v1367_v61 = vsel %vm1239_vm0, %v1184_v1, %v2095_v49  ;;  %v929_v1 = vadd.f32 %v2889_v54, %v2868_v42  ;;  %v932_v42 = vadd.f32 %v2889_v54, %v2877_v50 }
 0x19b   : > { %v1012_v47 = vpop.f32.mrf.mxu1 }
 0x19c   : > { %v1188_v45 = vpop.f32.mrf.mxu3  ;;  %v1013_v18 = vadd.f32 %v1012_v47, %v924_v55 }
 0x19d   : > { %v1189_v48 = vadd.f32 %v1188_v45, %v1100_v28 }
 0x19f   : > { %v2447_v53 = vpop.eup %2446  ;;  %v1291_v16 = vmul.f32 1.442695, %v1189_v48  ;;  %vm1241_vm2 = vcmp.gt.f32.partialorder %v1189_v48, 0.0 }
 0x1a0   : > { %v2096_v56 = vadd.f32 -1.0, %v2447_v53  ;;  %v934_v53 = vadd.f32 %v2889_v54, %v2900_v3  ;;  %v937_v3 = vadd.f32 %v2889_v54, %v2810_v0 }
 0x1a1   : > { %v1101_v58 = vpop.f32.mrf.mxu2  ;;  %2448 = vpow2.f32 %v1291_v16 }
 0x1a2   : > { %v1472_v59 = vpop.f32.mrf.mxu0  ;;  %v1368_v46 = vsel %vm1240_vm1, %v1186_v35, %v2096_v56  ;;  %v1102_v62 = vadd.f32 %v1101_v58, %v1013_v18 }
 0x1a3   : > { %v1391_v4 = vpack.c.bf16 %v1368_v46, %v1367_v61  ;;  %v1015_v6 = vpop.f32.mrf.mxu1 }
 0x1a4   : > { %v1190_v40 = vpop.f32.mrf.mxu3  ;;  %v1016_v11 = vadd.f32 %v1015_v6, %v927_v26 }
 0x1a5   : > { %v1191_v7 = vadd.f32 %v1190_v40, %v1102_v62  ;;  %1511 = vmatmul.bf16.gmra.mxu0 %v1391_v4 }
 0x1a7   : > { %v1293_v8 = vmul.f32 1.442695, %v1191_v7  ;;  %v2449_v14 = vpop.eup %2448  ;;  %vm1242_vm3 = vcmp.gt.f32.partialorder %v1191_v7, 0.0 }
 0x1a8   : > { %v2097_v33 = vadd.f32 -1.0, %v2449_v14 }
 0x1a9   : > { %2450 = vpow2.f32 %v1293_v8  ;;  %v1104_v12 = vpop.f32.mrf.mxu2 }
 0x1aa   : > { %v1474_v30 = vpop.f32.mrf.mxu0  ;;  %v1105_v52 = vadd.f32 %v1104_v12, %v1016_v11  ;;  %v1369_v31 = vsel %vm1241_vm2, %v1189_v48, %v2097_v33 }
 0x1ab   : > { %v2254_v19 = vpack.c.bf16 %v1474_v30, %v1472_v59  ;;  %v1017_v22 = vpop.f32.mrf.mxu1 }
 0x1ac   : > { %v1193_v15 = vpop.f32.mrf.mxu3  ;;  %v1018_v25 = vadd.f32 %v1017_v22, %v929_v1 }
 0x1ad   : > { %v1194_v20 = vadd.f32 %v1193_v15, %v1105_v52  ;;  %2255 = vst [vmem:[%s2985_s11] sm:$0xff] %v2254_v19  }
 0x1af   : > { %v2451_v21 = vpop.eup %2450  ;;  %v1295_v24 = vmul.f32 1.442695, %v1194_v20  ;;  %vm1243_vm4 = vcmp.gt.f32.partialorder %v1194_v20, 0.0 }
 0x1b0   : > { %v2098_v23 = vadd.f32 -1.0, %v2451_v21 }
 0x1b1   : > { %v1106_v29 = vpop.f32.mrf.mxu2  ;;  %2452 = vpow2.f32 %v1295_v24 }
 0x1b2   : > { %v1477_v13 = vpop.f32.mrf.mxu0  ;;  %v1370_v63 = vsel %vm1242_vm3, %v1191_v7, %v2098_v23  ;;  %v1107_v57 = vadd.f32 %v1106_v29, %v1018_v25 }
 0x1b3   : > { %v1392_v36 = vpack.c.bf16 %v1370_v63, %v1369_v31  ;;  %v1020_v37 = vpop.f32.mrf.mxu1 }
 0x1b4   : > { %v1195_v32 = vpop.f32.mrf.mxu3  ;;  %v1021_v35 = vadd.f32 %v1020_v37, %v932_v42 }
 0x1b5   : > { %v1196_v38 = vadd.f32 %v1195_v32, %v1107_v57  ;;  %1516 = vmatmul.bf16.gmra.mxu0 %v1392_v36 }
 0x1b7   : > { %v1297_v39 = vmul.f32 1.442695, %v1196_v38  ;;  %v2453_v60 = vpop.eup %2452  ;;  %vm1244_vm5 = vcmp.gt.f32.partialorder %v1196_v38, 0.0 }
 0x1b8   : > { %v2099_v48 = vadd.f32 -1.0, %v2453_v60 }
 0x1b9   : > { %2454 = vpow2.f32 %v1297_v39  ;;  %v1109_v2 = vpop.f32.mrf.mxu2 }
 0x1ba   : > { %v1479_v9 = vpop.f32.mrf.mxu0  ;;  %v1110_v41 = vadd.f32 %v1109_v2, %v1021_v35  ;;  %v1371_v58 = vsel %vm1243_vm4, %v1194_v20, %v2099_v48  ;;  %v939_v20 = vadd.f32 %v2889_v54, %v2825_v10  ;;  %v942_v10 = vadd.f32 %v2889_v54, %v2834_v17 }
 0x1bb   : > { %v2259_v28 = vpack.c.bf16 %v1479_v9, %v1477_v13  ;;  %v1022_v45 = vpop.f32.mrf.mxu1 }
 0x1bc   : > { %v1198_v44 = vpop.f32.mrf.mxu3  ;;  %v1023_v56 = vadd.f32 %v1022_v45, %v934_v53 }
 0x1bd   : > { %v1199_v47 = vadd.f32 %v1198_v44, %v1110_v41  ;;  %2331 = vst [vmem:[%s2985_s11 + $0x8] sm:$0xff] %v2259_v28   ;;  %v944_v28 = vadd.f32 %v2889_v54, %v2849_v27  ;;  %v2476_v27 = vld [vmem:[%s3039_s2] ss:$0 sm:$0xff] }
 0x1be   : > { %v947_v54 = vadd.f32 %v2476_v27, %v2858_v34 }
 0x1bf   : > { %v2455_v49 = vpop.eup %2454  ;;  %v1299_v50 = vmul.f32 1.442695, %v1199_v47  ;;  %vm1245_vm6 = vcmp.gt.f32.partialorder %v1199_v47, 0.0 }
 0x1c0   : > { %v2100_v55 = vadd.f32 -1.0, %v2455_v49 }
 0x1c1   : > { %v1111_v16 = vpop.f32.mrf.mxu2  ;;  %2456 = vpow2.f32 %v1299_v50 }
 0x1c2   : > { %v1482_v18 = vpop.f32.mrf.mxu0  ;;  %v1372_v59 = vsel %vm1244_vm5, %v1196_v38, %v2100_v55  ;;  %v1112_v61 = vadd.f32 %v1111_v16, %v1023_v56 }
 0x1c3   : > { %v1393_v62 = vpack.c.bf16 %v1372_v59, %v1371_v58  ;;  %v1025_v40 = vpop.f32.mrf.mxu1 }
 0x1c4   : > { %v1200_v46 = vpop.f32.mrf.mxu3  ;;  %v1026_v7 = vadd.f32 %v1025_v40, %v937_v3 }
 0x1c5   : > { %v1201_v4 = vadd.f32 %v1200_v46, %v1112_v61  ;;  %1521 = vmatmul.bf16.gmra.mxu0 %v1393_v62 }
 0x1c7   : > { %v1301_v6 = vmul.f32 1.442695, %v1201_v4  ;;  %v2457_v11 = vpop.eup %2456  ;;  %vm1246_vm7 = vcmp.gt.f32.partialorder %v1201_v4, 0.0 }
 0x1c8   : > { %v2101_v19 = vadd.f32 -1.0, %v2457_v11 }
 0x1c9   : > { %2458 = vpow2.f32 %v1301_v6  ;;  %v1114_v26 = vpop.f32.mrf.mxu2 }
 0x1ca   : > { %v1484_v8 = vpop.f32.mrf.mxu0  ;;  %v1115_v12 = vadd.f32 %v1114_v26, %v1026_v7  ;;  %v1373_v24 = vsel %vm1245_vm6, %v1199_v47, %v2101_v19 }
 0x1cb   : > { %v2264_v14 = vpack.c.bf16 %v1484_v8, %v1482_v18  ;;  %v1027_v52 = vpop.f32.mrf.mxu1 }
 0x1cc   : > { %v1203_v30 = vpop.f32.mrf.mxu3  ;;  %v1028_v21 = vadd.f32 %v1027_v52, %v939_v20 }
 0x1cd   : > { %v1204_v15 = vadd.f32 %v1203_v30, %v1115_v12  ;;  %2332 = vst [vmem:[%s2985_s11 + $0x10] sm:$0xff] %v2264_v14   ;;  %v949_v12 = vadd.f32 %v2476_v27, %v2870_v43 }
 0x1cf   : > { %v2459_v22 = vpop.eup %2458  ;;  %v1303_v0 = vmul.f32 1.442695, %v1204_v15  ;;  %vm1247_vm8 = vcmp.gt.f32.partialorder %v1204_v15, 0.0 }
 0x1d0   : > { %v2102_v33 = vadd.f32 -1.0, %v2459_v22 }
 0x1d1   : > { %v1116_v1 = vpop.f32.mrf.mxu2  ;;  %2460 = vpow2.f32 %v1303_v0 }
 0x1d2   : > { %v1487_v23 = vpop.f32.mrf.mxu0  ;;  %v1374_v25 = vsel %vm1246_vm7, %v1201_v4, %v2102_v33  ;;  %v1117_v29 = vadd.f32 %v1116_v1, %v1028_v21 }
 0x1d3   : > { %v1394_v31 = vpack.c.bf16 %v1374_v25, %v1373_v24  ;;  %v1030_v63 = vpop.f32.mrf.mxu1 }
 0x1d4   : > { %v1205_v13 = vpop.f32.mrf.mxu3  ;;  %v1031_v36 = vadd.f32 %v1030_v63, %v942_v10 }
 0x1d5   : > { %v1206_v57 = vadd.f32 %v1205_v13, %v1117_v29  ;;  %1526 = vmatmul.bf16.gmra.mxu0 %v1394_v31 }
 0x1d7   : > { %v1305_v32 = vmul.f32 1.442695, %v1206_v57  ;;  %v2461_v42 = vpop.eup %2460  ;;  %vm1248_vm9 = vcmp.gt.f32.partialorder %v1206_v57, 0.0 }
 0x1d8   : > { %v2103_v41 = vadd.f32 -1.0, %v2461_v42 }
 0x1d9   : > { %2462 = vpow2.f32 %v1305_v32  ;;  %v1119_v37 = vpop.f32.mrf.mxu2 }
 0x1da   : > { %v1489_v38 = vpop.f32.mrf.mxu0  ;;  %v1120_v39 = vadd.f32 %v1119_v37, %v1031_v36  ;;  %v1375_v53 = vsel %vm1247_vm8, %v1204_v15, %v2103_v41 }
 0x1db   : > { %v2269_v2 = vpack.c.bf16 %v1489_v38, %v1487_v23  ;;  %v1032_v9 = vpop.f32.mrf.mxu1  ;;  %v952_v23 = vadd.f32 %v2476_v27, %v2879_v51  ;;  %v954_v38 = vadd.f32 %v2476_v27, %v2903_v5 }
 0x1dc   : > { %v1208_v35 = vpop.f32.mrf.mxu3  ;;  %v1033_v47 = vadd.f32 %v1032_v9, %v944_v28 }
 0x1dd   : > { %v1209_v60 = vadd.f32 %v1208_v35, %v1120_v39  ;;  %2333 = vst [vmem:[%s2985_s11 + $0x18] sm:$0xff] %v2269_v2  }
 0x1df   : > { %v2463_v44 = vpop.eup %2462  ;;  %v1307_v17 = vmul.f32 1.442695, %v1209_v60  ;;  %vm1249_vm10 = vcmp.gt.f32.partialorder %v1209_v60, 0.0 }
 0x1e0   : > { %v2104_v45 = vadd.f32 -1.0, %v2463_v44 }
 0x1e1   : > { %v1121_v48 = vpop.f32.mrf.mxu2  ;;  %2464 = vpow2.f32 %v1307_v17 }
 0x1e2   : > { %v1492_v49 = vpop.f32.mrf.mxu0  ;;  %v1376_v55 = vsel %vm1248_vm9, %v1206_v57, %v2104_v45  ;;  %v1122_v50 = vadd.f32 %v1121_v48, %v1033_v47 }
 0x1e3   : > { %v1395_v16 = vpack.c.bf16 %v1376_v55, %v1375_v53  ;;  %v1035_v18 = vpop.f32.mrf.mxu1 }
 0x1e4   : > { %v1210_v56 = vpop.f32.mrf.mxu3  ;;  %v1036_v61 = vadd.f32 %v1035_v18, %v947_v54 }
 0x1e5   : > { %v1211_v58 = vadd.f32 %v1210_v56, %v1122_v50  ;;  %1531 = vmatmul.bf16.gmra.mxu0 %v1395_v16 }
 0x1e7   : > { %v1309_v59 = vmul.f32 1.442695, %v1211_v58  ;;  %v2465_v40 = vpop.eup %2464  ;;  %vm1250_vm11 = vcmp.gt.f32.partialorder %v1211_v58, 0.0 }
 0x1e8   : > { %v2105_v8 = vadd.f32 -1.0, %v2465_v40 }
 0x1e9   : > { %2466 = vpow2.f32 %v1309_v59  ;;  %v1124_v46 = vpop.f32.mrf.mxu2 }
 0x1ea   : > { %v1494_v62 = vpop.f32.mrf.mxu0  ;;  %v1125_v4 = vadd.f32 %v1124_v46, %v1036_v61  ;;  %v1377_v19 = vsel %vm1249_vm10, %v1209_v60, %v2105_v8 }
 0x1eb   : > { %v2274_v6 = vpack.c.bf16 %v1494_v62, %v1492_v49  ;;  %v1037_v7 = vpop.f32.mrf.mxu1 }
 0x1ec   : > { %v1213_v3 = vpop.f32.mrf.mxu3  ;;  %v1038_v14 = vadd.f32 %v1037_v7, %v949_v12 }
 0x1ed   : > { %v1214_v26 = vadd.f32 %v1213_v3, %v1125_v4  ;;  %2334 = vst [vmem:[%s2985_s11 + $0x20] sm:$0xff] %v2274_v6  }
 0x1ef   : > { %v2467_v11 = vpop.eup %2466  ;;  %v1311_v34 = vmul.f32 1.442695, %v1214_v26  ;;  %vm1251_vm12 = vcmp.gt.f32.partialorder %v1214_v26, 0.0 }
 0x1f0   : > { %v2106_v30 = vadd.f32 -1.0, %v2467_v11 }
 0x1f1   : > { %v1126_v52 = vpop.f32.mrf.mxu2  ;;  %2468 = vpow2.f32 %v1311_v34 }
 0x1f2   : > { %v1497_v15 = vpop.f32.mrf.mxu0  ;;  %v1378_v22 = vsel %vm1250_vm11, %v1211_v58, %v2106_v30  ;;  %v1127_v20 = vadd.f32 %v1126_v52, %v1038_v14 }
 0x1f3   : > { %v1396_v0 = vpack.c.bf16 %v1378_v22, %v1377_v19  ;;  %v1040_v21 = vpop.f32.mrf.mxu1 }
 0x1f4   : > { %v1215_v33 = vpop.f32.mrf.mxu3  ;;  %v1041_v24 = vadd.f32 %v1040_v21, %v952_v23 }
 0x1f5   : > { %v1216_v1 = vadd.f32 %v1215_v33, %v1127_v20  ;;  %1536 = vmatmul.bf16.gmra.mxu0 %v1396_v0 }
 0x1f7   : > { %v1313_v43 = vmul.f32 1.442695, %v1216_v1  ;;  %v2469_v13 = vpop.eup %2468  ;;  %vm1252_vm13 = vcmp.gt.f32.partialorder %v1216_v1, 0.0 }
 0x1f8   : > { %v2107_v32 = vadd.f32 -1.0, %v2469_v13 }
 0x1f9   : > { %2470 = vpow2.f32 %v1313_v43  ;;  %v1129_v25 = vpop.f32.mrf.mxu2 }
 0x1fa   : > { %v1499_v29 = vpop.f32.mrf.mxu0  ;;  %v1130_v31 = vadd.f32 %v1129_v25, %v1041_v24  ;;  %v1379_v9 = vsel %vm1251_vm12, %v1214_v26, %v2107_v32 }
 0x1fb   : > { %v2279_v57 = vpack.c.bf16 %v1499_v29, %v1497_v15  ;;  %v1042_v36 = vpop.f32.mrf.mxu1 }
 0x1fc   : > { %v1218_v63 = vpop.f32.mrf.mxu3  ;;  %v1043_v39 = vadd.f32 %v1042_v36, %v954_v38 }
 0x1fd   : > { %v1219_v10 = vadd.f32 %v1218_v63, %v1130_v31  ;;  %2335 = vst [vmem:[%s2985_s11 + $0x28] sm:$0xff] %v2279_v57  }
 0x1ff   : > { %v2471_v37 = vpop.eup %2470  ;;  %v1315_v51 = vmul.f32 1.442695, %v1219_v10  ;;  %vm1253_vm14 = vcmp.gt.f32.partialorder %v1219_v10, 0.0 }
 0x200   : > { %v2108_v42 = vadd.f32 -1.0, %v2471_v37 }
 0x201   : > { %v1131_v35 = vpop.f32.mrf.mxu2  ;;  %2472 = vpow2.f32 %v1315_v51 }
 0x202   : > { %v1502_v2 = vpop.f32.mrf.mxu0  ;;  %v1380_v60 = vsel %vm1252_vm13, %v1216_v1, %v2108_v42  ;;  %v1132_v41 = vadd.f32 %v1131_v35, %v1043_v39 }
 0x203   : > { %v1397_v44 = vpack.c.bf16 %v1380_v60, %v1379_v9 }
 0x204   : > { %v1220_v28 = vpop.f32.mrf.mxu3 }
 0x205   : > { %v1221_v45 = vadd.f32 %v1220_v28, %v1132_v41  ;;  %1541 = vmatmul.bf16.gmra.mxu0 %v1397_v44 }
 0x207   : > { %v1317_v17 = vmul.f32 1.442695, %v1221_v45  ;;  %v2473_v5 = vpop.eup %2472  ;;  %vm1254_vm15 = vcmp.gt.f32.partialorder %v1221_v45, 0.0 }
 0x208   : > { %v2109_v49 = vadd.f32 -1.0, %v2473_v5 }
 0x209   : > { %2474 = vpow2.f32 %v1317_v17 }
 0x20a   : > { %v1504_v47 = vpop.f32.mrf.mxu0  ;;  %v1381_v56 = vsel %vm1253_vm14, %v1219_v10, %v2109_v49 }
 0x20b   : > { %v2284_v48 = vpack.c.bf16 %v1504_v47, %v1502_v2 }
 0x20d   : > { %2336 = vst [vmem:[%s2985_s11 + $0x30] sm:$0xff] %v2284_v48  }
 0x20f   : > { %v2475_v53 = vpop.eup %2474 }
 0x210   : > { %v2110_v55 = vadd.f32 -1.0, %v2475_v53 }
 0x212   : > { %v1507_v50 = vpop.f32.mrf.mxu0  ;;  %v1382_v16 = vsel %vm1254_vm15, %v1221_v45, %v2110_v55 }
 0x213   : > { %v1398_v18 = vpack.c.bf16 %v1382_v16, %v1381_v56 }
 0x215   : > { %1546 = vmatmul.bf16.gmra.mxu0 %v1398_v18 }
 0x21a   : > { %v1509_v58 = vpop.f32.mrf.mxu0 }
 0x21b   : > { %v2289_v27 = vpack.c.bf16 %v1509_v58, %v1507_v50 }
 0x21d   : > { %2337 = vst [vmem:[%s2985_s11 + $0x38] sm:$0xff] %v2289_v27  }
 0x222   : > { %v1512_v54 = vpop.f32.mrf.mxu0 }
 0x22a   : > { %v1514_v59 = vpop.f32.mrf.mxu0 }
 0x22b   : > { %v2294_v61 = vpack.c.bf16 %v1514_v59, %v1512_v54 }
 0x22d   : > { %2338 = vst [vmem:[%s2985_s11 + $0x40] sm:$0xff] %v2294_v61  }
 0x232   : > { %v1517_v46 = vpop.f32.mrf.mxu0 }
 0x23a   : > { %v1519_v62 = vpop.f32.mrf.mxu0 }
 0x23b   : > { %v2299_v40 = vpack.c.bf16 %v1519_v62, %v1517_v46 }
 0x23d   : > { %2339 = vst [vmem:[%s2985_s11 + $0x48] sm:$0xff] %v2299_v40  }
 0x242   : > { %v1522_v4 = vpop.f32.mrf.mxu0 }
 0x24a   : > { %v1524_v3 = vpop.f32.mrf.mxu0 }
 0x24b   : > { %v2304_v6 = vpack.c.bf16 %v1524_v3, %v1522_v4 }
 0x24d   : > { %2340 = vst [vmem:[%s2985_s11 + $0x50] sm:$0xff] %v2304_v6  }
 0x252   : > { %v1527_v7 = vpop.f32.mrf.mxu0 }
 0x25a   : > { %v1529_v26 = vpop.f32.mrf.mxu0 }
 0x25b   : > { %v2309_v8 = vpack.c.bf16 %v1529_v26, %v1527_v7 }
 0x25d   : > { %2341 = vst [vmem:[%s2985_s11 + $0x58] sm:$0xff] %v2309_v8  }
 0x262   : > { %v1532_v11 = vpop.f32.mrf.mxu0 }
 0x26a   : > { %v1534_v12 = vpop.f32.mrf.mxu0 }
 0x26b   : > { %v2314_v30 = vpack.c.bf16 %v1534_v12, %v1532_v11 }
 0x26d   : > { %2342 = vst [vmem:[%s2985_s11 + $0x60] sm:$0xff] %v2314_v30  }
 0x272   : > { %v1537_v34 = vpop.f32.mrf.mxu0 }
 0x27a   : > { %v1539_v14 = vpop.f32.mrf.mxu0 }
 0x27b   : > { %v2319_v52 = vpack.c.bf16 %v1539_v14, %v1537_v34 }
 0x27d   : > { %2343 = vst [vmem:[%s2985_s11 + $0x68] sm:$0xff] %v2319_v52  }
 0x282   : > { %v1542_v15 = vpop.f32.mrf.mxu0 }
 0x28a   : > { %v1544_v19 = vpop.f32.mrf.mxu0 }
 0x28b   : > { %v2324_v22 = vpack.c.bf16 %v1544_v19, %v1542_v15 }
 0x28d   : > { %2344 = vst [vmem:[%s2985_s11 + $0x70] sm:$0xff] %v2324_v22  }
 0x292   : > { %v1547_v20 = vpop.f32.mrf.mxu0 }
 0x29a   : > { %v1549_v33 = vpop.f32.mrf.mxu0 }
 0x29b   : > { %v2329_v0 = vpack.c.bf16 %v1549_v33, %v1547_v20 }
 0x29d   : > { %2345 = vst [vmem:[%s2985_s11 + $0x78] sm:$0xff] %v2329_v0  }
 0x29e PF: > { %p14_p7 = scmp.ge.s32.totalorder %s2590_s20, 4   ;;  %s3045_s15 = smov %s2533_s16 }
 0x29f   : > { %s3046_s16 = smov %s2537_s17  ;;  %s3047_s17 = smov %s2600_s23 }
 0x2a0   : > { %s3048_s18 = smov %s2590_s20  ;;  %16 = sbr.rel (!%p14_p7) target bundleno = 3 (0x3), region = 76 }
 0x2a5   :  { %1638 = vsyncpa [#allocation3], 1 }
 0x2a6   :  { %1640 = vsyncpa [#allocation3 + $0x1], 1 }

// kernel: forward.5
= control target key start
LH: loop header
LB: loop body
LE: loop exit
PB: predicated region body
PF: predicated region fallthrough
CT: control target
= control target key end

     0   :  { %s2311_s12 = smov 0   ;;  %s3018_s0 = inlined_call_operand.vmem [shape: bf16[512,512], index: 0, kind: input, shape index: {}]   ;;  %s3019_s1 = inlined_call_operand.vmem [shape: bf16[512,128], index: 1, kind: input, shape index: {}]   ;;  %s3020_s2 = inlined_call_operand.vmem [shape: f32[1,128], index: 2, kind: input, shape index: {}]   ;;  %s3021_s3 = inlined_call_operand.vmem [shape: f32[512,128], index: 3, kind: output, shape index: {}]  }
   0x1 LB: > { %s1652_s13 = sadd.s32 4294967295, %s2289_s12   ;;  %p1656_p0 = scmp.ge.s32.totalorder %s2289_s12, 1  ;;  %s2289_s12 = sphi %s2311_s12, %s13_s12  }
   0x2   : > { %p139_p1 = scmp.lt.s32.totalorder %s2289_s12, 3 }
   0x4   : > { %p140_p2 = pnand %p1656_p0, %p139_p1 }
   0x5   : > { %s1657_s11 = sshll.u32 (!%p140_p2), %s1652_s13, 5 }
   0x6   : > { %143 = sbr.rel (%p140_p2) target bundleno = 686 (0x2ae), region = 32  ;;  %p165_p3 = scmp.lt.s32.totalorder (!%p140_p2), %s1657_s11, 63 }
   0xb   : > { %v2120_v0 = vld [vmem:[%s3019_s1 + $0x38] sm:$0xff]  ;;  %v2119_v4 = vld [vmem:[%s3019_s1 + $0x30] sm:$0xff]  ;;  %v2118_v8 = vld [vmem:[%s3019_s1 + $0x28] sm:$0xff]  ;;  %s3023_s11 = smov (!%p165_p3, %s1657_s11), 63 }
   0xc   : > { %v2128_v1 = vld [vmem:[%s3019_s1 + $0x78] sm:$0xff]  ;;  %821 = vmatpush.bf16.msra.mxu0 %v2120_v0  ;;  %v2127_v5 = vld [vmem:[%s3019_s1 + $0x70] sm:$0xff]  ;;  %v2126_v9 = vld [vmem:[%s3019_s1 + $0x68] sm:$0xff]  ;;  %s2048_s10 = sshll.u32 %s3023_s11, 4  ;;  %s1661_s9 = sshll.u32 %s3023_s11, 3 }
   0xd   : > { %v2136_v2 = vld [vmem:[%s3019_s1 + $0xb8] sm:$0xff]  ;;  %910 = vmatpush.bf16.msra.mxu1 %v2128_v1  ;;  %v2135_v6 = vld [vmem:[%s3019_s1 + $0xb0] sm:$0xff]  ;;  %v2134_v10 = vld [vmem:[%s3019_s1 + $0xa8] sm:$0xff]  ;;  %s2403_s20 = scalar_lea.vmem %s3018_s0, %s2048_s10  ;;  %s2825_s15 = scalar_lea.vmem %s3021_s3, %s1661_s9 }
   0xe   : > { %v2144_v3 = vld [vmem:[%s3019_s1 + $0xf8] sm:$0xff]  ;;  %999 = vmatpush.bf16.msra.mxu2 %v2136_v2  ;;  %v2143_v7 = vld [vmem:[%s3019_s1 + $0xf0] sm:$0xff]  ;;  %v2142_v11 = vld [vmem:[%s3019_s1 + $0xe8] sm:$0xff] }
   0xf   : > { %1088 = vmatpush.bf16.msra.mxu3 %v2144_v3  ;;  %v2117_v12 = vld [vmem:[%s3019_s1 + $0x20] sm:$0xff]  ;;  %v2116_v16 = vld [vmem:[%s3019_s1 + $0x18] sm:$0xff]  ;;  %v2115_v20 = vld [vmem:[%s3019_s1 + $0x10] sm:$0xff] }
  0x10   : > { %822 = vmatpush.bf16.msra.mxu0 %v2119_v4  ;;  %v2125_v13 = vld [vmem:[%s3019_s1 + $0x60] sm:$0xff]  ;;  %v2124_v17 = vld [vmem:[%s3019_s1 + $0x58] sm:$0xff]  ;;  %v2123_v21 = vld [vmem:[%s3019_s1 + $0x50] sm:$0xff] }
  0x11   : > { %911 = vmatpush.bf16.msra.mxu1 %v2127_v5  ;;  %v2133_v14 = vld [vmem:[%s3019_s1 + $0xa0] sm:$0xff]  ;;  %v2132_v18 = vld [vmem:[%s3019_s1 + $0x98] sm:$0xff]  ;;  %v2131_v22 = vld [vmem:[%s3019_s1 + $0x90] sm:$0xff] }
  0x12   : > { %1000 = vmatpush.bf16.msra.mxu2 %v2135_v6  ;;  %v2141_v15 = vld [vmem:[%s3019_s1 + $0xe0] sm:$0xff]  ;;  %v2140_v19 = vld [vmem:[%s3019_s1 + $0xd8] sm:$0xff]  ;;  %v2139_v23 = vld [vmem:[%s3019_s1 + $0xd0] sm:$0xff] }
  0x13   : > { %1089 = vmatpush.bf16.msra.mxu3 %v2143_v7  ;;  %v2114_v24 = vld [vmem:[%s3019_s1 + $0x8] sm:$0xff]  ;;  %v2113_v28 = vld [vmem:[%s3019_s1] sm:$0xff]  ;;  %v2051_v33 = vld [vmem:[%s2403_s20 + $0xc] sm:$0xf0] }
  0x14   : > { %823 = vmatpush.bf16.msra.mxu0 %v2118_v8  ;;  %v2122_v25 = vld [vmem:[%s3019_s1 + $0x48] sm:$0xff]  ;;  %v2121_v29 = vld [vmem:[%s3019_s1 + $0x40] sm:$0xff]  ;;  %v1666_v35 = vld [vmem:[%s2403_s20 + $0x10] sm:$0xf0] }
  0x15   : > { %912 = vmatpush.bf16.msra.mxu1 %v2126_v9  ;;  %v2130_v26 = vld [vmem:[%s3019_s1 + $0x88] sm:$0xff]  ;;  %v2129_v30 = vld [vmem:[%s3019_s1 + $0x80] sm:$0xff]  ;;  %v2052_v37 = vld [vmem:[%s2403_s20 + $0x14] sm:$0xf0] }
  0x16   : > { %1001 = vmatpush.bf16.msra.mxu2 %v2134_v10  ;;  %v2138_v27 = vld [vmem:[%s3019_s1 + $0xc8] sm:$0xff]  ;;  %v2137_v31 = vld [vmem:[%s3019_s1 + $0xc0] sm:$0xff]  ;;  %v1674_v39 = vld [vmem:[%s2403_s20 + $0x18] sm:$0xf0] }
  0x17   : > { %1090 = vmatpush.bf16.msra.mxu3 %v2142_v11  ;;  %v1664_v32 = vld [vmem:[%s2403_s20] sm:$0xf]  ;;  %v2049_v34 = vld [vmem:[%s2403_s20 + $0x4] sm:$0xf]  ;;  %v1672_v36 = vld [vmem:[%s2403_s20 + $0x8] sm:$0xf] }
  0x18   : > { %824 = vmatpush.bf16.msra.mxu0 %v2117_v12  ;;  %v2050_v38 = vld [vmem:[%s2403_s20 + $0xc] sm:$0xf]  ;;  %v1665_v40 = vor.u32 %v2051_v33, %v1664_v32  ;;  %v1669_v41 = vor.u32 %v2049_v34, %v1666_v35  ;;  %v1673_v42 = vor.u32 %v2052_v37, %v1672_v36  ;;  %v1680_v44 = vld [vmem:[%s2403_s20 + $0x20] sm:$0xf]  ;;  %v2055_v45 = vld [vmem:[%s2403_s20 + $0x2c] sm:$0xf0] }
  0x19   : > { %913 = vmatpush.bf16.msra.mxu1 %v2125_v13  ;;  %v1677_v43 = vor.u32 %v2050_v38, %v1674_v39  ;;  %v2053_v46 = vld [vmem:[%s2403_s20 + $0x24] sm:$0xf]  ;;  %v1682_v47 = vld [vmem:[%s2403_s20 + $0x30] sm:$0xf0]  ;;  %v1688_v48 = vld [vmem:[%s2403_s20 + $0x28] sm:$0xf]  ;;  %v1681_v52 = vor.u32 %v2055_v45, %v1680_v44 }
  0x1a   : > { %1002 = vmatpush.bf16.msra.mxu2 %v2133_v14  ;;  %v2056_v49 = vld [vmem:[%s2403_s20 + $0x34] sm:$0xf0]  ;;  %v2054_v50 = vld [vmem:[%s2403_s20 + $0x2c] sm:$0xf]  ;;  %v1690_v51 = vld [vmem:[%s2403_s20 + $0x38] sm:$0xf0]  ;;  %v1685_v53 = vor.u32 %v2053_v46, %v1682_v47 }
  0x1b   : > { %1091 = vmatpush.bf16.msra.mxu3 %v2141_v15  ;;  %v1689_v54 = vor.u32 %v2056_v49, %v1688_v48  ;;  %v1693_v55 = vor.u32 %v2054_v50, %v1690_v51  ;;  %v1696_v56 = vld [vmem:[%s2403_s20 + $0x40] sm:$0xf]  ;;  %v2059_v57 = vld [vmem:[%s2403_s20 + $0x4c] sm:$0xf0]  ;;  %v2057_v58 = vld [vmem:[%s2403_s20 + $0x44] sm:$0xf] }
  0x1c   : > { %825 = vmatpush.bf16.msra.mxu0 %v2116_v16  ;;  %v1698_v59 = vld [vmem:[%s2403_s20 + $0x50] sm:$0xf0]  ;;  %v1704_v60 = vld [vmem:[%s2403_s20 + $0x48] sm:$0xf]  ;;  %v2060_v61 = vld [vmem:[%s2403_s20 + $0x54] sm:$0xf0]  ;;  %v1697_v0 = vor.u32 %v2059_v57, %v1696_v56 }
  0x1d   : > { %914 = vmatpush.bf16.msra.mxu1 %v2124_v17  ;;  %v2058_v62 = vld [vmem:[%s2403_s20 + $0x4c] sm:$0xf]  ;;  %v1706_v63 = vld [vmem:[%s2403_s20 + $0x58] sm:$0xf0]  ;;  %v1701_v1 = vor.u32 %v2057_v58, %v1698_v59  ;;  %v1705_v2 = vor.u32 %v2060_v61, %v1704_v60  ;;  %v1712_v4 = vld [vmem:[%s2403_s20 + $0x60] sm:$0xf] }
  0x1e   : > { %1003 = vmatpush.bf16.msra.mxu2 %v2132_v18  ;;  %v1709_v3 = vor.u32 %v2058_v62, %v1706_v63  ;;  %v2063_v5 = vld [vmem:[%s2403_s20 + $0x6c] sm:$0xf0]  ;;  %v2061_v6 = vld [vmem:[%s2403_s20 + $0x64] sm:$0xf]  ;;  %v1714_v7 = vld [vmem:[%s2403_s20 + $0x70] sm:$0xf0] }
  0x1f   : > { %1092 = vmatpush.bf16.msra.mxu3 %v2140_v19  ;;  %v1720_v8 = vld [vmem:[%s2403_s20 + $0x68] sm:$0xf]  ;;  %v2064_v9 = vld [vmem:[%s2403_s20 + $0x74] sm:$0xf0]  ;;  %v2062_v10 = vld [vmem:[%s2403_s20 + $0x6c] sm:$0xf]  ;;  %v1713_v12 = vor.u32 %v2063_v5, %v1712_v4  ;;  %v1717_v13 = vor.u32 %v2061_v6, %v1714_v7 }
  0x20   : > { %826 = vmatpush.bf16.msra.mxu0 %v2115_v20  ;;  %v1722_v11 = vld [vmem:[%s2403_s20 + $0x78] sm:$0xf0]  ;;  %v1721_v14 = vor.u32 %v2064_v9, %v1720_v8  ;;  %v1728_v16 = vld [vmem:[%s2403_s20 + $0x80] sm:$0xf]  ;;  %v2067_v17 = vld [vmem:[%s2403_s20 + $0x8c] sm:$0xf0] }
  0x21   : > { %915 = vmatpush.bf16.msra.mxu1 %v2123_v21  ;;  %v1725_v15 = vor.u32 %v2062_v10, %v1722_v11  ;;  %v2065_v18 = vld [vmem:[%s2403_s20 + $0x84] sm:$0xf]  ;;  %v1730_v19 = vld [vmem:[%s2403_s20 + $0x90] sm:$0xf0]  ;;  %v1736_v20 = vld [vmem:[%s2403_s20 + $0x88] sm:$0xf] }
  0x22   : > { %1004 = vmatpush.bf16.msra.mxu2 %v2131_v22  ;;  %v2068_v21 = vld [vmem:[%s2403_s20 + $0x94] sm:$0xf0]  ;;  %v2066_v22 = vld [vmem:[%s2403_s20 + $0x8c] sm:$0xf]  ;;  %v1752_v32 = vld [vmem:[%s2403_s20 + $0xa8] sm:$0xf] }
  0x23   : > { %1093 = vmatpush.bf16.msra.mxu3 %v2139_v23  ;;  %v1738_v23 = vld [vmem:[%s2403_s20 + $0x98] sm:$0xf0]  ;;  %v2072_v33 = vld [vmem:[%s2403_s20 + $0xb4] sm:$0xf0]  ;;  %v2070_v34 = vld [vmem:[%s2403_s20 + $0xac] sm:$0xf] }
  0x24   : > { %827 = vmatpush.bf16.msra.mxu0 %v2114_v24  ;;  %v1729_v24 = vor.u32 %v2067_v17, %v1728_v16  ;;  %v1754_v35 = vld [vmem:[%s2403_s20 + $0xb8] sm:$0xf0]  ;;  %v1753_v38 = vor.u32 %v2072_v33, %v1752_v32  ;;  %v1768_v44 = vld [vmem:[%s2403_s20 + $0xc8] sm:$0xf]  ;;  %v2076_v45 = vld [vmem:[%s2403_s20 + $0xd4] sm:$0xf0]  ;;  %v1177_v16 = vlaneseq }
  0x25   : > { %916 = vmatpush.bf16.msra.mxu1 %v2122_v25  ;;  %v1733_v25 = vor.u32 %v2065_v18, %v1730_v19  ;;  %v1757_v39 = vor.u32 %v2070_v34, %v1754_v35  ;;  %v2074_v46 = vld [vmem:[%s2403_s20 + $0xcc] sm:$0xf]  ;;  %v1770_v47 = vld [vmem:[%s2403_s20 + $0xd8] sm:$0xf0]  ;;  %v1769_v50 = vor.u32 %v2076_v45, %v1768_v44  ;;  %v1784_v56 = vld [vmem:[%s2403_s20 + $0xe8] sm:$0xf] }
  0x26   : > { %1005 = vmatpush.bf16.msra.mxu2 %v2130_v26  ;;  %v1737_v26 = vor.u32 %v2068_v21, %v1736_v20  ;;  %v1773_v51 = vor.u32 %v2074_v46, %v1770_v47  ;;  %v2080_v57 = vld [vmem:[%s2403_s20 + $0xf4] sm:$0xf0]  ;;  %v2078_v58 = vld [vmem:[%s2403_s20 + $0xec] sm:$0xf]  ;;  %v1786_v59 = vld [vmem:[%s2403_s20 + $0xf8] sm:$0xf0] }
  0x27   : > { %1094 = vmatpush.bf16.msra.mxu3 %v2138_v27  ;;  %v1741_v27 = vor.u32 %v2066_v22, %v1738_v23  ;;  %v1785_v62 = vor.u32 %v2080_v57, %v1784_v56  ;;  %v1789_v63 = vor.u32 %v2078_v58, %v1786_v59  ;;  %v1794_v4 = vld [vmem:[%s2403_s20 + $0x110] sm:$0xf0]  ;;  %v1800_v5 = vld [vmem:[%s2403_s20 + $0x108] sm:$0xf]  ;;  %v2084_v6 = vld [vmem:[%s2403_s20 + $0x114] sm:$0xf0] }
  0x28   : > { %828 = vmatpush.bf16.msra.mxu0 %v2113_v28  ;;  %v1744_v28 = vld [vmem:[%s2403_s20 + $0xa0] sm:$0xf]  ;;  %v2082_v7 = vld [vmem:[%s2403_s20 + $0x10c] sm:$0xf]  ;;  %v1802_v8 = vld [vmem:[%s2403_s20 + $0x118] sm:$0xf0] }
  0x29   : > { %917 = vmatpush.bf16.msra.mxu1 %v2121_v29  ;;  %v2071_v29 = vld [vmem:[%s2403_s20 + $0xac] sm:$0xf0]  ;;  %v2501_v18 = vand.u32 127, %v1177_v16  ;;  %v2088_v32 = vld [vmem:[%s2403_s20 + $0x134] sm:$0xf0] }
  0x2a   : > { %1006 = vmatpush.bf16.msra.mxu2 %v2129_v30  ;;  %v2069_v30 = vld [vmem:[%s2403_s20 + $0xa4] sm:$0xf]  ;;  %v1745_v36 = vor.u32 %v2071_v29, %v1744_v28  ;;  %v2086_v33 = vld [vmem:[%s2403_s20 + $0x12c] sm:$0xf]  ;;  %v1818_v34 = vld [vmem:[%s2403_s20 + $0x138] sm:$0xf0] }
  0x2b   : > { %1095 = vmatpush.bf16.msra.mxu3 %v2137_v31  ;;  %829 = vmatmul.bf16.vlgmr.msra.gmra.mxu0 %v1665_v40  ;;  %v1746_v31 = vld [vmem:[%s2403_s20 + $0xb0] sm:$0xf0]  ;;  %v1760_v40 = vld [vmem:[%s2403_s20 + $0xc0] sm:$0xf]  ;;  %vm1179_vm0 = vcmp.lt.s32.totalorder %v2501_v18, 8  ;;  %v1821_v44 = vor.u32 %v2086_v33, %v1818_v34 }
  0x2c   : > { %918 = vmatmul.bf16.vlgmr.msra.gmra.mxu1 %v1669_v41  ;;  %v1749_v37 = vor.u32 %v2069_v30, %v1746_v31  ;;  %v2075_v41 = vld [vmem:[%s2403_s20 + $0xcc] sm:$0xf0]  ;;  %v2085_v28 = vld [vmem:[%s2403_s20 + $0x124] sm:$0xf]  ;;  %v1810_v30 = vld [vmem:[%s2403_s20 + $0x130] sm:$0xf0] }
  0x2d   : > { %1007 = vmatmul.bf16.vlgmr.msra.gmra.mxu2 %v1673_v42  ;;  %v2073_v42 = vld [vmem:[%s2403_s20 + $0xc4] sm:$0xf]  ;;  %v1761_v48 = vor.u32 %v2075_v41, %v1760_v40  ;;  %v1816_v31 = vld [vmem:[%s2403_s20 + $0x128] sm:$0xf]  ;;  %v1824_v56 = vld [vmem:[%s2403_s20 + $0x140] sm:$0xf] }
  0x2e   : > { %1096 = vmatmul.bf16.vlgmr.msra.gmra.mxu3 %v1677_v43  ;;  %v1762_v43 = vld [vmem:[%s2403_s20 + $0xd0] sm:$0xf0]  ;;  %v2091_v57 = vld [vmem:[%s2403_s20 + $0x14c] sm:$0xf0]  ;;  %v2089_v58 = vld [vmem:[%s2403_s20 + $0x144] sm:$0xf] }
  0x2f   : > { %v1765_v49 = vor.u32 %v2073_v42, %v1762_v43  ;;  %v1817_v43 = vor.u32 %v2088_v32, %v1816_v31  ;;  %v2096_v31 = vld [vmem:[%s2403_s20 + $0x174] sm:$0xf0]  ;;  %v2094_v32 = vld [vmem:[%s2403_s20 + $0x16c] sm:$0xf]  ;;  %v1850_v33 = vld [vmem:[%s2403_s20 + $0x178] sm:$0xf0] }
  0x3b   : > { %834 = vmatmul.bf16.gmra.mxu0 %v1681_v52  ;;  %v1776_v52 = vld [vmem:[%s2403_s20 + $0xe0] sm:$0xf] }
  0x3c   : > { %923 = vmatmul.bf16.gmra.mxu1 %v1685_v53  ;;  %v2079_v53 = vld [vmem:[%s2403_s20 + $0xec] sm:$0xf0] }
  0x3d   : > { %1012 = vmatmul.bf16.gmra.mxu2 %v1689_v54  ;;  %v2077_v54 = vld [vmem:[%s2403_s20 + $0xe4] sm:$0xf]  ;;  %v1777_v60 = vor.u32 %v2079_v53, %v1776_v52 }
  0x3e   : > { %1101 = vmatmul.bf16.gmra.mxu3 %v1693_v55  ;;  %v1778_v55 = vld [vmem:[%s2403_s20 + $0xf0] sm:$0xf0] }
  0x3f   : > { %v1781_v61 = vor.u32 %v2077_v54, %v1778_v55 }
  0x4b   : > { %839 = vmatmul.bf16.gmra.mxu0 %v1697_v0  ;;  %v2490_v0 = vld [vmem:[%s3020_s2] ss:$0 sm:$0xff] }
  0x4c   : > { %928 = vmatmul.bf16.gmra.mxu1 %v1701_v1  ;;  %v1792_v1 = vld [vmem:[%s2403_s20 + $0x100] sm:$0xf] }
  0x4d   : > { %1017 = vmatmul.bf16.gmra.mxu2 %v1705_v2  ;;  %v2083_v2 = vld [vmem:[%s2403_s20 + $0x10c] sm:$0xf0] }
  0x4e   : > { %1106 = vmatmul.bf16.gmra.mxu3 %v1709_v3  ;;  %v2081_v3 = vld [vmem:[%s2403_s20 + $0x104] sm:$0xf]  ;;  %v1793_v9 = vor.u32 %v2083_v2, %v1792_v1  ;;  %v1834_v1 = vld [vmem:[%s2403_s20 + $0x158] sm:$0xf0] }
  0x4f   : > { %v1797_v10 = vor.u32 %v2081_v3, %v1794_v4 }
  0x5b   : > { %844 = vmatmul.bf16.gmra.mxu0 %v1713_v12 }
  0x5c   : > { %933 = vmatmul.bf16.gmra.mxu1 %v1717_v13  ;;  %v1801_v13 = vor.u32 %v2084_v6, %v1800_v5  ;;  %v1825_v5 = vor.u32 %v2091_v57, %v1824_v56  ;;  %v1856_v56 = vld [vmem:[%s2403_s20 + $0x180] sm:$0xf]  ;;  %v2099_v57 = vld [vmem:[%s2403_s20 + $0x18c] sm:$0xf0] }
  0x5d   : > { %1022 = vmatmul.bf16.gmra.mxu2 %v1721_v14  ;;  %v1805_v14 = vor.u32 %v2082_v7, %v1802_v8 }
  0x5e   : > { %1111 = vmatmul.bf16.gmra.mxu3 %v1725_v15 }
  0x6b   : > { %849 = vmatmul.bf16.gmra.mxu0 %v1729_v24 }
  0x6c   : > { %938 = vmatmul.bf16.gmra.mxu1 %v1733_v25 }
  0x6d   : > { %1027 = vmatmul.bf16.gmra.mxu2 %v1737_v26  ;;  %v1808_v26 = vld [vmem:[%s2403_s20 + $0x120] sm:$0xf] }
  0x6e   : > { %1116 = vmatmul.bf16.gmra.mxu3 %v1741_v27  ;;  %v2087_v27 = vld [vmem:[%s2403_s20 + $0x12c] sm:$0xf0] }
  0x7b   : > { %854 = vmatmul.bf16.gmra.mxu0 %v1745_v36 }
  0x7c   : > { %943 = vmatmul.bf16.gmra.mxu1 %v1749_v37 }
  0x7d   : > { %1032 = vmatmul.bf16.gmra.mxu2 %v1753_v38  ;;  %v1809_v38 = vor.u32 %v2087_v27, %v1808_v26  ;;  %v2093_v26 = vld [vmem:[%s2403_s20 + $0x164] sm:$0xf] }
  0x7e   : > { %1121 = vmatmul.bf16.gmra.mxu3 %v1757_v39  ;;  %v1813_v39 = vor.u32 %v2085_v28, %v1810_v30  ;;  %v1842_v28 = vld [vmem:[%s2403_s20 + $0x170] sm:$0xf0]  ;;  %v1848_v30 = vld [vmem:[%s2403_s20 + $0x168] sm:$0xf] }
  0x8b   : > { %859 = vmatmul.bf16.gmra.mxu0 %v1761_v48 }
  0x8c   : > { %948 = vmatmul.bf16.gmra.mxu1 %v1765_v49 }
  0x8d   : > { %1037 = vmatmul.bf16.gmra.mxu2 %v1769_v50 }
  0x8e   : > { %1126 = vmatmul.bf16.gmra.mxu3 %v1773_v51 }
  0x9b   : > { %864 = vmatmul.bf16.gmra.mxu0 %v1777_v60  ;;  %v1826_v60 = vld [vmem:[%s2403_s20 + $0x150] sm:$0xf0] }
  0x9c   : > { %953 = vmatmul.bf16.gmra.mxu1 %v1781_v61  ;;  %v1832_v61 = vld [vmem:[%s2403_s20 + $0x148] sm:$0xf]  ;;  %v1829_v6 = vor.u32 %v2089_v58, %v1826_v60  ;;  %v2097_v58 = vld [vmem:[%s2403_s20 + $0x184] sm:$0xf] }
  0x9d   : > { %1042 = vmatmul.bf16.gmra.mxu2 %v1785_v62  ;;  %v2092_v62 = vld [vmem:[%s2403_s20 + $0x154] sm:$0xf0] }
  0x9e   : > { %1131 = vmatmul.bf16.gmra.mxu3 %v1789_v63  ;;  %v2090_v63 = vld [vmem:[%s2403_s20 + $0x14c] sm:$0xf] }
  0xa8   : > { %v830_v11 = vpop.f32.mrf.mxu0 }
  0xa9   : > { %v919_v12 = vpop.f32.mrf.mxu1  ;;  %v831_v15 = vadd.f32 %v2490_v0, %v830_v11  ;;  %v1837_v11 = vor.u32 %v2090_v63, %v1834_v1  ;;  %v2100_v63 = vld [vmem:[%s2403_s20 + $0x194] sm:$0xf0]  ;;  %v2098_v1 = vld [vmem:[%s2403_s20 + $0x18c] sm:$0xf] }
  0xab   : > { %869 = vmatmul.bf16.gmra.mxu0 %v1793_v9  ;;  %v920_v17 = vadd.f32 %v919_v12, %v831_v15 }
  0xac   : > { %958 = vmatmul.bf16.gmra.mxu1 %v1797_v10  ;;  %v1833_v10 = vor.u32 %v2092_v62, %v1832_v61  ;;  %v1858_v61 = vld [vmem:[%s2403_s20 + $0x190] sm:$0xf0]  ;;  %v1864_v62 = vld [vmem:[%s2403_s20 + $0x188] sm:$0xf] }
  0xad   : > { %1047 = vmatmul.bf16.gmra.mxu2 %v1801_v13 }
  0xae   : > { %1136 = vmatmul.bf16.gmra.mxu3 %v1805_v14 }
  0xb0   : > { %v1008_v19 = vpop.f32.mrf.mxu2  ;;  %v832_v22 = vpop.f32.mrf.mxu0 }
  0xb1   : > { %v1097_v20 = vpop.f32.mrf.mxu3  ;;  %v1009_v21 = vadd.f32 %v1008_v19, %v920_v17  ;;  %v921_v23 = vpop.f32.mrf.mxu1  ;;  %v833_v25 = vadd.f32 %v2490_v0, %v832_v22 }
  0xb3   : > { %v1098_v24 = vadd.f32 %v1097_v20, %v1009_v21  ;;  %v922_v35 = vadd.f32 %v921_v23, %v833_v25  ;;  %v2095_v25 = vld [vmem:[%s2403_s20 + $0x16c] sm:$0xf0] }
  0xb5   : > { %v2510_v29 = vsel %vm1179_vm0, %v1098_v24, -inf  ;;  %v1840_v24 = vld [vmem:[%s2403_s20 + $0x160] sm:$0xf] }
  0xb6   : > { %1212 = vmax.xlane.f32.xlu0 %v2510_v29 }
  0xb8   : > { %v1010_v36 = vpop.f32.mrf.mxu2  ;;  %v835_v41 = vpop.f32.mrf.mxu0 }
  0xb9   : > { %v1099_v37 = vpop.f32.mrf.mxu3  ;;  %v1011_v40 = vadd.f32 %v1010_v36, %v922_v35  ;;  %v924_v42 = vpop.f32.mrf.mxu1  ;;  %v836_v45 = vadd.f32 %v2490_v0, %v835_v41 }
  0xbb   : > { %v1100_v46 = vadd.f32 %v1099_v37, %v1011_v40  ;;  %874 = vmatmul.bf16.gmra.mxu0 %v1809_v38  ;;  %v925_v47 = vadd.f32 %v924_v42, %v836_v45  ;;  %v1841_v37 = vor.u32 %v2095_v25, %v1840_v24  ;;  %v1845_v38 = vor.u32 %v2093_v26, %v1842_v28  ;;  %v1872_v26 = vld [vmem:[%s2403_s20 + $0x1a0] sm:$0xf]  ;;  %v2103_v28 = vld [vmem:[%s2403_s20 + $0x1ac] sm:$0xf0] }
  0xbc   : > { %963 = vmatmul.bf16.gmra.mxu1 %v1813_v39  ;;  %v1849_v42 = vor.u32 %v2096_v31, %v1848_v30  ;;  %v2101_v30 = vld [vmem:[%s2403_s20 + $0x1a4] sm:$0xf] }
  0xbd   : > { %1052 = vmatmul.bf16.gmra.mxu2 %v1817_v43  ;;  %v2521_v48 = vsel %vm1179_vm0, %v1100_v46, -inf  ;;  %v1853_v43 = vor.u32 %v2094_v32, %v1850_v33  ;;  %v1874_v32 = vld [vmem:[%s2403_s20 + $0x1b0] sm:$0xf0]  ;;  %v1880_v33 = vld [vmem:[%s2403_s20 + $0x1a8] sm:$0xf] }
  0xbe   : > { %1141 = vmatmul.bf16.gmra.mxu3 %v1821_v44  ;;  %1214 = vmax.xlane.f32.xlu0 %v2521_v48 }
  0xc0   : > { %v1013_v49 = vpop.f32.mrf.mxu2  ;;  %v837_v52 = vpop.f32.mrf.mxu0 }
  0xc1   : > { %v1102_v50 = vpop.f32.mrf.mxu3  ;;  %v1014_v51 = vadd.f32 %v1013_v49, %v925_v47  ;;  %v926_v53 = vpop.f32.mrf.mxu1  ;;  %v838_v55 = vadd.f32 %v2490_v0, %v837_v52 }
  0xc3   : > { %v1103_v54 = vadd.f32 %v1102_v50, %v1014_v51  ;;  %v927_v2 = vadd.f32 %v926_v53, %v838_v55 }
  0xc5   : > { %v2530_v59 = vsel %vm1179_vm0, %v1103_v54, -inf }
  0xc6   : > { %1216 = vmax.xlane.f32.xlu1 %v2530_v59 }
  0xc8   : > { %v1015_v3 = vpop.f32.mrf.mxu2  ;;  %v840_v8 = vpop.f32.mrf.mxu0 }
  0xc9   : > { %v1104_v4 = vpop.f32.mrf.mxu3  ;;  %v1016_v7 = vadd.f32 %v1015_v3, %v927_v2  ;;  %v929_v9 = vpop.f32.mrf.mxu1  ;;  %v841_v12 = vadd.f32 %v2490_v0, %v840_v8  ;;  %v1866_v2 = vld [vmem:[%s2403_s20 + $0x198] sm:$0xf0] }
  0xcb   : > { %v1105_v13 = vadd.f32 %v1104_v4, %v1016_v7  ;;  %879 = vmatmul.bf16.gmra.mxu0 %v1825_v5  ;;  %v930_v14 = vadd.f32 %v929_v9, %v841_v12  ;;  %v1861_v7 = vor.u32 %v2097_v58, %v1858_v61  ;;  %v1869_v12 = vor.u32 %v2098_v1, %v1866_v2  ;;  %v2105_v1 = vld [vmem:[%s2403_s20 + $0x1c4] sm:$0xf] }
  0xcc   : > { %968 = vmatmul.bf16.gmra.mxu1 %v1829_v6  ;;  %v1857_v6 = vor.u32 %v2099_v57, %v1856_v56 }
  0xcd   : > { %1057 = vmatmul.bf16.gmra.mxu2 %v1833_v10  ;;  %v2541_v15 = vsel %vm1179_vm0, %v1105_v13, -inf }
  0xce   : > { %1146 = vmatmul.bf16.gmra.mxu3 %v1837_v11  ;;  %1218 = vmax.xlane.f32.xlu1 %v2541_v15  ;;  %v1865_v11 = vor.u32 %v2100_v63, %v1864_v62  ;;  %v1888_v62 = vld [vmem:[%s2403_s20 + $0x1c0] sm:$0xf]  ;;  %v2107_v63 = vld [vmem:[%s2403_s20 + $0x1cc] sm:$0xf0] }
  0xd0   : > { %v1018_v16 = vpop.f32.mrf.mxu2  ;;  %v842_v20 = vpop.f32.mrf.mxu0 }
  0xd1   : > { %v1107_v17 = vpop.f32.mrf.mxu3  ;;  %v1019_v19 = vadd.f32 %v1018_v16, %v930_v14  ;;  %v931_v21 = vpop.f32.mrf.mxu1  ;;  %v843_v23 = vadd.f32 %v2490_v0, %v842_v20 }
  0xd3   : > { %v1108_v22 = vadd.f32 %v1107_v17, %v1019_v19  ;;  %v932_v34 = vadd.f32 %v931_v21, %v843_v23 }
  0xd5   : > { %v2550_v27 = vsel %vm1179_vm0, %v1108_v22, -inf }
  0xd6   : > { %1220 = vmax.xlane.f32.xlu2 %v2550_v27 }
  0xd8   : > { %v1020_v35 = vpop.f32.mrf.mxu2  ;;  %v845_v40 = vpop.f32.mrf.mxu0 }
  0xd9   : > { %v1109_v36 = vpop.f32.mrf.mxu3  ;;  %v1021_v39 = vadd.f32 %v1020_v35, %v932_v34  ;;  %v934_v41 = vpop.f32.mrf.mxu1  ;;  %v846_v44 = vadd.f32 %v2490_v0, %v845_v40  ;;  %v2104_v34 = vld [vmem:[%s2403_s20 + $0x1b4] sm:$0xf0]  ;;  %v2102_v35 = vld [vmem:[%s2403_s20 + $0x1ac] sm:$0xf]  ;;  %v1873_v40 = vor.u32 %v2103_v28, %v1872_v26 }
  0xdb   : > { %v1110_v45 = vadd.f32 %v1109_v36, %v1021_v39  ;;  %884 = vmatmul.bf16.gmra.mxu0 %v1841_v37  ;;  %v935_v46 = vadd.f32 %v934_v41, %v846_v44  ;;  %v1882_v36 = vld [vmem:[%s2403_s20 + $0x1b8] sm:$0xf0]  ;;  %v1877_v41 = vor.u32 %v2101_v30, %v1874_v32 }
  0xdc   : > { %973 = vmatmul.bf16.gmra.mxu1 %v1845_v38 }
  0xdd   : > { %1062 = vmatmul.bf16.gmra.mxu2 %v1849_v42  ;;  %v2561_v47 = vsel %vm1179_vm0, %v1110_v45, -inf  ;;  %v1881_v45 = vor.u32 %v2104_v34, %v1880_v33 }
  0xde   : > { %1151 = vmatmul.bf16.gmra.mxu3 %v1853_v43  ;;  %1222 = vmax.xlane.f32.xlu2 %v2561_v47 }
  0xe0   : > { %v1023_v49 = vpop.f32.mrf.mxu2  ;;  %v847_v52 = vpop.f32.mrf.mxu0 }
  0xe1   : > { %v1112_v50 = vpop.f32.mrf.mxu3  ;;  %v1024_v51 = vadd.f32 %v1023_v49, %v935_v46  ;;  %v936_v53 = vpop.f32.mrf.mxu1  ;;  %v848_v55 = vadd.f32 %v2490_v0, %v847_v52  ;;  %v1885_v46 = vor.u32 %v2102_v35, %v1882_v36  ;;  %v1904_v35 = vld [vmem:[%s2403_s20 + $0x1e0] sm:$0xf]  ;;  %v2111_v36 = vld [vmem:[%s2403_s20 + $0x1ec] sm:$0xf0] }
  0xe3   : > { %v1113_v54 = vadd.f32 %v1112_v50, %v1024_v51  ;;  %v937_v3 = vadd.f32 %v936_v53, %v848_v55 }
  0xe5   : > { %v2570_v60 = vsel %vm1179_vm0, %v1113_v54, -inf }
  0xe6   : > { %1224 = vmax.xlane.f32.xlu0 %v2570_v60 }
  0xe8   : > { %v1025_v4 = vpop.f32.mrf.mxu2  ;;  %v850_v9 = vpop.f32.mrf.mxu0 }
  0xe9   : > { %v1114_v5 = vpop.f32.mrf.mxu3  ;;  %v1026_v8 = vadd.f32 %v1025_v4, %v937_v3  ;;  %v939_v10 = vpop.f32.mrf.mxu1  ;;  %v851_v13 = vadd.f32 %v2490_v0, %v850_v9  ;;  %v1890_v3 = vld [vmem:[%s2403_s20 + $0x1d0] sm:$0xf0]  ;;  %v1896_v4 = vld [vmem:[%s2403_s20 + $0x1c8] sm:$0xf] }
  0xeb   : > { %v1115_v14 = vadd.f32 %v1114_v5, %v1026_v8  ;;  %889 = vmatmul.bf16.gmra.mxu0 %v1857_v6  ;;  %v940_v16 = vadd.f32 %v939_v10, %v851_v13  ;;  %v2108_v5 = vld [vmem:[%s2403_s20 + $0x1d4] sm:$0xf0]  ;;  %v2106_v6 = vld [vmem:[%s2403_s20 + $0x1cc] sm:$0xf] }
  0xec   : > { %978 = vmatmul.bf16.gmra.mxu1 %v1861_v7  ;;  %v1898_v7 = vld [vmem:[%s2403_s20 + $0x1d8] sm:$0xf0] }
  0xed   : > { %1067 = vmatmul.bf16.gmra.mxu2 %v1865_v11  ;;  %v2581_v17 = vsel %vm1179_vm0, %v1115_v14, -inf  ;;  %v1889_v11 = vor.u32 %v2107_v63, %v1888_v62 }
  0xee   : > { %1156 = vmatmul.bf16.gmra.mxu3 %v1869_v12  ;;  %1226 = vmax.xlane.f32.xlu1 %v2581_v17  ;;  %v1893_v12 = vor.u32 %v2105_v1, %v1890_v3 }
  0xf0   : > { %v1028_v19 = vpop.f32.mrf.mxu2  ;;  %v852_v22 = vpop.f32.mrf.mxu0 }
  0xf1   : > { %v1117_v20 = vpop.f32.mrf.mxu3  ;;  %v1029_v21 = vadd.f32 %v1028_v19, %v940_v16  ;;  %v941_v23 = vpop.f32.mrf.mxu1  ;;  %v853_v25 = vadd.f32 %v2490_v0, %v852_v22  ;;  %v1897_v19 = vor.u32 %v2108_v5, %v1896_v4 }
  0xf3   : > { %v1118_v24 = vadd.f32 %v1117_v20, %v1029_v21  ;;  %v942_v37 = vadd.f32 %v941_v23, %v853_v25  ;;  %v1901_v20 = vor.u32 %v2106_v6, %v1898_v7 }
  0xf5   : > { %v2590_v31 = vsel %vm1179_vm0, %v1118_v24, -inf }
  0xf6   : > { %1228 = vmax.xlane.f32.xlu2 %v2590_v31 }
  0xf8   : > { %v1030_v38 = vpop.f32.mrf.mxu2  ;;  %v855_v43 = vpop.f32.mrf.mxu0 }
  0xf9   : > { %v1119_v39 = vpop.f32.mrf.mxu3  ;;  %v1031_v42 = vadd.f32 %v1030_v38, %v942_v37  ;;  %v944_v44 = vpop.f32.mrf.mxu1  ;;  %v856_v49 = vadd.f32 %v2490_v0, %v855_v43  ;;  %v2109_v37 = vld [vmem:[%s2403_s20 + $0x1e4] sm:$0xf]  ;;  %v1914_v43 = vld [vmem:[%s2403_s20 + $0x1f8] sm:$0xf0] }
  0xfb   : > { %v1120_v50 = vadd.f32 %v1119_v39, %v1031_v42  ;;  %894 = vmatmul.bf16.gmra.mxu0 %v1873_v40  ;;  %v945_v51 = vadd.f32 %v944_v44, %v856_v49  ;;  %v1906_v39 = vld [vmem:[%s2403_s20 + $0x1f0] sm:$0xf0]  ;;  %v1912_v40 = vld [vmem:[%s2403_s20 + $0x1e8] sm:$0xf]  ;;  %v2110_v42 = vld [vmem:[%s2403_s20 + $0x1ec] sm:$0xf]  ;;  %v1905_v49 = vor.u32 %v2111_v36, %v1904_v35 }
  0xfc   : > { %983 = vmatmul.bf16.gmra.mxu1 %v1877_v41  ;;  %v2112_v41 = vld [vmem:[%s2403_s20 + $0x1f4] sm:$0xf0] }
  0xfd   : > { %1072 = vmatmul.bf16.gmra.mxu2 %v1881_v45  ;;  %v2601_v52 = vsel %vm1179_vm0, %v1120_v50, -inf  ;;  %v1909_v50 = vor.u32 %v2109_v37, %v1906_v39 }
  0xfe   : > { %1161 = vmatmul.bf16.gmra.mxu3 %v1885_v46  ;;  %1230 = vmax.xlane.f32.xlu0 %v2601_v52 }
 0x100   : > { %v1033_v53 = vpop.f32.mrf.mxu2  ;;  %v857_v56 = vpop.f32.mrf.mxu0 }
 0x101   : > { %v1122_v54 = vpop.f32.mrf.mxu3  ;;  %v1034_v55 = vadd.f32 %v1033_v53, %v945_v51  ;;  %v946_v57 = vpop.f32.mrf.mxu1  ;;  %v858_v61 = vadd.f32 %v2490_v0, %v857_v56  ;;  %v1917_v56 = vor.u32 %v2110_v42, %v1914_v43 }
 0x103   : > { %v1123_v58 = vadd.f32 %v1122_v54, %v1034_v55  ;;  %v947_v8 = vadd.f32 %v946_v57, %v858_v61  ;;  %v1913_v55 = vor.u32 %v2112_v41, %v1912_v40 }
 0x105   : > { %v2610_v2 = vsel %vm1179_vm0, %v1123_v58, -inf }
 0x106   : > { %1232 = vmax.xlane.f32.xlu1 %v2610_v2 }
 0x108   : > { %v1035_v9 = vpop.f32.mrf.mxu2  ;;  %v860_v14 = vpop.f32.mrf.mxu0 }
 0x109   : > { %v1124_v10 = vpop.f32.mrf.mxu3  ;;  %v1036_v13 = vadd.f32 %v1035_v9, %v947_v8  ;;  %v949_v16 = vpop.f32.mrf.mxu1  ;;  %v861_v21 = vadd.f32 %v2490_v0, %v860_v14 }
 0x10b   : > { %v1125_v22 = vadd.f32 %v1124_v10, %v1036_v13  ;;  %899 = vmatmul.bf16.gmra.mxu0 %v1889_v11  ;;  %v950_v23 = vadd.f32 %v949_v16, %v861_v21 }
 0x10c   : > { %988 = vmatmul.bf16.gmra.mxu1 %v1893_v12 }
 0x10d   : > { %1077 = vmatmul.bf16.gmra.mxu2 %v1897_v19  ;;  %v2621_v24 = vsel %vm1179_vm0, %v1125_v22, -inf }
 0x10e   : > { %1166 = vmatmul.bf16.gmra.mxu3 %v1901_v20  ;;  %1234 = vmax.xlane.f32.xlu2 %v2621_v24 }
 0x110   : > { %v1038_v25 = vpop.f32.mrf.mxu2  ;;  %v862_v30 = vpop.f32.mrf.mxu0 }
 0x111   : > { %v1127_v26 = vpop.f32.mrf.mxu3  ;;  %v1039_v28 = vadd.f32 %v1038_v25, %v950_v23  ;;  %v951_v32 = vpop.f32.mrf.mxu1  ;;  %v863_v34 = vadd.f32 %v2490_v0, %v862_v30 }
 0x113   : > { %v1128_v33 = vadd.f32 %v1127_v26, %v1039_v28  ;;  %v952_v44 = vadd.f32 %v951_v32, %v863_v34 }
 0x115   : > { %v2630_v38 = vsel %vm1179_vm0, %v1128_v33, -inf }
 0x116   : > { %1236 = vmax.xlane.f32.xlu0 %v2630_v38 }
 0x118   : > { %v1040_v45 = vpop.f32.mrf.mxu2  ;;  %v865_v53 = vpop.f32.mrf.mxu0 }
 0x119   : > { %v1129_v46 = vpop.f32.mrf.mxu3  ;;  %v1041_v51 = vadd.f32 %v1040_v45, %v952_v44  ;;  %v954_v54 = vpop.f32.mrf.mxu1  ;;  %v866_v57 = vadd.f32 %v2490_v0, %v865_v53 }
 0x11b   : > { %v1130_v58 = vadd.f32 %v1129_v46, %v1041_v51  ;;  %904 = vmatmul.bf16.gmra.mxu0 %v1905_v49  ;;  %v955_v61 = vadd.f32 %v954_v54, %v866_v57 }
 0x11c   : > { %993 = vmatmul.bf16.gmra.mxu1 %v1909_v50 }
 0x11d   : > { %1082 = vmatmul.bf16.gmra.mxu2 %v1913_v55  ;;  %v2641_v62 = vsel %vm1179_vm0, %v1130_v58, -inf }
 0x11e   : > { %1171 = vmatmul.bf16.gmra.mxu3 %v1917_v56  ;;  %1238 = vmax.xlane.f32.xlu1 %v2641_v62 }
 0x120   : > { %v1043_v63 = vpop.f32.mrf.mxu2  ;;  %v867_v4 = vpop.f32.mrf.mxu0 }
 0x121   : > { %v1132_v1 = vpop.f32.mrf.mxu3  ;;  %v1044_v3 = vadd.f32 %v1043_v63, %v955_v61  ;;  %v956_v5 = vpop.f32.mrf.mxu1  ;;  %v868_v7 = vadd.f32 %v2490_v0, %v867_v4 }
 0x123   : > { %v1133_v6 = vadd.f32 %v1132_v1, %v1044_v3  ;;  %v957_v9 = vadd.f32 %v956_v5, %v868_v7 }
 0x125   : > { %v2647_v8 = vsel %vm1179_vm0, %v1133_v6, -inf }
 0x126   : > { %1240 = vmax.xlane.f32.xlu2 %v2647_v8 }
 0x128   : > { %v1045_v10 = vpop.f32.mrf.mxu2  ;;  %v870_v14 = vpop.f32.mrf.mxu0 }
 0x129   : > { %v1134_v11 = vpop.f32.mrf.mxu3  ;;  %v1046_v12 = vadd.f32 %v1045_v10, %v957_v9  ;;  %v1213_v13 = vpop.xlane.xlu0 %1212  ;;  %v871_v19 = vadd.f32 %v2490_v0, %v870_v14 }
 0x12a   : > { %v2651_v16 = vsub.f32 %v2510_v29, %v1213_v13  ;;  %v959_v20 = vpop.f32.mrf.mxu1 }
 0x12b   : > { %v1135_v21 = vadd.f32 %v1134_v11, %v1046_v12  ;;  %v960_v23 = vadd.f32 %v959_v20, %v871_v19 }
 0x12c   : > { %v1308_v22 = vmul.f32 1.442695, %v2651_v16 }
 0x12d   : > { %v2657_v25 = vsel %vm1179_vm0, %v1135_v21, -inf }
 0x12e   : > { %2154 = vpow2.f32 %v1308_v22  ;;  %1242 = vmax.xlane.f32.xlu0 %v2657_v25 }
 0x130   : > { %v1048_v26 = vpop.f32.mrf.mxu2  ;;  %v872_v29 = vpop.f32.mrf.mxu0 }
 0x131   : > { %v1137_v28 = vpop.f32.mrf.mxu3  ;;  %v1049_v30 = vadd.f32 %v1048_v26, %v960_v23  ;;  %v1215_v32 = vpop.xlane.xlu0 %1214  ;;  %v873_v36 = vadd.f32 %v2490_v0, %v872_v29 }
 0x132   : > { %v2661_v33 = vsub.f32 %v2521_v48, %v1215_v32  ;;  %v961_v34 = vpop.f32.mrf.mxu1 }
 0x133   : > { %v1138_v35 = vadd.f32 %v1137_v28, %v1049_v30  ;;  %v962_v41 = vadd.f32 %v961_v34, %v873_v36 }
 0x134   : > { %v2155_v37 = vpop.eup %2154  ;;  %v1310_v39 = vmul.f32 1.442695, %v2661_v33 }
 0x135   : > { %1372 = vadd.xlane.f32.xlu2 %v2155_v37  ;;  %v2667_v40 = vsel %vm1179_vm0, %v1138_v35, -inf }
 0x136   : > { %2156 = vpow2.f32 %v1310_v39  ;;  %1244 = vmax.xlane.f32.xlu1 %v2667_v40 }
 0x138   : > { %v1050_v42 = vpop.f32.mrf.mxu2  ;;  %v875_v45 = vpop.f32.mrf.mxu0 }
 0x139   : > { %v1139_v43 = vpop.f32.mrf.mxu3  ;;  %v1051_v48 = vadd.f32 %v1050_v42, %v962_v41  ;;  %v1217_v44 = vpop.xlane.xlu1 %1216  ;;  %v876_v49 = vadd.f32 %v2490_v0, %v875_v45 }
 0x13a   : > { %v2671_v46 = vsub.f32 %v2530_v59, %v1217_v44  ;;  %v964_v50 = vpop.f32.mrf.mxu1 }
 0x13b   : > { %v1140_v51 = vadd.f32 %v1139_v43, %v1051_v48  ;;  %v965_v55 = vadd.f32 %v964_v50, %v876_v49 }
 0x13c   : > { %v2157_v53 = vpop.eup %2156  ;;  %v1312_v54 = vmul.f32 1.442695, %v2671_v46 }
 0x13d   : > { %1374 = vadd.xlane.f32.xlu0 %v2157_v53  ;;  %v2677_v56 = vsel %vm1179_vm0, %v1140_v51, -inf }
 0x13e   : > { %2158 = vpow2.f32 %v1312_v54  ;;  %1246 = vmax.xlane.f32.xlu2 %v2677_v56 }
 0x140   : > { %v1053_v57 = vpop.f32.mrf.mxu2  ;;  %v877_v63 = vpop.f32.mrf.mxu0 }
 0x141   : > { %v1142_v58 = vpop.f32.mrf.mxu3  ;;  %v1054_v59 = vadd.f32 %v1053_v57, %v965_v55  ;;  %v1219_v61 = vpop.xlane.xlu1 %1218  ;;  %v878_v5 = vadd.f32 %v2490_v0, %v877_v63 }
 0x142   : > { %v2681_v1 = vsub.f32 %v2541_v15, %v1219_v61  ;;  %v966_v3 = vpop.f32.mrf.mxu1 }
 0x143   : > { %v1143_v4 = vadd.f32 %v1142_v58, %v1054_v59  ;;  %v967_v10 = vadd.f32 %v966_v3, %v878_v5 }
 0x144   : > { %v2159_v6 = vpop.eup %2158  ;;  %v1314_v7 = vmul.f32 1.442695, %v2681_v1 }
 0x145   : > { %1376 = vadd.xlane.f32.xlu1 %v2159_v6  ;;  %v2687_v9 = vsel %vm1179_vm0, %v1143_v4, -inf }
 0x146   : > { %2160 = vpow2.f32 %v1314_v7  ;;  %1248 = vmax.xlane.f32.xlu0 %v2687_v9 }
 0x148   : > { %v1055_v11 = vpop.f32.mrf.mxu2  ;;  %v880_v14 = vpop.f32.mrf.mxu0 }
 0x149   : > { %v1144_v12 = vpop.f32.mrf.mxu3  ;;  %v1056_v15 = vadd.f32 %v1055_v11, %v967_v10  ;;  %v1221_v13 = vpop.xlane.xlu2 %1220  ;;  %v881_v20 = vadd.f32 %v2490_v0, %v880_v14 }
 0x14a   : > { %v2691_v19 = vsub.f32 %v2550_v27, %v1221_v13  ;;  %v969_v21 = vpop.f32.mrf.mxu1 }
 0x14b   : > { %v1145_v22 = vadd.f32 %v1144_v12, %v1056_v15  ;;  %v970_v28 = vadd.f32 %v969_v21, %v881_v20 }
 0x14c   : > { %v2161_v23 = vpop.eup %2160  ;;  %v1316_v26 = vmul.f32 1.442695, %v2691_v19 }
 0x14d   : > { %1378 = vadd.xlane.f32.xlu2 %v2161_v23  ;;  %v2697_v30 = vsel %vm1179_vm0, %v1145_v22, -inf }
 0x14e   : > { %2162 = vpow2.f32 %v1316_v26  ;;  %1250 = vmax.xlane.f32.xlu1 %v2697_v30 }
 0x150   : > { %v1058_v32 = vpop.f32.mrf.mxu2  ;;  %v882_v35 = vpop.f32.mrf.mxu0 }
 0x151   : > { %v1147_v29 = vpop.f32.mrf.mxu3  ;;  %v1059_v27 = vadd.f32 %v1058_v32, %v970_v28  ;;  %v1223_v34 = vpop.xlane.xlu2 %1222  ;;  %v883_v41 = vadd.f32 %v2490_v0, %v882_v35 }
 0x152   : > { %v2701_v36 = vsub.f32 %v2561_v47, %v1223_v34  ;;  %v971_v37 = vpop.f32.mrf.mxu1 }
 0x153   : > { %v1148_v39 = vadd.f32 %v1147_v29, %v1059_v27  ;;  %v972_v44 = vadd.f32 %v971_v37, %v883_v41 }
 0x154   : > { %v2163_v42 = vpop.eup %2162  ;;  %v1318_v43 = vmul.f32 1.442695, %v2701_v36 }
 0x155   : > { %1380 = vadd.xlane.f32.xlu0 %v2163_v42  ;;  %v2707_v48 = vsel %vm1179_vm0, %v1148_v39, -inf }
 0x156   : > { %2164 = vpow2.f32 %v1318_v43  ;;  %1252 = vmax.xlane.f32.xlu2 %v2707_v48 }
 0x158   : > { %v1060_v45 = vpop.f32.mrf.mxu2  ;;  %v885_v51 = vpop.f32.mrf.mxu0 }
 0x159   : > { %v1149_v49 = vpop.f32.mrf.mxu3  ;;  %v1061_v47 = vadd.f32 %v1060_v45, %v972_v44  ;;  %v1225_v50 = vpop.xlane.xlu0 %1224  ;;  %v886_v54 = vadd.f32 %v2490_v0, %v885_v51 }
 0x15a   : > { %v2711_v53 = vsub.f32 %v2570_v60, %v1225_v50  ;;  %v974_v55 = vpop.f32.mrf.mxu1 }
 0x15b   : > { %v1150_v57 = vadd.f32 %v1149_v49, %v1061_v47  ;;  %v975_v61 = vadd.f32 %v974_v55, %v886_v54 }
 0x15c   : > { %v2165_v58 = vpop.eup %2164  ;;  %v1320_v59 = vmul.f32 1.442695, %v2711_v53 }
 0x15d   : > { %1382 = vadd.xlane.f32.xlu1 %v2165_v58  ;;  %v2717_v63 = vsel %vm1179_vm0, %v1150_v57, -inf }
 0x15e   : > { %2166 = vpow2.f32 %v1320_v59  ;;  %1254 = vmax.xlane.f32.xlu0 %v2717_v63 }
 0x160   : > { %v1063_v3 = vpop.f32.mrf.mxu2  ;;  %v887_v6 = vpop.f32.mrf.mxu0 }
 0x161   : > { %v1152_v4 = vpop.f32.mrf.mxu3  ;;  %v1064_v60 = vadd.f32 %v1063_v3, %v975_v61  ;;  %v1227_v5 = vpop.xlane.xlu1 %1226  ;;  %v888_v12 = vadd.f32 %v2490_v0, %v887_v6 }
 0x162   : > { %v2721_v7 = vsub.f32 %v2581_v17, %v1227_v5  ;;  %v976_v10 = vpop.f32.mrf.mxu1 }
 0x163   : > { %v1153_v11 = vadd.f32 %v1152_v4, %v1064_v60  ;;  %v977_v20 = vadd.f32 %v976_v10, %v888_v12 }
 0x164   : > { %v2167_v15 = vpop.eup %2166  ;;  %v1322_v13 = vmul.f32 1.442695, %v2721_v7 }
 0x165   : > { %1384 = vadd.xlane.f32.xlu2 %v2167_v15  ;;  %v2727_v14 = vsel %vm1179_vm0, %v1153_v11, -inf }
 0x166   : > { %2168 = vpow2.f32 %v1322_v13  ;;  %1256 = vmax.xlane.f32.xlu1 %v2727_v14 }
 0x168   : > { %v1065_v21 = vpop.f32.mrf.mxu2  ;;  %v890_v26 = vpop.f32.mrf.mxu0 }
 0x169   : > { %v1154_v22 = vpop.f32.mrf.mxu3  ;;  %v1066_v17 = vadd.f32 %v1065_v21, %v977_v20  ;;  %v1229_v23 = vpop.xlane.xlu2 %1228  ;;  %v891_v32 = vadd.f32 %v2490_v0, %v890_v26 }
 0x16a   : > { %v2731_v28 = vsub.f32 %v2590_v31, %v1229_v23  ;;  %v979_v29 = vpop.f32.mrf.mxu1 }
 0x16b   : > { %v1155_v27 = vadd.f32 %v1154_v22, %v1066_v17  ;;  %v980_v37 = vadd.f32 %v979_v29, %v891_v32 }
 0x16c   : > { %v2169_v34 = vpop.eup %2168  ;;  %v1324_v35 = vmul.f32 1.442695, %v2731_v28 }
 0x16d   : > { %1386 = vadd.xlane.f32.xlu0 %v2169_v34  ;;  %v2737_v39 = vsel %vm1179_vm0, %v1155_v27, -inf }
 0x16e   : > { %2170 = vpow2.f32 %v1324_v35  ;;  %1258 = vmax.xlane.f32.xlu2 %v2737_v39 }
 0x170   : > { %v1068_v41 = vpop.f32.mrf.mxu2  ;;  %v892_v44 = vpop.f32.mrf.mxu0 }
 0x171   : > { %v1157_v42 = vpop.f32.mrf.mxu3  ;;  %v1069_v31 = vadd.f32 %v1068_v41, %v980_v37  ;;  %v1231_v43 = vpop.xlane.xlu0 %1230  ;;  %v893_v50 = vadd.f32 %v2490_v0, %v892_v44 }
 0x172   : > { %v2741_v45 = vsub.f32 %v2601_v52, %v1231_v43  ;;  %v981_v49 = vpop.f32.mrf.mxu1 }
 0x173   : > { %v1158_v47 = vadd.f32 %v1157_v42, %v1069_v31  ;;  %v982_v57 = vadd.f32 %v981_v49, %v893_v50 }
 0x174   : > { %v2171_v51 = vpop.eup %2170  ;;  %v1326_v54 = vmul.f32 1.442695, %v2741_v45 }
 0x175   : > { %1388 = vadd.xlane.f32.xlu1 %v2171_v51  ;;  %v2747_v55 = vsel %vm1179_vm0, %v1158_v47, -inf }
 0x176   : > { %2172 = vpow2.f32 %v1326_v54  ;;  %1260 = vmax.xlane.f32.xlu0 %v2747_v55 }
 0x178   : > { %v1070_v58 = vpop.f32.mrf.mxu2  ;;  %v895_v3 = vpop.f32.mrf.mxu0 }
 0x179   : > { %v1159_v59 = vpop.f32.mrf.mxu3  ;;  %v1071_v52 = vadd.f32 %v1070_v58, %v982_v57  ;;  %v1233_v61 = vpop.xlane.xlu1 %1232  ;;  %v896_v60 = vadd.f32 %v2490_v0, %v895_v3 }
 0x17a   : > { %v2751_v4 = vsub.f32 %v2610_v2, %v1233_v61  ;;  %v984_v5 = vpop.f32.mrf.mxu1 }
 0x17b   : > { %v1160_v6 = vadd.f32 %v1159_v59, %v1071_v52  ;;  %v985_v12 = vadd.f32 %v984_v5, %v896_v60 }
 0x17c   : > { %v2173_v10 = vpop.eup %2172  ;;  %v1328_v11 = vmul.f32 1.442695, %v2751_v4 }
 0x17d   : > { %1390 = vadd.xlane.f32.xlu2 %v2173_v10  ;;  %v2757_v15 = vsel %vm1179_vm0, %v1160_v6, -inf }
 0x17e   : > { %2174 = vpow2.f32 %v1328_v11  ;;  %1262 = vmax.xlane.f32.xlu1 %v2757_v15 }
 0x180   : > { %v1073_v13 = vpop.f32.mrf.mxu2  ;;  %v897_v21 = vpop.f32.mrf.mxu0 }
 0x181   : > { %v1162_v20 = vpop.f32.mrf.mxu3  ;;  %v1074_v2 = vadd.f32 %v1073_v13, %v985_v12  ;;  %v898_v23 = vadd.f32 %v2490_v0, %v897_v21  ;;  %v1235_v61 = vpop.xlane.xlu2 %1234 }
 0x182   : > { %v986_v22 = vpop.f32.mrf.mxu1 }
 0x183   : > { %v1163_v17 = vadd.f32 %v1162_v20, %v1074_v2  ;;  %v987_v29 = vadd.f32 %v986_v22, %v898_v23 }
 0x184   : > { %v2175_v26 = vpop.eup %2174 }
 0x185   : > { %1392 = vadd.xlane.f32.xlu0 %v2175_v26  ;;  %v2763_v32 = vsel %vm1179_vm0, %v1163_v17, -inf }
 0x186   : > { %1264 = vmax.xlane.f32.xlu2 %v2763_v32 }
 0x188   : > { %v1075_v27 = vpop.f32.mrf.mxu2  ;;  %v900_v37 = vpop.f32.mrf.mxu0 }
 0x189   : > { %v1164_v34 = vpop.f32.mrf.mxu3  ;;  %v1076_v35 = vadd.f32 %v1075_v27, %v987_v29  ;;  %v901_v41 = vadd.f32 %v2490_v0, %v900_v37  ;;  %v1237_v59 = vpop.xlane.xlu0 %1236 }
 0x18a   : > { %v989_v42 = vpop.f32.mrf.mxu1  ;;  %v2779_v3 = vsub.f32 %v2630_v38, %v1237_v59 }
 0x18b   : > { %v1165_v31 = vadd.f32 %v1164_v34, %v1076_v35  ;;  %v990_v43 = vadd.f32 %v989_v42, %v901_v41  ;;  %v2282_v42 = vld [vmem:[%s3020_s2] ss:$0 sm:$0xff] }
 0x18c   : > { %v1332_v13 = vmul.f32 1.442695, %v2779_v3 }
 0x18d   : > { %v2769_v44 = vsel %vm1179_vm0, %v1165_v31, -inf }
 0x18e   : > { %1266 = vmax.xlane.f32.xlu0 %v2769_v44  ;;  %2176 = vpow2.f32 %v1332_v13 }
 0x190   : > { %v1078_v49 = vpop.f32.mrf.mxu2  ;;  %v902_v51 = vpop.f32.mrf.mxu0 }
 0x191   : > { %v1167_v47 = vpop.f32.mrf.mxu3  ;;  %v1079_v50 = vadd.f32 %v1078_v49, %v990_v43  ;;  %v903_v58 = vadd.f32 %v2490_v0, %v902_v51  ;;  %v1239_v2 = vpop.xlane.xlu1 %1238 }
 0x192   : > { %v991_v54 = vpop.f32.mrf.mxu1  ;;  %v2789_v38 = vsub.f32 %v2641_v62, %v1239_v2 }
 0x193   : > { %v1168_v57 = vadd.f32 %v1167_v47, %v1079_v50  ;;  %v992_v60 = vadd.f32 %v991_v54, %v903_v58 }
 0x194   : > { %v1334_v37 = vmul.f32 1.442695, %v2789_v38  ;;  %v2177_v43 = vpop.eup %2176 }
 0x195   : > { %v2775_v52 = vsel %vm1179_vm0, %v1168_v57, -inf }
 0x196   : > { %1268 = vmax.xlane.f32.xlu1 %v2775_v52 }
 0x198   : > { %v1080_v5 = vpop.f32.mrf.mxu2  ;;  %v905_v11 = vpop.f32.mrf.mxu0 }
 0x199   : > { %v1169_v6 = vpop.f32.mrf.mxu3  ;;  %v1081_v10 = vadd.f32 %v1080_v5, %v992_v60  ;;  %v906_v12 = vadd.f32 %v2490_v0, %v905_v11  ;;  %v1241_v23 = vpop.xlane.xlu2 %1240 }
 0x19a   : > { %v994_v21 = vpop.f32.mrf.mxu1 }
 0x19b   : > { %v1170_v20 = vadd.f32 %v1169_v6, %v1081_v10  ;;  %v995_v22 = vadd.f32 %v994_v21, %v906_v12  ;;  %v2818_v12 = vsub.f32 %v2647_v8, %v1241_v23 }
 0x19d   : > { %v2785_v17 = vsel %vm1179_vm0, %v1170_v20, -inf  ;;  %v1336_v2 = vmul.f32 1.442695, %v2818_v12 }
 0x19e   : > { %1270 = vmax.xlane.f32.xlu2 %v2785_v17 }
 0x1a0   : > { %v1083_v26 = vpop.f32.mrf.mxu2  ;;  %v907_v34 = vpop.f32.mrf.mxu0 }
 0x1a1   : > { %v1172_v29 = vpop.f32.mrf.mxu3  ;;  %v1084_v0 = vadd.f32 %v1083_v26, %v995_v22  ;;  %v1243_v27 = vpop.xlane.xlu0 %1242  ;;  %v908_v31 = vadd.f32 %v2282_v42, %v907_v34 }
 0x1a2   : > { %v2792_v35 = vsub.f32 %v2657_v25, %v1243_v27  ;;  %v996_v47 = vpop.f32.mrf.mxu1  ;;  %v2805_v25 = vsub.f32 %v2621_v24, %v1235_v61 }
 0x1a3   : > { %v1173_v41 = vadd.f32 %v1172_v29, %v1084_v0  ;;  %v997_v50 = vadd.f32 %v996_v47, %v908_v31 }
 0x1a4   : > { %v1338_v62 = vmul.f32 1.442695, %v2792_v35  ;;  %v1330_v5 = vmul.f32 1.442695, %v2805_v25 }
 0x1a5   : > { %v2801_v49 = vsel %vm1179_vm0, %v1173_v41, -inf }
 0x1a6   : > { %2178 = vpow2.f32 %v1338_v62  ;;  %1272 = vmax.xlane.f32.xlu0 %v2801_v49  ;;  %1396 = vadd.xlane.f32.xlu2 %v2177_v43 }
 0x1a7   : > { %2180 = vpow2.f32 %v1334_v37 }
 0x1a8   : > { %v1085_v51 = vpop.f32.mrf.mxu2  ;;  %v1373_v57 = vpop.xlane.xlu2 %1372 }
 0x1a9   : > { %v1086_v54 = vadd.f32 %v1085_v51, %v997_v50  ;;  %v1245_v58 = vpop.xlane.xlu1 %1244  ;;  %v1174_v59 = vpop.f32.mrf.mxu3  ;;  %2182 = vlog2.f32 %v1373_v57 }
 0x1aa   : > { %v2808_v60 = vsub.f32 %v2667_v40, %v1245_v58 }
 0x1ab   : > { %v1175_v6 = vadd.f32 %v1174_v59, %v1086_v54 }
 0x1ac   : > { %v2179_v10 = vpop.eup %2178  ;;  %v1340_v11 = vmul.f32 1.442695, %v2808_v60 }
 0x1ad   : > { %v2181_v24 = vpop.eup %2180  ;;  %v2814_v61 = vsel %vm1179_vm0, %v1175_v6, -inf }
 0x1ae   : > { %2184 = vpow2.f32 %v1340_v11  ;;  %1274 = vmax.xlane.f32.xlu1 %v2814_v61  ;;  %1398 = vadd.xlane.f32.xlu0 %v2181_v24 }
 0x1af   : > { %2186 = vpow2.f32 %v1330_v5  ;;  %1402 = vadd.xlane.f32.xlu2 %v2179_v10  ;;  %v2183_v40 = vpop.eup %2182 }
 0x1b0   : > { %v1375_v13 = vpop.xlane.xlu0 %1374  ;;  %v1437_v20 = vmul.f32 0.6931472, %v2183_v40 }
 0x1b1   : > { %2188 = vlog2.f32 %v1375_v13  ;;  %v1247_v26 = vpop.xlane.xlu2 %1246 }
 0x1b2   : > { %v1500_v21 = vsub.f32 %v2651_v16, %v1437_v20  ;;  %2190 = vpow2.f32 %v1336_v2  ;;  %v2832_v0 = vsub.f32 %v2677_v56, %v1247_v26 }
 0x1b4   : > { %v2185_v22 = vpop.eup %2184  ;;  %v1532_v23 = vsel %vm1179_vm0, %v1500_v21, 0.0  ;;  %v1342_v42 = vmul.f32 1.442695, %v2832_v0 }
 0x1b5   : > { %v2187_v8 = vpop.eup %2186  ;;  %1564 = vst [vmem:[%s2825_s15] sm:$0xff] %v1532_v23 }
 0x1b6   : > { %1394 = vadd.xlane.f32.xlu1 %v2187_v8  ;;  %1404 = vadd.xlane.f32.xlu0 %v2185_v22 }
 0x1b7   : > { %v2189_v29 = vpop.eup %2188 }
 0x1b8   : > { %v1439_v27 = vmul.f32 0.6931472, %v2189_v29  ;;  %v1377_v34 = vpop.xlane.xlu1 %1376  ;;  %v2191_v43 = vpop.eup %2190 }
 0x1b9   : > { %2192 = vlog2.f32 %v1377_v34  ;;  %v1249_v37 = vpop.xlane.xlu0 %1248 }
 0x1ba   : > { %v1501_v16 = vsub.f32 %v2661_v33, %v1439_v27  ;;  %v2836_v41 = vsub.f32 %v2687_v9, %v1249_v37 }
 0x1bc   : > { %v1533_v31 = vsel %vm1179_vm0, %v1501_v16, 0.0  ;;  %v1344_v62 = vmul.f32 1.442695, %v2836_v41 }
 0x1bd   : > { %1565 = vst [vmem:[%s2825_s15 + $0x8] sm:$0xff] %v1533_v31 }
 0x1be   : > { %2194 = vpow2.f32 %v1344_v62  ;;  %1400 = vadd.xlane.f32.xlu1 %v2191_v43 }
 0x1bf   : > { %v2193_v56 = vpop.eup %2192  ;;  %2196 = vpow2.f32 %v1342_v42 }
 0x1c0   : > { %v1441_v47 = vmul.f32 0.6931472, %v2193_v56  ;;  %v1379_v50 = vpop.xlane.xlu2 %1378 }
 0x1c1   : > { %2198 = vlog2.f32 %v1379_v50  ;;  %v1251_v33 = vpop.xlane.xlu1 %1250 }
 0x1c2   : > { %v1502_v9 = vsub.f32 %v2671_v46, %v1441_v47  ;;  %v2845_v51 = vsub.f32 %v2697_v30, %v1251_v33 }
 0x1c4   : > { %v2195_v54 = vpop.eup %2194  ;;  %v1534_v57 = vsel %vm1179_vm0, %v1502_v9, 0.0  ;;  %v1346_v58 = vmul.f32 1.442695, %v2845_v51 }
 0x1c5   : > { %v2197_v59 = vpop.eup %2196  ;;  %1566 = vst [vmem:[%s2825_s15 + $0x10] sm:$0xff] %v1534_v57  ;;  %1408 = vadd.xlane.f32.xlu2 %v2195_v54 }
 0x1c6   : > { %2200 = vpow2.f32 %v1346_v58  ;;  %1406 = vadd.xlane.f32.xlu1 %v2197_v59 }
 0x1c7   : > { %v2199_v5 = vpop.eup %2198 }
 0x1c8   : > { %v1443_v6 = vmul.f32 0.6931472, %v2199_v5  ;;  %v1381_v10 = vpop.xlane.xlu0 %1380 }
 0x1c9   : > { %2202 = vlog2.f32 %v1381_v10  ;;  %v1253_v46 = vpop.xlane.xlu2 %1252 }
 0x1ca   : > { %v1503_v30 = vsub.f32 %v2681_v1, %v1443_v6  ;;  %v2853_v11 = vsub.f32 %v2707_v48, %v1253_v46 }
 0x1cc   : > { %v2201_v24 = vpop.eup %2200  ;;  %v1535_v40 = vsel %vm1179_vm0, %v1503_v30, 0.0  ;;  %v1348_v13 = vmul.f32 1.442695, %v2853_v11 }
 0x1cd   : > { %1567 = vst [vmem:[%s2825_s15 + $0x18] sm:$0xff] %v1535_v40  ;;  %1410 = vadd.xlane.f32.xlu0 %v2201_v24 }
 0x1ce   : > { %2204 = vpow2.f32 %v1348_v13 }
 0x1cf   : > { %v2203_v20 = vpop.eup %2202 }
 0x1d0   : > { %v1445_v2 = vmul.f32 0.6931472, %v2203_v20  ;;  %v1383_v21 = vpop.xlane.xlu1 %1382 }
 0x1d1   : > { %2206 = vlog2.f32 %v1383_v21  ;;  %v1255_v22 = vpop.xlane.xlu0 %1254 }
 0x1d2   : > { %v1504_v1 = vsub.f32 %v2691_v19, %v1445_v2  ;;  %v2861_v48 = vsub.f32 %v2717_v63, %v1255_v22 }
 0x1d4   : > { %v2205_v26 = vpop.eup %2204  ;;  %v1536_v8 = vsel %vm1179_vm0, %v1504_v1, 0.0  ;;  %v1350_v23 = vmul.f32 1.442695, %v2861_v48 }
 0x1d5   : > { %1568 = vst [vmem:[%s2825_s15 + $0x20] sm:$0xff] %v1536_v8  ;;  %1412 = vadd.xlane.f32.xlu1 %v2205_v26 }
 0x1d6   : > { %2208 = vpow2.f32 %v1350_v23 }
 0x1d7   : > { %v2207_v29 = vpop.eup %2206 }
 0x1d8   : > { %v1447_v27 = vmul.f32 0.6931472, %v2207_v29  ;;  %v1385_v34 = vpop.xlane.xlu2 %1384 }
 0x1d9   : > { %2210 = vlog2.f32 %v1385_v34  ;;  %v1257_v37 = vpop.xlane.xlu1 %1256 }
 0x1da   : > { %v1505_v19 = vsub.f32 %v2701_v36, %v1447_v27  ;;  %v2869_v63 = vsub.f32 %v2727_v14, %v1257_v37 }
 0x1dc   : > { %v2209_v16 = vpop.eup %2208  ;;  %v1537_v42 = vsel %vm1179_vm0, %v1505_v19, 0.0  ;;  %v1352_v31 = vmul.f32 1.442695, %v2869_v63 }
 0x1dd   : > { %1569 = vst [vmem:[%s2825_s15 + $0x28] sm:$0xff] %v1537_v42  ;;  %1414 = vadd.xlane.f32.xlu2 %v2209_v16 }
 0x1de   : > { %2212 = vpow2.f32 %v1352_v31 }
 0x1df   : > { %v2211_v62 = vpop.eup %2210 }
 0x1e0   : > { %v1449_v43 = vmul.f32 0.6931472, %v2211_v62  ;;  %v1387_v56 = vpop.xlane.xlu0 %1386 }
 0x1e1   : > { %2214 = vlog2.f32 %v1387_v56  ;;  %v1259_v47 = vpop.xlane.xlu2 %1258 }
 0x1e2   : > { %v1506_v36 = vsub.f32 %v2711_v53, %v1449_v43  ;;  %v2877_v14 = vsub.f32 %v2737_v39, %v1259_v47 }
 0x1e4   : > { %v2213_v50 = vpop.eup %2212  ;;  %v1538_v33 = vsel %vm1179_vm0, %v1506_v36, 0.0  ;;  %v1354_v9 = vmul.f32 1.442695, %v2877_v14 }
 0x1e5   : > { %1570 = vst [vmem:[%s2825_s15 + $0x30] sm:$0xff] %v1538_v33  ;;  %1416 = vadd.xlane.f32.xlu0 %v2213_v50 }
 0x1e6   : > { %2216 = vpow2.f32 %v1354_v9 }
 0x1e7   : > { %v2215_v54 = vpop.eup %2214 }
 0x1e8   : > { %v1451_v57 = vmul.f32 0.6931472, %v2215_v54  ;;  %v1389_v58 = vpop.xlane.xlu1 %1388 }
 0x1e9   : > { %2218 = vlog2.f32 %v1389_v58  ;;  %v1261_v59 = vpop.xlane.xlu0 %1260 }
 0x1ea   : > { %v1507_v53 = vsub.f32 %v2721_v7, %v1451_v57  ;;  %v2885_v39 = vsub.f32 %v2747_v55, %v1261_v59 }
 0x1ec   : > { %v2217_v5 = vpop.eup %2216  ;;  %v1539_v6 = vsel %vm1179_vm0, %v1507_v53, 0.0  ;;  %v1356_v10 = vmul.f32 1.442695, %v2885_v39 }
 0x1ed   : > { %1571 = vst [vmem:[%s2825_s15 + $0x38] sm:$0xff] %v1539_v6  ;;  %1418 = vadd.xlane.f32.xlu1 %v2217_v5 }
 0x1ee   : > { %2220 = vpow2.f32 %v1356_v10 }
 0x1ef   : > { %v2219_v46 = vpop.eup %2218 }
 0x1f0   : > { %v1453_v30 = vmul.f32 0.6931472, %v2219_v46  ;;  %v1391_v24 = vpop.xlane.xlu2 %1390 }
 0x1f1   : > { %2222 = vlog2.f32 %v1391_v24  ;;  %v1263_v40 = vpop.xlane.xlu1 %1262 }
 0x1f2   : > { %v1508_v7 = vsub.f32 %v2731_v28, %v1453_v30  ;;  %v2893_v55 = vsub.f32 %v2757_v15, %v1263_v40 }
 0x1f4   : > { %v2221_v13 = vpop.eup %2220  ;;  %v1540_v20 = vsel %vm1179_vm0, %v1508_v7, 0.0  ;;  %v1358_v2 = vmul.f32 1.442695, %v2893_v55 }
 0x1f5   : > { %1572 = vst [vmem:[%s2825_s15 + $0x40] sm:$0xff] %v1540_v20  ;;  %1420 = vadd.xlane.f32.xlu2 %v2221_v13 }
 0x1f6   : > { %2224 = vpow2.f32 %v1358_v2 }
 0x1f7   : > { %v2223_v21 = vpop.eup %2222 }
 0x1f8   : > { %v1455_v22 = vmul.f32 0.6931472, %v2223_v21  ;;  %v1393_v1 = vpop.xlane.xlu0 %1392 }
 0x1f9   : > { %2226 = vlog2.f32 %v1393_v1  ;;  %v1265_v26 = vpop.xlane.xlu2 %1264 }
 0x1fa   : > { %v1509_v28 = vsub.f32 %v2741_v45, %v1455_v22  ;;  %v2901_v15 = vsub.f32 %v2763_v32, %v1265_v26 }
 0x1fc   : > { %v2225_v8 = vpop.eup %2224  ;;  %v1541_v23 = vsel %vm1179_vm0, %v1509_v28, 0.0  ;;  %v1360_v29 = vmul.f32 1.442695, %v2901_v15 }
 0x1fd   : > { %1573 = vst [vmem:[%s2825_s15 + $0x48] sm:$0xff] %v1541_v23  ;;  %1422 = vadd.xlane.f32.xlu0 %v2225_v8 }
 0x1fe   : > { %2228 = vpow2.f32 %v1360_v29 }
 0x1ff   : > { %v2227_v27 = vpop.eup %2226 }
 0x200   : > { %v1457_v34 = vmul.f32 0.6931472, %v2227_v27 }
 0x201   : > { %v1267_v37 = vpop.xlane.xlu0 %1266 }
 0x202   : > { %v1510_v19 = vsub.f32 %v2751_v4, %v1457_v34  ;;  %v2909_v45 = vsub.f32 %v2769_v44, %v1267_v37 }
 0x204   : > { %v2229_v16 = vpop.eup %2228  ;;  %v1542_v32 = vsel %vm1179_vm0, %v1510_v19, 0.0  ;;  %v1362_v42 = vmul.f32 1.442695, %v2909_v45 }
 0x205   : > { %1574 = vst [vmem:[%s2825_s15 + $0x50] sm:$0xff] %v1542_v32  ;;  %1424 = vadd.xlane.f32.xlu1 %v2229_v16 }
 0x206   : > { %2230 = vpow2.f32 %v1362_v42 }
 0x209   : > { %v1269_v31 = vpop.xlane.xlu1 %1268 }
 0x20a   : > { %v2916_v62 = vsub.f32 %v2775_v52, %v1269_v31 }
 0x20c   : > { %v2231_v43 = vpop.eup %2230  ;;  %v1364_v56 = vmul.f32 1.442695, %v2916_v62 }
 0x20d   : > { %1426 = vadd.xlane.f32.xlu2 %v2231_v43 }
 0x20e   : > { %2232 = vpow2.f32 %v1364_v56 }
 0x211   : > { %v1271_v4 = vpop.xlane.xlu2 %1270 }
 0x212   : > { %v2920_v44 = vsub.f32 %v2785_v17, %v1271_v4 }
 0x214   : > { %v2233_v47 = vpop.eup %2232  ;;  %v1366_v36 = vmul.f32 1.442695, %v2920_v44 }
 0x215   : > { %1428 = vadd.xlane.f32.xlu0 %v2233_v47 }
 0x216   : > { %2234 = vpow2.f32 %v1366_v36 }
 0x219   : > { %v1397_v50 = vpop.xlane.xlu2 %1396  ;;  %v1273_v33 = vpop.xlane.xlu0 %1272 }
 0x21a   : > { %2236 = vlog2.f32 %v1397_v50  ;;  %v2924_v52 = vsub.f32 %v2801_v49, %v1273_v33 }
 0x21c   : > { %v2235_v9 = vpop.eup %2234  ;;  %v1368_v54 = vmul.f32 1.442695, %v2924_v52 }
 0x21d   : > { %1430 = vadd.xlane.f32.xlu1 %v2235_v9 }
 0x21e   : > { %2238 = vpow2.f32 %v1368_v54 }
 0x220   : > { %v2237_v57 = vpop.eup %2236 }
 0x221   : > { %v1461_v17 = vmul.f32 0.6931472, %v2237_v57  ;;  %v1275_v58 = vpop.xlane.xlu1 %1274  ;;  %v1399_v59 = vpop.xlane.xlu0 %1398 }
 0x222   : > { %v2928_v53 = vsub.f32 %v2814_v61, %v1275_v58  ;;  %v1403_v5 = vpop.xlane.xlu2 %1402  ;;  %2240 = vlog2.f32 %v1399_v59 }
 0x223   : > { %v1512_v6 = vsub.f32 %v2779_v3, %v1461_v17  ;;  %2242 = vlog2.f32 %v1403_v5 }
 0x224   : > { %v2239_v49 = vpop.eup %2238  ;;  %v1370_v10 = vmul.f32 1.442695, %v2928_v53 }
 0x225   : > { %v1544_v46 = vsel %vm1179_vm0, %v1512_v6, 0.0  ;;  %1432 = vadd.xlane.f32.xlu2 %v2239_v49 }
 0x226   : > { %1576 = vst [vmem:[%s2825_s15 + $0x60] sm:$0xff] %v1544_v46  ;;  %2244 = vpow2.f32 %v1370_v10 }
 0x228   : > { %v2241_v30 = vpop.eup %2240 }
 0x229   : > { %v2243_v24 = vpop.eup %2242  ;;  %v1463_v61 = vmul.f32 0.6931472, %v2241_v30  ;;  %v1395_v40 = vpop.xlane.xlu1 %1394 }
 0x22a   : > { %v1405_v7 = vpop.xlane.xlu0 %1404  ;;  %v1467_v13 = vmul.f32 0.6931472, %v2243_v24  ;;  %2246 = vlog2.f32 %v1395_v40 }
 0x22b   : > { %v1513_v3 = vsub.f32 %v2789_v38, %v1463_v61  ;;  %2248 = vlog2.f32 %v1405_v7 }
 0x22c   : > { %v2245_v20 = vpop.eup %2244  ;;  %v1515_v2 = vsub.f32 %v2792_v35, %v1467_v13 }
 0x22d   : > { %v1545_v21 = vsel %vm1179_vm0, %v1513_v3, 0.0  ;;  %1434 = vadd.xlane.f32.xlu0 %v2245_v20 }
 0x22e   : > { %v1547_v22 = vsel %vm1179_vm0, %v1515_v2, 0.0  ;;  %1577 = vst [vmem:[%s2825_s15 + $0x68] sm:$0xff] %v1545_v21 }
 0x22f   : > { %1579 = vst [vmem:[%s2825_s15 + $0x78] sm:$0xff] %v1547_v22 }
 0x230   : > { %v2247_v1 = vpop.eup %2246 }
 0x231   : > { %v2249_v26 = vpop.eup %2248  ;;  %v1459_v28 = vmul.f32 0.6931472, %v2247_v1  ;;  %v1401_v8 = vpop.xlane.xlu1 %1400 }
 0x232   : > { %v1469_v38 = vmul.f32 0.6931472, %v2249_v26  ;;  %2250 = vlog2.f32 %v1401_v8 }
 0x233   : > { %v1511_v23 = vsub.f32 %v2805_v25, %v1459_v28 }
 0x234   : > { %v1516_v35 = vsub.f32 %v2808_v60, %v1469_v38 }
 0x235   : > { %v1543_v29 = vsel %vm1179_vm0, %v1511_v23, 0.0 }
 0x236   : > { %1575 = vst [vmem:[%s2825_s15 + $0x58] sm:$0xff] %v1543_v29  ;;  %v1548_v27 = vsel %vm1179_vm0, %v1516_v35, 0.0 }
 0x237   : > { %1580 = vst [vmem:[%s2825_s15 + $0x80] sm:$0xff] %v1548_v27 }
 0x238   : > { %v2251_v34 = vpop.eup %2250  ;;  %v1409_v37 = vpop.xlane.xlu2 %1408 }
 0x239   : > { %v1465_v19 = vmul.f32 0.6931472, %v2251_v34  ;;  %2252 = vlog2.f32 %v1409_v37  ;;  %v1407_v16 = vpop.xlane.xlu1 %1406 }
 0x23a   : > { %2254 = vlog2.f32 %v1407_v16 }
 0x23b   : > { %v1514_v25 = vsub.f32 %v2818_v12, %v1465_v19 }
 0x23d   : > { %v1546_v60 = vsel %vm1179_vm0, %v1514_v25, 0.0 }
 0x23e   : > { %1578 = vst [vmem:[%s2825_s15 + $0x70] sm:$0xff] %v1546_v60 }
 0x23f   : > { %v2253_v32 = vpop.eup %2252 }
 0x240   : > { %v2255_v42 = vpop.eup %2254  ;;  %v1473_v31 = vmul.f32 0.6931472, %v2253_v32  ;;  %v1411_v43 = vpop.xlane.xlu0 %1410 }
 0x241   : > { %v1471_v56 = vmul.f32 0.6931472, %v2255_v42  ;;  %2256 = vlog2.f32 %v1411_v43 }
 0x242   : > { %v1518_v4 = vsub.f32 %v2836_v41, %v1473_v31 }
 0x243   : > { %v1517_v47 = vsub.f32 %v2832_v0, %v1471_v56 }
 0x244   : > { %v1550_v36 = vsel %vm1179_vm0, %v1518_v4, 0.0 }
 0x245   : > { %1582 = vst [vmem:[%s2825_s15 + $0x90] sm:$0xff] %v1550_v36  ;;  %v1549_v12 = vsel %vm1179_vm0, %v1517_v47, 0.0 }
 0x246   : > { %1581 = vst [vmem:[%s2825_s15 + $0x88] sm:$0xff] %v1549_v12 }
 0x247   : > { %v2257_v50 = vpop.eup %2256 }
 0x248   : > { %v1475_v33 = vmul.f32 0.6931472, %v2257_v50  ;;  %v1413_v9 = vpop.xlane.xlu1 %1412 }
 0x249   : > { %2258 = vlog2.f32 %v1413_v9 }
 0x24a   : > { %v1519_v54 = vsub.f32 %v2845_v51, %v1475_v33 }
 0x24c   : > { %v1551_v41 = vsel %vm1179_vm0, %v1519_v54, 0.0 }
 0x24d   : > { %1583 = vst [vmem:[%s2825_s15 + $0x98] sm:$0xff] %v1551_v41 }
 0x24f   : > { %v2259_v0 = vpop.eup %2258 }
 0x250   : > { %v1477_v57 = vmul.f32 0.6931472, %v2259_v0  ;;  %v1415_v17 = vpop.xlane.xlu2 %1414 }
 0x251   : > { %2260 = vlog2.f32 %v1415_v17 }
 0x252   : > { %v1520_v58 = vsub.f32 %v2853_v11, %v1477_v57 }
 0x254   : > { %v1552_v59 = vsel %vm1179_vm0, %v1520_v58, 0.0 }
 0x255   : > { %1584 = vst [vmem:[%s2825_s15 + $0xa0] sm:$0xff] %v1552_v59 }
 0x257   : > { %v2261_v5 = vpop.eup %2260 }
 0x258   : > { %v1479_v6 = vmul.f32 0.6931472, %v2261_v5  ;;  %v1417_v49 = vpop.xlane.xlu0 %1416 }
 0x259   : > { %2262 = vlog2.f32 %v1417_v49 }
 0x25a   : > { %v1521_v51 = vsub.f32 %v2861_v48, %v1479_v6 }
 0x25c   : > { %v1553_v10 = vsel %vm1179_vm0, %v1521_v51, 0.0 }
 0x25d   : > { %1585 = vst [vmem:[%s2825_s15 + $0xa8] sm:$0xff] %v1553_v10 }
 0x25f   : > { %v2263_v46 = vpop.eup %2262 }
 0x260   : > { %v1481_v30 = vmul.f32 0.6931472, %v2263_v46  ;;  %v1419_v24 = vpop.xlane.xlu1 %1418 }
 0x261   : > { %2264 = vlog2.f32 %v1419_v24 }
 0x262   : > { %v1522_v11 = vsub.f32 %v2869_v63, %v1481_v30 }
 0x264   : > { %v1554_v61 = vsel %vm1179_vm0, %v1522_v11, 0.0 }
 0x265   : > { %1586 = vst [vmem:[%s2825_s15 + $0xb0] sm:$0xff] %v1554_v61 }
 0x267   : > { %v2265_v40 = vpop.eup %2264 }
 0x268   : > { %v1483_v7 = vmul.f32 0.6931472, %v2265_v40  ;;  %v1421_v13 = vpop.xlane.xlu2 %1420 }
 0x269   : > { %2266 = vlog2.f32 %v1421_v13 }
 0x26a   : > { %v1523_v48 = vsub.f32 %v2877_v14, %v1483_v7 }
 0x26c   : > { %v1555_v3 = vsel %vm1179_vm0, %v1523_v48, 0.0 }
 0x26d   : > { %1587 = vst [vmem:[%s2825_s15 + $0xb8] sm:$0xff] %v1555_v3 }
 0x26f   : > { %v2267_v20 = vpop.eup %2266 }
 0x270   : > { %v1485_v2 = vmul.f32 0.6931472, %v2267_v20  ;;  %v1423_v21 = vpop.xlane.xlu0 %1422 }
 0x271   : > { %2268 = vlog2.f32 %v1423_v21 }
 0x272   : > { %v1524_v63 = vsub.f32 %v2885_v39, %v1485_v2 }
 0x274   : > { %v1556_v22 = vsel %vm1179_vm0, %v1524_v63, 0.0 }
 0x275   : > { %1588 = vst [vmem:[%s2825_s15 + $0xc0] sm:$0xff] %v1556_v22 }
 0x277   : > { %v2269_v1 = vpop.eup %2268 }
 0x278   : > { %v1487_v26 = vmul.f32 0.6931472, %v2269_v1  ;;  %v1425_v28 = vpop.xlane.xlu1 %1424 }
 0x279   : > { %2270 = vlog2.f32 %v1425_v28 }
 0x27a   : > { %v1525_v14 = vsub.f32 %v2893_v55, %v1487_v26 }
 0x27c   : > { %v1557_v8 = vsel %vm1179_vm0, %v1525_v14, 0.0 }
 0x27d   : > { %1589 = vst [vmem:[%s2825_s15 + $0xc8] sm:$0xff] %v1557_v8 }
 0x27f   : > { %v2271_v38 = vpop.eup %2270 }
 0x280   : > { %v1489_v23 = vmul.f32 0.6931472, %v2271_v38  ;;  %v1427_v35 = vpop.xlane.xlu2 %1426 }
 0x281   : > { %2272 = vlog2.f32 %v1427_v35 }
 0x282   : > { %v1526_v39 = vsub.f32 %v2901_v15, %v1489_v23 }
 0x284   : > { %v1558_v29 = vsel %vm1179_vm0, %v1526_v39, 0.0 }
 0x285   : > { %1590 = vst [vmem:[%s2825_s15 + $0xd0] sm:$0xff] %v1558_v29 }
 0x287   : > { %v2273_v27 = vpop.eup %2272 }
 0x288   : > { %v1491_v34 = vmul.f32 0.6931472, %v2273_v27  ;;  %v1429_v37 = vpop.xlane.xlu0 %1428 }
 0x289   : > { %2274 = vlog2.f32 %v1429_v37 }
 0x28a   : > { %v1527_v55 = vsub.f32 %v2909_v45, %v1491_v34 }
 0x28c   : > { %v1559_v19 = vsel %vm1179_vm0, %v1527_v55, 0.0 }
 0x28d   : > { %1591 = vst [vmem:[%s2825_s15 + $0xd8] sm:$0xff] %v1559_v19 }
 0x28f   : > { %v2275_v16 = vpop.eup %2274 }
 0x290   : > { %v1493_v25 = vmul.f32 0.6931472, %v2275_v16  ;;  %v1431_v60 = vpop.xlane.xlu1 %1430 }
 0x291   : > { %2276 = vlog2.f32 %v1431_v60 }
 0x292   : > { %v1528_v15 = vsub.f32 %v2916_v62, %v1493_v25 }
 0x294   : > { %v1560_v32 = vsel %vm1179_vm0, %v1528_v15, 0.0 }
 0x295   : > { %1592 = vst [vmem:[%s2825_s15 + $0xe0] sm:$0xff] %v1560_v32 }
 0x297   : > { %v2277_v42 = vpop.eup %2276 }
 0x298   : > { %v1495_v31 = vmul.f32 0.6931472, %v2277_v42  ;;  %v1433_v43 = vpop.xlane.xlu2 %1432 }
 0x299   : > { %2278 = vlog2.f32 %v1433_v43 }
 0x29a   : > { %v1529_v45 = vsub.f32 %v2920_v44, %v1495_v31 }
 0x29c   : > { %v1561_v56 = vsel %vm1179_vm0, %v1529_v45, 0.0 }
 0x29d   : > { %1593 = vst [vmem:[%s2825_s15 + $0xe8] sm:$0xff] %v1561_v56 }
 0x29f   : > { %v2279_v4 = vpop.eup %2278 }
 0x2a0   : > { %v1497_v47 = vmul.f32 0.6931472, %v2279_v4  ;;  %v1435_v36 = vpop.xlane.xlu0 %1434 }
 0x2a1   : > { %2280 = vlog2.f32 %v1435_v36 }
 0x2a2   : > { %v1530_v62 = vsub.f32 %v2924_v52, %v1497_v47 }
 0x2a4   : > { %v1562_v12 = vsel %vm1179_vm0, %v1530_v62, 0.0 }
 0x2a5   : > { %1594 = vst [vmem:[%s2825_s15 + $0xf0] sm:$0xff] %v1562_v12 }
 0x2a7   : > { %v2281_v50 = vpop.eup %2280 }
 0x2a8   : > { %v1499_v33 = vmul.f32 0.6931472, %v2281_v50 }
 0x2aa   : > { %v1531_v9 = vsub.f32 %v2928_v53, %v1499_v33 }
 0x2ac   : > { %v1563_v44 = vsel %vm1179_vm0, %v1531_v9, 0.0 }
 0x2ad   : > { %1595 = vst [vmem:[%s2825_s15 + $0xf8] sm:$0xff] %v1563_v44 }
 0x2ae PF: > { %s13_s12 = sadd.s32 1, %s2289_s12  }
 0x2af   : > { %p10_p4 = scmp.ge.s32.totalorder %s13_s12, 4  }
 0x2b1   :  { %12 = sbr.rel (!%p10_p4) target bundleno = 1 (0x1), region = 62 }

</bundles_post_ra>
